<compile_context>
chip_gen: v7x
topology: tpu7x:2x2x1
jax: 0.10.0
libtpu: 0.0.40
codegen_flags: <defaults>
</compile_context>

<pallas_src>
import functools

import numpy as np
import jax
import jax.numpy as jnp
from jax.experimental import pallas as pl
from jax.experimental.pallas import tpu as pltpu

EXPANSION = 4                    # Bottleneck expansion
MM_TM_CAP = 512                  # matmul tile caps (bf16 operands, f32 acc)
MM_TN_CAP = 512
MM_TK_CAP = 1024
VMEM_LIMIT = 48 * 1024 * 1024    # safe on v5e/v6e (128 MiB) and v7x (64 MiB)


def _round_up(x, m):
    return ((x + m - 1) // m) * m


def _pick_tm(m, cap=MM_TM_CAP):
    """Pick an M tile that divides M (or equals it) to avoid padding copies."""
    if m <= cap:
        return m, m
    mp = _round_up(m, 8)
    for d in range(cap, 7, -8):
        if mp % d == 0:
            return d, mp
    return cap, _round_up(m, cap)


def _pick_tn(n, cap=MM_TN_CAP):
    if n <= cap:
        return n, n
    for d in range(cap, 127, -128):
        if n % d == 0:
            return d, n
    return 128, _round_up(n, 128)


def _pick_tk(k, cap=MM_TK_CAP):
    if k <= cap:
        return k, k
    for d in range(cap, 127, -128):
        if k % d == 0:
            return d, k
    if k <= 2 * cap:
        return k, k
    return cap, _round_up(k, cap)


# ----------------------------- Pallas kernels ----------------------------- #

def _make_mm_kernel(relu, has_res):
    """Tiled matmul with fused (acc + shift [+ residual], ReLU) epilogue."""
    def kernel(*refs):
        x_ref, w_ref, shift_ref = refs[0], refs[1], refs[2]
        idx = 3
        res_ref = None
        if has_res:
            res_ref = refs[idx]
            idx += 1
        o_ref = refs[idx]
        acc_ref = refs[idx + 1]

        @pl.when(pl.program_id(2) == 0)
        def _():
            acc_ref[...] = jnp.zeros_like(acc_ref)

        acc_ref[...] += jnp.dot(x_ref[...], w_ref[...],
                                preferred_element_type=jnp.float32)

        @pl.when(pl.program_id(2) == pl.num_programs(2) - 1)
        def _():
            out = acc_ref[...] + shift_ref[...]
            if has_res:
                out = out + res_ref[...].astype(jnp.float32)
            if relu:
                out = jnp.maximum(out, 0.0)
            o_ref[...] = out.astype(o_ref.dtype)

    return kernel


def _make_direct_conv_kernel(taps, cin, m_out, relu):
    """Implicit-GEMM stride-1 conv: accumulate one matmul per kernel tap.

    x_ref holds one padded image flattened to (1, Hp*Wp, Cin); tap t reads the
    (m_out, Cin) window starting at flat row offset taps[t] (= i*Wp + j) and
    multiplies it with the tap's (Cin, tcout) weight slice.
    """
    def kernel(x_ref, w_ref, shift_ref, o_ref, acc_ref):
        for t, d in enumerate(taps):
            xw = x_ref[0, pl.ds(d, m_out), :]
            wt = w_ref[pl.ds(t * cin, cin), :]
            prod = jnp.dot(xw, wt, preferred_element_type=jnp.float32)
            if t == 0:
                acc_ref[...] = prod
            else:
                acc_ref[...] += prod
        out = acc_ref[...] + shift_ref[...]
        if relu:
            out = jnp.maximum(out, 0.0)
        o_ref[...] = out[None].astype(o_ref.dtype)

    return kernel


def _mdn_kernel(y_ref, cfs_ref, k_ref, o_ref, *, scale):
    """MetadataNorm: out = Y - X @ (cf_kernel @ (X^T Y) * scale).

    N (batch) and the confounder count K are tiny; the small contractions run
    on the VPU via broadcast+sum (whole arrays fit in VMEM).
    """
    y = y_ref[...]                                                   # (N, F)
    x = cfs_ref[...]                                                 # (N, K)
    k = k_ref[...]                                                   # (K, K)
    xty = jnp.sum(x[:, :, None] * y[:, None, :], axis=0)             # (K, F)
    beta = jnp.sum(k[:, :, None] * xty[None, :, :], axis=1) * scale  # (K, F)
    pred = jnp.sum(x[:, :, None] * beta[None, :, :], axis=1)         # (N, F)
    o_ref[...] = (y - pred).astype(o_ref.dtype)


# --------------------------- Pallas call wrappers -------------------------- #

def _matmul_bias(x, w, shift, *, residual=None, relu=False,
                 out_dtype=jnp.bfloat16):
    """out = maybe_relu((x @ w) + shift [+ residual]).

    Grid-tiled (M//tm, N//tn, K//tk), f32 VMEM accumulator, bf16 MXU operands,
    epilogue only at the last K step.  Tiles divide (or equal) the real dims so
    activations/weights are not padded in the common case.
    """
    m, k = x.shape
    _, n = w.shape
    tm, mp = _pick_tm(m)
    tn, np_ = _pick_tn(n)
    tk, kp = _pick_tk(k)

    x = x if x.dtype == jnp.bfloat16 else x.astype(jnp.bfloat16)
    w = w if w.dtype == jnp.bfloat16 else w.astype(jnp.bfloat16)
    if (mp, kp) != (m, k):
        x = jnp.pad(x, ((0, mp - m), (0, kp - k)))
    if (kp, np_) != (k, n):
        w = jnp.pad(w, ((0, kp - k), (0, np_ - n)))
    shift2 = shift.reshape(1, -1).astype(jnp.float32)
    if np_ != n:
        shift2 = jnp.pad(shift2, ((0, 0), (0, np_ - n)))

    args = [x, w, shift2]
    in_specs = [pl.BlockSpec((tm, tk), lambda i, j, kk: (i, kk)),
                pl.BlockSpec((tk, tn), lambda i, j, kk: (kk, j)),
                pl.BlockSpec((1, tn), lambda i, j, kk: (0, j))]

    has_res = residual is not None
    if has_res:
        r = residual if residual.dtype == jnp.bfloat16 else residual.astype(jnp.bfloat16)
        if (mp, np_) != (m, n):
            r = jnp.pad(r, ((0, mp - m), (0, np_ - n)))
        args.append(r)
        in_specs.append(pl.BlockSpec((tm, tn), lambda i, j, kk: (i, j)))

    out = pl.pallas_call(
        _make_mm_kernel(relu, has_res),
        out_shape=jax.ShapeDtypeStruct((mp, np_), out_dtype),
        grid_spec=pltpu.PrefetchScalarGridSpec(
            num_scalar_prefetch=0,
            grid=(mp // tm, np_ // tn, kp // tk),
            in_specs=in_specs,
            out_specs=pl.BlockSpec((tm, tn), lambda i, j, kk: (i, j)),
            scratch_shapes=[pltpu.VMEM((tm, tn), jnp.float32)]),
        compiler_params=pltpu.CompilerParams(
            dimension_semantics=("parallel", "parallel", "arbitrary"),
            vmem_limit_bytes=VMEM_LIMIT),
    )(*args)
    if (mp, np_) != (m, n):
        out = out[:m, :n]
    return out


def conv2d_direct_s1(x, p, *, ksize, pad, relu):
    """Stride-1 KxK conv + folded-BN shift (+ReLU) as an implicit-GEMM kernel.

    No im2col: the padded image is flattened to (Hp*Wp, Cin) and each of the
    KH*KW taps is a shifted (m_out, Cin) window at flat offset i*Wp + j.  The
    output keeps the padded row pitch Wp; garbage columns are sliced off.
    """
    n, h, w, cin = x.shape
    cout = p['cout']
    wp = w + 2 * pad
    oh_out = h + 2 * pad - ksize + 1
    ow_out = w + 2 * pad - ksize + 1
    extra = 1 if ksize > 1 else 0            # keep every tap window in-bounds
    xp = jnp.pad(x, ((0, 0), (pad, pad + extra), (pad, pad), (0, 0)))
    m_in = (h + 2 * pad + extra) * wp
    m_out = oh_out * wp
    xf = xp.reshape(n, m_in, cin)

    taps = tuple(i * wp + j for i in range(ksize) for j in range(ksize))
    tcout = cout if cout <= 512 else 512
    assert cout % tcout == 0

    out_flat = pl.pallas_call(
        _make_direct_conv_kernel(taps, cin, m_out, relu),
        out_shape=jax.ShapeDtypeStruct((n, m_out, cout), jnp.bfloat16),
        grid_spec=pltpu.PrefetchScalarGridSpec(
            num_scalar_prefetch=0,
            grid=(cout // tcout, n),           # weights stay resident across n
            in_specs=[pl.BlockSpec((1, m_in, cin), lambda co, b: (b, 0, 0)),
                      pl.BlockSpec((ksize * ksize * cin, tcout),
                                   lambda co, b: (0, co)),
                      pl.BlockSpec((1, tcout), lambda co, b: (0, co))],
            out_specs=pl.BlockSpec((1, m_out, tcout), lambda co, b: (b, 0, co)),
            scratch_shapes=[pltpu.VMEM((m_out, tcout), jnp.float32)]),
        compiler_params=pltpu.CompilerParams(
            dimension_semantics=("parallel", "parallel"),
            vmem_limit_bytes=VMEM_LIMIT),
    )(xf, p['w'], p['shift'])
    # drop the garbage columns introduced by the flat row-pitch (= Wp) trick
    out = out_flat.reshape(n, oh_out, wp, cout)[:, :, :ow_out, :]
    return out


def _im2col(x, kh, kw, stride, padding):
    """Patch extraction glue (bf16) for the few strided KxK convs."""
    n, h, w, c = x.shape
    xp = jnp.pad(x, ((0, 0), (padding, padding), (padding, padding), (0, 0)))
    oh = (h + 2 * padding - kh) // stride + 1
    ow = (w + 2 * padding - kw) // stride + 1
    cols = []
    for i in range(kh):
        for j in range(kw):
            cols.append(xp[:, i:i + stride * oh:stride, j:j + stride * ow:stride, :])
    patches = jnp.stack(cols, axis=3)                 # (N, OH, OW, KH*KW, C)
    return patches.reshape(n * oh * ow, kh * kw * c), oh, ow


def conv_bn(x, p, *, stride, padding, relu, residual=None):
    """Conv2d (no bias) + folded BN (+ optional fused residual-add + ReLU)."""
    kh, kw = p['ksize']
    cin, cout = p['cin'], p['cout']
    n = x.shape[0]
    if kh == 1 and kw == 1:
        if stride > 1:
            # TODO(synk): strided 1x1 downsample (3 per net) still uses an XLA
            # strided slice instead of folding the stride into the index_map.
            x = x[:, ::stride, ::stride, :]
        oh, ow = x.shape[1], x.shape[2]
        patches = x.reshape(n * oh * ow, cin)
    elif stride == 1:
        assert residual is None
        return conv2d_direct_s1(x, p, ksize=kh, pad=padding, relu=relu)
    else:
        # TODO(synk): the 3 strided 3x3 convs and the 7x7 stem still go
        # through an im2col materialization (small fraction of total traffic).
        patches, oh, ow = _im2col(x, kh, kw, stride, padding)
    res2 = residual.reshape(n * oh * ow, cout) if residual is not None else None
    out = _matmul_bias(patches, p['w'], p['shift'], residual=res2, relu=relu,
                       out_dtype=jnp.bfloat16)
    return out.reshape(n, oh, ow, cout)


def max_pool_3x3_s2(x):
    """3x3 / stride-2 / pad-1 max pool.

    The stride-2 subsample is done once in XLA as a 4-way even/odd phase split
    (~1x copy); the Pallas kernel then takes the elementwise max of 9 shifted
    stride-1 windows of the phases (single pass, one image per grid step).
    """
    n, h, w, c = x.shape
    xp = jnp.pad(x, ((0, 0), (1, 1), (1, 1), (0, 0)), constant_values=-1e30)
    pee = xp[:, 0::2, 0::2, :]
    peo = xp[:, 0::2, 1::2, :]
    poe = xp[:, 1::2, 0::2, :]
    poo = xp[:, 1::2, 1::2, :]
    oh = (h + 2 - 3) // 2 + 1
    ow = (w + 2 - 3) // 2 + 1

    def kernel(pee_ref, peo_ref, poe_ref, poo_ref, o_ref):
        m = poo_ref[0, :oh, :ow, :]
        for d in range(2):
            m = jnp.maximum(m, peo_ref[0, d:d + oh, :ow, :])
            m = jnp.maximum(m, poe_ref[0, :oh, d:d + ow, :])
            for e in range(2):
                m = jnp.maximum(m, pee_ref[0, d:d + oh, e:e + ow, :])
        o_ref[...] = m[None]

    def spec(a):
        blk = (1,) + a.shape[1:]
        return pl.BlockSpec(blk, lambda b: (b, 0, 0, 0))

    return pl.pallas_call(
        kernel,
        grid=(n,),
        in_specs=[spec(pee), spec(peo), spec(poe), spec(poo)],
        out_specs=pl.BlockSpec((1, oh, ow, c), lambda b: (b, 0, 0, 0)),
        out_shape=jax.ShapeDtypeStruct((n, oh, ow, c), x.dtype),
        compiler_params=pltpu.CompilerParams(
            dimension_semantics=("parallel",), vmem_limit_bytes=VMEM_LIMIT),
    )(pee, peo, poe, poo)


def global_avg_pool(x):
    """Global average pool, gridded over batch (v5e scoped-VMEM friendly)."""
    n, h, w, c = x.shape
    x2 = x.reshape(n, h * w, c)

    def kernel(x_ref, o_ref):
        o_ref[...] = jnp.mean(x_ref[0].astype(jnp.float32), axis=0,
                              keepdims=True)[None]

    out = pl.pallas_call(
        kernel,
        grid=(n,),
        in_specs=[pl.BlockSpec((1, h * w, c), lambda b: (b, 0, 0))],
        out_specs=pl.BlockSpec((1, 1, c), lambda b: (b, 0, 0)),
        out_shape=jax.ShapeDtypeStruct((n, 1, c), jnp.float32),
        compiler_params=pltpu.CompilerParams(
            dimension_semantics=("parallel",)),
    )(x2)
    return out.reshape(n, c)


def linear(x, p, *, relu):
    # bias-only epilogue; f32 output for the MDN head math
    return _matmul_bias(x, p['w'], p['b'], relu=relu, out_dtype=jnp.float32)


def metadata_norm(y, cfs, cf_kernel, dataset_size):
    scale = float(dataset_size) / y.shape[0]
    kern = functools.partial(_mdn_kernel, scale=scale)
    return pl.pallas_call(
        kern,
        out_shape=jax.ShapeDtypeStruct(y.shape, y.dtype),
    )(y, cfs, cf_kernel)


# ------------------------------ Model definition --------------------------- #

def make_conv_bn(key, kh, kw, cin, cout):
    w = jax.random.normal(key, (kh, kw, cin, cout), jnp.float32) / np.sqrt(kh * kw * cin)
    gamma = jnp.ones((cout,), jnp.float32)
    beta = jnp.zeros((cout,), jnp.float32)
    running_mean = jnp.zeros((cout,), jnp.float32)
    running_var = jnp.ones((cout,), jnp.float32)
    eps = 1e-5
    scale = gamma / jnp.sqrt(running_var + eps)
    shift = beta - running_mean * scale
    # BN scale folded into the weight columns; only the shift stays in the
    # epilogue.  Weights are stored once, already bf16 and in (K, Cout) layout.
    w = (w * scale[None, None, None, :]).reshape(kh * kw * cin, cout).astype(jnp.bfloat16)
    return {'w': w, 'shift': shift.reshape(1, cout).astype(jnp.float32),
            'ksize': (kh, kw), 'cin': cin, 'cout': cout}


def make_linear(key, din, dout):
    k1, k2 = jax.random.split(key)
    w = (jax.random.normal(k1, (din, dout), jnp.float32) / np.sqrt(din)).astype(jnp.bfloat16)
    b = (jax.random.normal(k2, (dout,), jnp.float32) * 0.01).reshape(1, dout)
    return {'w': w, 'b': b}


def make_bottleneck(key, cin, planes, stride):
    k1, k2, k3, k4 = jax.random.split(key, 4)
    p = {
        'stride': stride,
        'conv1': make_conv_bn(k1, 1, 1, cin, planes),
        'conv2': make_conv_bn(k2, 3, 3, planes, planes),
        'conv3': make_conv_bn(k3, 1, 1, planes, planes * EXPANSION),
    }
    if stride != 1 or cin != planes * EXPANSION:
        p['downsample'] = make_conv_bn(k4, 1, 1, cin, planes * EXPANSION)
    return p


def init_params(key, *, in_ch=3, base_width=64, blocks=(3, 4, 23, 3), num_classes=2):
    keys = iter(jax.random.split(key, 1 + sum(blocks) + 3))
    params = {'stem': make_conv_bn(next(keys), 7, 7, in_ch, base_width)}
    layers = []
    cin = base_width
    for li, nb in enumerate(blocks):
        planes = base_width * (2 ** li)
        first_stride = 1 if li == 0 else 2
        layer = []
        for bi in range(nb):
            s = first_stride if bi == 0 else 1
            layer.append(make_bottleneck(next(keys), cin, planes, s))
            cin = planes * EXPANSION
        layers.append(layer)
    params['layers'] = layers
    feat = cin                                  # == bb.base_model.fc.weight.shape[1]
    params['fc1'] = make_linear(next(keys), feat, feat)
    params['fc2'] = make_linear(next(keys), feat, feat)
    params['fc3'] = make_linear(next(keys), feat, num_classes)
    return params, feat


def bottleneck_forward(x, p):
    stride = p['stride']
    if 'downsample' in p:
        identity = conv_bn(x, p['downsample'], stride=stride, padding=0, relu=False)
    else:
        identity = x
    out = conv_bn(x, p['conv1'], stride=1, padding=0, relu=True)
    out = conv_bn(out, p['conv2'], stride=stride, padding=1, relu=True)
    # residual add + ReLU fused into the conv3 matmul epilogue
    out = conv_bn(out, p['conv3'], stride=1, padding=0, relu=True, residual=identity)
    return out


def forward(params, x_nchw, cfs, cf_kernel, dataset_size):
    # NCHW (PyTorch convention) -> NHWC bf16 for the kernels
    x = jnp.transpose(x_nchw, (0, 2, 3, 1)).astype(jnp.bfloat16)

    # backbone = Sequential(children[0:8])
    x = conv_bn(x, params['stem'], stride=2, padding=3, relu=True)
    x = max_pool_3x3_s2(x)
    for layer in params['layers']:
        for blk in layer:
            x = bottleneck_forward(x, blk)

    feat = global_avg_pool(x)                           # avg_pool(.).reshape(N, -1)
    phi = linear(feat, params['fc1'], relu=True)        # F.relu(fc1(.))
    phi = metadata_norm(phi, cfs, cf_kernel, dataset_size)
    phi = linear(phi, params['fc2'], relu=True)         # F.relu(fc2(.))
    phi = metadata_norm(phi, cfs, cf_kernel, dataset_size)
    y_hat = linear(phi, params['fc3'], relu=False)      # fc3(.)
    return y_hat


# ----------------------------------- main ---------------------------------- #

if __name__ == "__main__":
    key = jax.random.PRNGKey(0)
    k_param, k_x, k_cf, k_ds = jax.random.split(key, 4)

    # Small test config (real model: blocks=(3,4,23,3), base_width=64, 3x224x224 input)
    N, C_IN, H, W = 2, 3, 16, 16
    NUM_CLASSES = 2
    DATASET_SIZE = 64
    BASE_WIDTH = 8
    BLOCKS = (1, 1, 1, 1)

    params, feat_dim = init_params(k_param, in_ch=C_IN, base_width=BASE_WIDTH,
                                   blocks=BLOCKS, num_classes=NUM_CLASSES)

    x = jax.random.normal(k_x, (N, C_IN, H, W), jnp.float32)          # NCHW input
    # confounders: one metadata variable + intercept column
    cfs = jnp.concatenate([jax.random.normal(k_cf, (N, 1), jnp.float32),
                           jnp.ones((N, 1), jnp.float32)], axis=1)    # (N, 2)
    # cf_kernel = inv(X_ds^T X_ds) over a synthetic confounder "dataset"
    X_ds = jnp.concatenate([jax.random.normal(k_ds, (DATASET_SIZE, 1), jnp.float32),
                            jnp.ones((DATASET_SIZE, 1), jnp.float32)], axis=1)
    cf_kernel = jnp.asarray(np.linalg.inv(np.asarray(X_ds.T @ X_ds)), jnp.float32)

    fwd = jax.jit(lambda xx, cc: forward(params, xx, cc, cf_kernel, DATASET_SIZE))
    y_hat = fwd(x, cfs)
    jax.block_until_ready(y_hat)

    assert y_hat.shape == (N, NUM_CLASSES), y_hat.shape
    assert bool(jnp.all(jnp.isfinite(y_hat)))
    print("KERNEL_OK")
</pallas_src>

<mosaic_0001>
module attributes {stable_mosaic.version = 11 : i64} {
  func.func @kernel(%arg0: i32, %arg1: i32, %arg2: i32, %arg3: memref<128x147xbf16, #tpu.memory_space<vmem>>, %arg4: memref<147x8xbf16, #tpu.memory_space<vmem>>, %arg5: memref<1x8xf32, #tpu.memory_space<vmem>>, %arg6: memref<128x8xbf16, #tpu.memory_space<vmem>>, %arg7: memref<128x8xf32, #tpu.memory_space<vmem>>) attributes {dimension_semantics = [#tpu.dimension_semantics<parallel>, #tpu.dimension_semantics<parallel>, #tpu.dimension_semantics<arbitrary>], iteration_bounds = array<i64: 1, 1, 1>, scalar_prefetch = 0 : i64, scratch_operands = 1 : i64, tpu.core_type = #tpu.core_type<tc>, window_params = [{transform_indices = @transform_0, window_bounds = array<i64: 128, 147>}, {transform_indices = @transform_1, window_bounds = array<i64: 147, 8>}, {transform_indices = @transform_2, window_bounds = array<i64: 1, 8>}, {transform_indices = @transform_3, window_bounds = array<i64: 128, 8>}]} {
    %c0_i32 = arith.constant 0 : i32
    %0 = arith.cmpi eq, %arg2, %c0_i32 : i32
    %1 = arith.extui %0 : i1 to i32
    %c0_i32_0 = arith.constant 0 : i32
    %2 = arith.cmpi ne, %1, %c0_i32_0 : i32
    scf.if %2 {
      %cst_10 = arith.constant 0.000000e+00 : f32
      %12 = vector.broadcast %cst_10 : f32 to vector<128x8xf32>
      %c0_11 = arith.constant 0 : index
      %c0_12 = arith.constant 0 : index
      %13 = vector.load %arg7[%c0_11, %c0_12] : memref<128x8xf32, #tpu.memory_space<vmem>>, vector<128x8xf32>
      tpu.vector_store %arg7[%c0_11, %c0_12], %12 {strides = array<i32>} : memref<128x8xf32, #tpu.memory_space<vmem>>, vector<128x8xf32>,
    } else {
    }
    %c0 = arith.constant 0 : index
    %c0_1 = arith.constant 0 : index
    %3 = vector.load %arg7[%c0, %c0_1] : memref<128x8xf32, #tpu.memory_space<vmem>>, vector<128x8xf32>
    %c0_2 = arith.constant 0 : index
    %c0_3 = arith.constant 0 : index
    %4 = vector.load %arg3[%c0_2, %c0_3] : memref<128x147xbf16, #tpu.memory_space<vmem>>, vector<128x147xbf16>
    %c0_4 = arith.constant 0 : index
    %c0_5 = arith.constant 0 : index
    %5 = vector.load %arg4[%c0_4, %c0_5] : memref<147x8xbf16, #tpu.memory_space<vmem>>, vector<147x8xbf16>
    %cst = arith.constant dense<0.000000e+00> : vector<128x8xf32>
    %6 = tpu.matmul %4, %5, %cst {dimension_numbers = #tpu.dot_dimension_numbers<[1], [0], [0], [1], [0, 0, 1, 1], [], []>} : vector<128x147xbf16>, vector<147x8xbf16>, vector<128x8xf32> -> vector<128x8xf32>
    %7 = arith.addf %3, %6 : vector<128x8xf32>
    %c0_6 = arith.constant 0 : index
    %c0_7 = arith.constant 0 : index
    %8 = vector.load %arg7[%c0_6, %c0_7] : memref<128x8xf32, #tpu.memory_space<vmem>>, vector<128x8xf32>
    tpu.vector_store %arg7[%c0_6, %c0_7], %7 {strides = array<i32>} : memref<128x8xf32, #tpu.memory_space<vmem>>, vector<128x8xf32>,
    %c0_i32_8 = arith.constant 0 : i32
    %9 = arith.cmpi eq, %arg2, %c0_i32_8 : i32
    %10 = arith.extui %9 : i1 to i32
    %c0_i32_9 = arith.constant 0 : i32
    %11 = arith.cmpi ne, %10, %c0_i32_9 : i32
    scf.if %11 {
      %c0_10 = arith.constant 0 : index
      %c0_11 = arith.constant 0 : index
      %12 = vector.load %arg7[%c0_10, %c0_11] : memref<128x8xf32, #tpu.memory_space<vmem>>, vector<128x8xf32>
      %c0_12 = arith.constant 0 : index
      %c0_13 = arith.constant 0 : index
      %13 = vector.load %arg5[%c0_12, %c0_13] : memref<1x8xf32, #tpu.memory_space<vmem>>, vector<1x8xf32>
      %14 = vector.broadcast %13 : vector<1x8xf32> to vector<128x8xf32>
      %15 = arith.addf %12, %14 : vector<128x8xf32>
      %cst_14 = arith.constant 0.000000e+00 : f32
      %16 = vector.broadcast %cst_14 : f32 to vector<128x8xf32>
      %17 = arith.maximumf %15, %16 : vector<128x8xf32>
      %18 = arith.truncf %17 : vector<128x8xf32> to vector<128x8xbf16>
      %c0_15 = arith.constant 0 : index
      %c0_16 = arith.constant 0 : index
      %19 = vector.load %arg6[%c0_15, %c0_16] : memref<128x8xbf16, #tpu.memory_space<vmem>>, vector<128x8xbf16>
      tpu.vector_store %arg6[%c0_15, %c0_16], %18 {strides = array<i32>} : memref<128x8xbf16, #tpu.memory_space<vmem>>, vector<128x8xbf16>,
    } else {
    }
    return
  }
  func.func @transform_0(%arg0: i32, %arg1: i32, %arg2: i32) -> (i32, i32) {
    %c0_i32 = arith.constant 0 : i32
    return %arg0, %arg2 : i32, i32
  }
  func.func @transform_1(%arg0: i32, %arg1: i32, %arg2: i32) -> (i32, i32) {
    %c0_i32 = arith.constant 0 : i32
    return %arg2, %arg1 : i32, i32
  }
  func.func @transform_2(%arg0: i32, %arg1: i32, %arg2: i32) -> (i32, i32) {
    %c0_i32 = arith.constant 0 : i32
    %c0_i32_0 = arith.constant 0 : i32
    return %c0_i32, %arg1 : i32, i32
  }
  func.func @transform_3(%arg0: i32, %arg1: i32, %arg2: i32) -> (i32, i32) {
    %c0_i32 = arith.constant 0 : i32
    return %arg0, %arg1 : i32, i32
  }
}

module attributes {stable_mosaic.version = 11 : i64} {
  func.func @kernel(%arg0: i32, %arg1: i32, %arg2: i32, %arg3: memref<32x8xbf16, #tpu.memory_space<vmem>>, %arg4: memref<8x8xbf16, #tpu.memory_space<vmem>>, %arg5: memref<1x8xf32, #tpu.memory_space<vmem>>, %arg6: memref<32x8xbf16, #tpu.memory_space<vmem>>, %arg7: memref<32x8xf32, #tpu.memory_space<vmem>>) attributes {dimension_semantics = [#tpu.dimension_semantics<parallel>, #tpu.dimension_semantics<parallel>, #tpu.dimension_semantics<arbitrary>], iteration_bounds = array<i64: 1, 1, 1>, scalar_prefetch = 0 : i64, scratch_operands = 1 : i64, tpu.core_type = #tpu.core_type<tc>, window_params = [{transform_indices = @transform_0, window_bounds = array<i64: 32, 8>}, {transform_indices = @transform_1, window_bounds = array<i64: 8, 8>}, {transform_indices = @transform_2, window_bounds = array<i64: 1, 8>}, {transform_indices = @transform_3, window_bounds = array<i64: 32, 8>}]} {
    %c0_i32 = arith.constant 0 : i32
    %0 = arith.cmpi eq, %arg2, %c0_i32 : i32
    %1 = arith.extui %0 : i1 to i32
    %c0_i32_0 = arith.constant 0 : i32
    %2 = arith.cmpi ne, %1, %c0_i32_0 : i32
    scf.if %2 {
      %cst_10 = arith.constant 0.000000e+00 : f32
      %12 = vector.broadcast %cst_10 : f32 to vector<32x8xf32>
      %c0_11 = arith.constant 0 : index
      %c0_12 = arith.constant 0 : index
      %13 = vector.load %arg7[%c0_11, %c0_12] : memref<32x8xf32, #tpu.memory_space<vmem>>, vector<32x8xf32>
      tpu.vector_store %arg7[%c0_11, %c0_12], %12 {strides = array<i32>} : memref<32x8xf32, #tpu.memory_space<vmem>>, vector<32x8xf32>,
    } else {
    }
    %c0 = arith.constant 0 : index
    %c0_1 = arith.constant 0 : index
    %3 = vector.load %arg7[%c0, %c0_1] : memref<32x8xf32, #tpu.memory_space<vmem>>, vector<32x8xf32>
    %c0_2 = arith.constant 0 : index
    %c0_3 = arith.constant 0 : index
    %4 = vector.load %arg3[%c0_2, %c0_3] : memref<32x8xbf16, #tpu.memory_space<vmem>>, vector<32x8xbf16>
    %c0_4 = arith.constant 0 : index
    %c0_5 = arith.constant 0 : index
    %5 = vector.load %arg4[%c0_4, %c0_5] : memref<8x8xbf16, #tpu.memory_space<vmem>>, vector<8x8xbf16>
    %cst = arith.constant dense<0.000000e+00> : vector<32x8xf32>
    %6 = tpu.matmul %4, %5, %cst {dimension_numbers = #tpu.dot_dimension_numbers<[1], [0], [0], [1], [0, 0, 1, 1], [], []>} : vector<32x8xbf16>, vector<8x8xbf16>, vector<32x8xf32> -> vector<32x8xf32>
    %7 = arith.addf %3, %6 : vector<32x8xf32>
    %c0_6 = arith.constant 0 : index
    %c0_7 = arith.constant 0 : index
    %8 = vector.load %arg7[%c0_6, %c0_7] : memref<32x8xf32, #tpu.memory_space<vmem>>, vector<32x8xf32>
    tpu.vector_store %arg7[%c0_6, %c0_7], %7 {strides = array<i32>} : memref<32x8xf32, #tpu.memory_space<vmem>>, vector<32x8xf32>,
    %c0_i32_8 = arith.constant 0 : i32
    %9 = arith.cmpi eq, %arg2, %c0_i32_8 : i32
    %10 = arith.extui %9 : i1 to i32
    %c0_i32_9 = arith.constant 0 : i32
    %11 = arith.cmpi ne, %10, %c0_i32_9 : i32
    scf.if %11 {
      %c0_10 = arith.constant 0 : index
      %c0_11 = arith.constant 0 : index
      %12 = vector.load %arg7[%c0_10, %c0_11] : memref<32x8xf32, #tpu.memory_space<vmem>>, vector<32x8xf32>
      %c0_12 = arith.constant 0 : index
      %c0_13 = arith.constant 0 : index
      %13 = vector.load %arg5[%c0_12, %c0_13] : memref<1x8xf32, #tpu.memory_space<vmem>>, vector<1x8xf32>
      %14 = vector.broadcast %13 : vector<1x8xf32> to vector<32x8xf32>
      %15 = arith.addf %12, %14 : vector<32x8xf32>
      %cst_14 = arith.constant 0.000000e+00 : f32
      %16 = vector.broadcast %cst_14 : f32 to vector<32x8xf32>
      %17 = arith.maximumf %15, %16 : vector<32x8xf32>
      %18 = arith.truncf %17 : vector<32x8xf32> to vector<32x8xbf16>
      %c0_15 = arith.constant 0 : index
      %c0_16 = arith.constant 0 : index
      %19 = vector.load %arg6[%c0_15, %c0_16] : memref<32x8xbf16, #tpu.memory_space<vmem>>, vector<32x8xbf16>
      tpu.vector_store %arg6[%c0_15, %c0_16], %18 {strides = array<i32>} : memref<32x8xbf16, #tpu.memory_space<vmem>>, vector<32x8xbf16>,
    } else {
    }
    return
  }
  func.func @transform_0(%arg0: i32, %arg1: i32, %arg2: i32) -> (i32, i32) {
    %c0_i32 = arith.constant 0 : i32
    return %arg0, %arg2 : i32, i32
  }
  func.func @transform_1(%arg0: i32, %arg1: i32, %arg2: i32) -> (i32, i32) {
    %c0_i32 = arith.constant 0 : i32
    return %arg2, %arg1 : i32, i32
  }
  func.func @transform_2(%arg0: i32, %arg1: i32, %arg2: i32) -> (i32, i32) {
    %c0_i32 = arith.constant 0 : i32
    %c0_i32_0 = arith.constant 0 : i32
    return %c0_i32, %arg1 : i32, i32
  }
  func.func @transform_3(%arg0: i32, %arg1: i32, %arg2: i32) -> (i32, i32) {
    %c0_i32 = arith.constant 0 : i32
    return %arg0, %arg1 : i32, i32
  }
}

module attributes {stable_mosaic.version = 11 : i64} {
  func.func @kernel(%arg0: i32, %arg1: memref<1x5x5x8xbf16, #tpu.memory_space<vmem>>, %arg2: memref<1x5x5x8xbf16, #tpu.memory_space<vmem>>, %arg3: memref<1x5x5x8xbf16, #tpu.memory_space<vmem>>, %arg4: memref<1x5x5x8xbf16, #tpu.memory_space<vmem>>, %arg5: memref<1x4x4x8xbf16, #tpu.memory_space<vmem>>) attributes {dimension_semantics = [#tpu.dimension_semantics<parallel>], iteration_bounds = array<i64: 2>, scalar_prefetch = 0 : i64, scratch_operands = 0 : i64, tpu.core_type = #tpu.core_type<tc>, window_params = [{transform_indices = @transform_0, window_bounds = array<i64: 1, 5, 5, 8>}, {transform_indices = @transform_1, window_bounds = array<i64: 1, 5, 5, 8>}, {transform_indices = @transform_2, window_bounds = array<i64: 1, 5, 5, 8>}, {transform_indices = @transform_3, window_bounds = array<i64: 1, 5, 5, 8>}, {transform_indices = @transform_4, window_bounds = array<i64: 1, 4, 4, 8>}]} {
    %c0 = arith.constant 0 : index
    %c0_0 = arith.constant 0 : index
    %c0_1 = arith.constant 0 : index
    %c0_2 = arith.constant 0 : index
    %0 = vector.load %arg4[%c0, %c0_0, %c0_1, %c0_2] : memref<1x5x5x8xbf16, #tpu.memory_space<vmem>>, vector<1x4x4x8xbf16>
    %1 = vector.shape_cast %0 : vector<1x4x4x8xbf16> to vector<4x4x8xbf16>
    %c0_3 = arith.constant 0 : index
    %c0_4 = arith.constant 0 : index
    %c0_5 = arith.constant 0 : index
    %c0_6 = arith.constant 0 : index
    %2 = vector.load %arg2[%c0_3, %c0_4, %c0_5, %c0_6] : memref<1x5x5x8xbf16, #tpu.memory_space<vmem>>, vector<1x4x4x8xbf16>
    %3 = vector.shape_cast %2 : vector<1x4x4x8xbf16> to vector<4x4x8xbf16>
    %4 = arith.maximumf %1, %3 : vector<4x4x8xbf16>
    %c0_7 = arith.constant 0 : index
    %c0_8 = arith.constant 0 : index
    %c0_9 = arith.constant 0 : index
    %c0_10 = arith.constant 0 : index
    %5 = vector.load %arg3[%c0_7, %c0_8, %c0_9, %c0_10] : memref<1x5x5x8xbf16, #tpu.memory_space<vmem>>, vector<1x4x4x8xbf16>
    %6 = vector.shape_cast %5 : vector<1x4x4x8xbf16> to vector<4x4x8xbf16>
    %7 = arith.maximumf %4, %6 : vector<4x4x8xbf16>
    %c0_11 = arith.constant 0 : index
    %c0_12 = arith.constant 0 : index
    %c0_13 = arith.constant 0 : index
    %c0_14 = arith.constant 0 : index
    %8 = vector.load %arg1[%c0_11, %c0_12, %c0_13, %c0_14] : memref<1x5x5x8xbf16, #tpu.memory_space<vmem>>, vector<1x4x4x8xbf16>
    %9 = vector.shape_cast %8 : vector<1x4x4x8xbf16> to vector<4x4x8xbf16>
    %10 = arith.maximumf %7, %9 : vector<4x4x8xbf16>
    %c0_15 = arith.constant 0 : index
    %c0_16 = arith.constant 0 : index
    %c1 = arith.constant 1 : index
    %c0_17 = arith.constant 0 : index
    %11 = vector.load %arg1[%c0_15, %c0_16, %c1, %c0_17] : memref<1x5x5x8xbf16, #tpu.memory_space<vmem>>, vector<1x4x4x8xbf16>
    %12 = vector.shape_cast %11 : vector<1x4x4x8xbf16> to vector<4x4x8xbf16>
    %13 = arith.maximumf %10, %12 : vector<4x4x8xbf16>
    %c0_18 = arith.constant 0 : index
    %c1_19 = arith.constant 1 : index
    %c0_20 = arith.constant 0 : index
    %c0_21 = arith.constant 0 : index
    %14 = vector.load %arg2[%c0_18, %c1_19, %c0_20, %c0_21] : memref<1x5x5x8xbf16, #tpu.memory_space<vmem>>, vector<1x4x4x8xbf16>
    %15 = vector.shape_cast %14 : vector<1x4x4x8xbf16> to vector<4x4x8xbf16>
    %16 = arith.maximumf %13, %15 : vector<4x4x8xbf16>
    %c0_22 = arith.constant 0 : index
    %c0_23 = arith.constant 0 : index
    %c1_24 = arith.constant 1 : index
    %c0_25 = arith.constant 0 : index
    %17 = vector.load %arg3[%c0_22, %c0_23, %c1_24, %c0_25] : memref<1x5x5x8xbf16, #tpu.memory_space<vmem>>, vector<1x4x4x8xbf16>
    %18 = vector.shape_cast %17 : vector<1x4x4x8xbf16> to vector<4x4x8xbf16>
    %19 = arith.maximumf %16, %18 : vector<4x4x8xbf16>
    %c0_26 = arith.constant 0 : index
    %c1_27 = arith.constant 1 : index
    %c0_28 = arith.constant 0 : index
    %c0_29 = arith.constant 0 : index
    %20 = vector.load %arg1[%c0_26, %c1_27, %c0_28, %c0_29] : memref<1x5x5x8xbf16, #tpu.memory_space<vmem>>, vector<1x4x4x8xbf16>
    %21 = vector.shape_cast %20 : vector<1x4x4x8xbf16> to vector<4x4x8xbf16>
    %22 = arith.maximumf %19, %21 : vector<4x4x8xbf16>
    %c0_30 = arith.constant 0 : index
    %c1_31 = arith.constant 1 : index
    %c1_32 = arith.constant 1 : index
    %c0_33 = arith.constant 0 : index
    %23 = vector.load %arg1[%c0_30, %c1_31, %c1_32, %c0_33] : memref<1x5x5x8xbf16, #tpu.memory_space<vmem>>, vector<1x4x4x8xbf16>
    %24 = vector.shape_cast %23 : vector<1x4x4x8xbf16> to vector<4x4x8xbf16>
    %25 = arith.maximumf %22, %24 : vector<4x4x8xbf16>
    %26 = vector.shape_cast %25 : vector<4x4x8xbf16> to vector<1x4x4x8xbf16>
    %c0_34 = arith.constant 0 : index
    %c0_35 = arith.constant 0 : index
    %c0_36 = arith.constant 0 : index
    %c0_37 = arith.constant 0 : index
    %27 = vector.load %arg5[%c0_34, %c0_35, %c0_36, %c0_37] : memref<1x4x4x8xbf16, #tpu.memory_space<vmem>>, vector<1x4x4x8xbf16>
    tpu.vector_store %arg5[%c0_34, %c0_35, %c0_36, %c0_37], %26 {strides = array<i32>} : memref<1x4x4x8xbf16, #tpu.memory_space<vmem>>, vector<1x4x4x8xbf16>,
    return
  }
  func.func @transform_0(%arg0: i32) -> (i32, i32, i32, i32) {
    %c0_i32 = arith.constant 0 : i32
    %c0_i32_0 = arith.constant 0 : i32
    %c0_i32_1 = arith.constant 0 : i32
    %c0_i32_2 = arith.constant 0 : i32
    return %arg0, %c0_i32, %c0_i32_0, %c0_i32_1 : i32, i32, i32, i32
  }
  func.func @transform_1(%arg0: i32) -> (i32, i32, i32, i32) {
    %c0_i32 = arith.constant 0 : i32
    %c0_i32_0 = arith.constant 0 : i32
    %c0_i32_1 = arith.constant 0 : i32
    %c0_i32_2 = arith.constant 0 : i32
    return %arg0, %c0_i32, %c0_i32_0, %c0_i32_1 : i32, i32, i32, i32
  }
  func.func @transform_2(%arg0: i32) -> (i32, i32, i32, i32) {
    %c0_i32 = arith.constant 0 : i32
    %c0_i32_0 = arith.constant 0 : i32
    %c0_i32_1 = arith.constant 0 : i32
    %c0_i32_2 = arith.constant 0 : i32
    return %arg0, %c0_i32, %c0_i32_0, %c0_i32_1 : i32, i32, i32, i32
  }
  func.func @transform_3(%arg0: i32) -> (i32, i32, i32, i32) {
    %c0_i32 = arith.constant 0 : i32
    %c0_i32_0 = arith.constant 0 : i32
    %c0_i32_1 = arith.constant 0 : i32
    %c0_i32_2 = arith.constant 0 : i32
    return %arg0, %c0_i32, %c0_i32_0, %c0_i32_1 : i32, i32, i32, i32
  }
  func.func @transform_4(%arg0: i32) -> (i32, i32, i32, i32) {
    %c0_i32 = arith.constant 0 : i32
    %c0_i32_0 = arith.constant 0 : i32
    %c0_i32_1 = arith.constant 0 : i32
    %c0_i32_2 = arith.constant 0 : i32
    return %arg0, %c0_i32, %c0_i32_0, %c0_i32_1 : i32, i32, i32, i32
  }
}

module attributes {stable_mosaic.version = 11 : i64} {
  func.func @kernel(%arg0: i32, %arg1: i32, %arg2: memref<1x42x8xbf16, #tpu.memory_space<vmem>>, %arg3: memref<72x8xbf16, #tpu.memory_space<vmem>>, %arg4: memref<1x8xf32, #tpu.memory_space<vmem>>, %arg5: memref<1x24x8xbf16, #tpu.memory_space<vmem>>, %arg6: memref<24x8xf32, #tpu.memory_space<vmem>>) attributes {dimension_semantics = [#tpu.dimension_semantics<parallel>, #tpu.dimension_semantics<parallel>], iteration_bounds = array<i64: 1, 2>, scalar_prefetch = 0 : i64, scratch_operands = 1 : i64, tpu.core_type = #tpu.core_type<tc>, window_params = [{transform_indices = @transform_0, window_bounds = array<i64: 1, 42, 8>}, {transform_indices = @transform_1, window_bounds = array<i64: 72, 8>}, {transform_indices = @transform_2, window_bounds = array<i64: 1, 8>}, {transform_indices = @transform_3, window_bounds = array<i64: 1, 24, 8>}]} {
    %c0 = arith.constant 0 : index
    %c0_0 = arith.constant 0 : index
    %c0_1 = arith.constant 0 : index
    %0 = vector.load %arg2[%c0, %c0_0, %c0_1] : memref<1x42x8xbf16, #tpu.memory_space<vmem>>, vector<1x24x8xbf16>
    %1 = vector.shape_cast %0 : vector<1x24x8xbf16> to vector<24x8xbf16>
    %c0_2 = arith.constant 0 : index
    %c0_3 = arith.constant 0 : index
    %2 = vector.load %arg3[%c0_2, %c0_3] : memref<72x8xbf16, #tpu.memory_space<vmem>>, vector<8x8xbf16>
    %cst = arith.constant dense<0.000000e+00> : vector<24x8xf32>
    %3 = tpu.matmul %1, %2, %cst {dimension_numbers = #tpu.dot_dimension_numbers<[1], [0], [0], [1], [0, 0, 1, 1], [], []>} : vector<24x8xbf16>, vector<8x8xbf16>, vector<24x8xf32> -> vector<24x8xf32>
    %c0_4 = arith.constant 0 : index
    %c0_5 = arith.constant 0 : index
    %4 = vector.load %arg6[%c0_4, %c0_5] : memref<24x8xf32, #tpu.memory_space<vmem>>, vector<24x8xf32>
    tpu.vector_store %arg6[%c0_4, %c0_5], %3 {strides = array<i32>} : memref<24x8xf32, #tpu.memory_space<vmem>>, vector<24x8xf32>,
    %c0_6 = arith.constant 0 : index
    %c1 = arith.constant 1 : index
    %c0_7 = arith.constant 0 : index
    %5 = vector.load %arg2[%c0_6, %c1, %c0_7] : memref<1x42x8xbf16, #tpu.memory_space<vmem>>, vector<1x24x8xbf16>
    %6 = vector.shape_cast %5 : vector<1x24x8xbf16> to vector<24x8xbf16>
    %c8 = arith.constant 8 : index
    %c0_8 = arith.constant 0 : index
    %7 = vector.load %arg3[%c8, %c0_8] : memref<72x8xbf16, #tpu.memory_space<vmem>>, vector<8x8xbf16>
    %cst_9 = arith.constant dense<0.000000e+00> : vector<24x8xf32>
    %8 = tpu.matmul %6, %7, %cst_9 {dimension_numbers = #tpu.dot_dimension_numbers<[1], [0], [0], [1], [0, 0, 1, 1], [], []>} : vector<24x8xbf16>, vector<8x8xbf16>, vector<24x8xf32> -> vector<24x8xf32>
    %c0_10 = arith.constant 0 : index
    %c0_11 = arith.constant 0 : index
    %9 = vector.load %arg6[%c0_10, %c0_11] : memref<24x8xf32, #tpu.memory_space<vmem>>, vector<24x8xf32>
    %10 = arith.addf %9, %8 : vector<24x8xf32>
    %c0_12 = arith.constant 0 : index
    %c0_13 = arith.constant 0 : index
    %11 = vector.load %arg6[%c0_12, %c0_13] : memref<24x8xf32, #tpu.memory_space<vmem>>, vector<24x8xf32>
    tpu.vector_store %arg6[%c0_12, %c0_13], %10 {strides = array<i32>} : memref<24x8xf32, #tpu.memory_space<vmem>>, vector<24x8xf32>,
    %c0_14 = arith.constant 0 : index
    %c2 = arith.constant 2 : index
    %c0_15 = arith.constant 0 : index
    %12 = vector.load %arg2[%c0_14, %c2, %c0_15] : memref<1x42x8xbf16, #tpu.memory_space<vmem>>, vector<1x24x8xbf16>
    %13 = vector.shape_cast %12 : vector<1x24x8xbf16> to vector<24x8xbf16>
    %c16 = arith.constant 16 : index
    %c0_16 = arith.constant 0 : index
    %14 = vector.load %arg3[%c16, %c0_16] : memref<72x8xbf16, #tpu.memory_space<vmem>>, vector<8x8xbf16>
    %cst_17 = arith.constant dense<0.000000e+00> : vector<24x8xf32>
    %15 = tpu.matmul %13, %14, %cst_17 {dimension_numbers = #tpu.dot_dimension_numbers<[1], [0], [0], [1], [0, 0, 1, 1], [], []>} : vector<24x8xbf16>, vector<8x8xbf16>, vector<24x8xf32> -> vector<24x8xf32>
    %c0_18 = arith.constant 0 : index
    %c0_19 = arith.constant 0 : index
    %16 = vector.load %arg6[%c0_18, %c0_19] : memref<24x8xf32, #tpu.memory_space<vmem>>, vector<24x8xf32>
    %17 = arith.addf %16, %15 : vector<24x8xf32>
    %c0_20 = arith.constant 0 : index
    %c0_21 = arith.constant 0 : index
    %18 = vector.load %arg6[%c0_20, %c0_21] : memref<24x8xf32, #tpu.memory_space<vmem>>, vector<24x8xf32>
    tpu.vector_store %arg6[%c0_20, %c0_21], %17 {strides = array<i32>} : memref<24x8xf32, #tpu.memory_space<vmem>>, vector<24x8xf32>,
    %c0_22 = arith.constant 0 : index
    %c6 = arith.constant 6 : index
    %c0_23 = arith.constant 0 : index
    %19 = vector.load %arg2[%c0_22, %c6, %c0_23] : memref<1x42x8xbf16, #tpu.memory_space<vmem>>, vector<1x24x8xbf16>
    %20 = vector.shape_cast %19 : vector<1x24x8xbf16> to vector<24x8xbf16>
    %c24 = arith.constant 24 : index
    %c0_24 = arith.constant 0 : index
    %21 = vector.load %arg3[%c24, %c0_24] : memref<72x8xbf16, #tpu.memory_space<vmem>>, vector<8x8xbf16>
    %cst_25 = arith.constant dense<0.000000e+00> : vector<24x8xf32>
    %22 = tpu.matmul %20, %21, %cst_25 {dimension_numbers = #tpu.dot_dimension_numbers<[1], [0], [0], [1], [0, 0, 1, 1], [], []>} : vector<24x8xbf16>, vector<8x8xbf16>, vector<24x8xf32> -> vector<24x8xf32>
    %c0_26 = arith.constant 0 : index
    %c0_27 = arith.constant 0 : index
    %23 = vector.load %arg6[%c0_26, %c0_27] : memref<24x8xf32, #tpu.memory_space<vmem>>, vector<24x8xf32>
    %24 = arith.addf %23, %22 : vector<24x8xf32>
    %c0_28 = arith.constant 0 : index
    %c0_29 = arith.constant 0 : index
    %25 = vector.load %arg6[%c0_28, %c0_29] : memref<24x8xf32, #tpu.memory_space<vmem>>, vector<24x8xf32>
    tpu.vector_store %arg6[%c0_28, %c0_29], %24 {strides = array<i32>} : memref<24x8xf32, #tpu.memory_space<vmem>>, vector<24x8xf32>,
    %c0_30 = arith.constant 0 : index
    %c7 = arith.constant 7 : index
    %c0_31 = arith.constant 0 : index
    %26 = vector.load %arg2[%c0_30, %c7, %c0_31] : memref<1x42x8xbf16, #tpu.memory_space<vmem>>, vector<1x24x8xbf16>
    %27 = vector.shape_cast %26 : vector<1x24x8xbf16> to vector<24x8xbf16>
    %c32 = arith.constant 32 : index
    %c0_32 = arith.constant 0 : index
    %28 = vector.load %arg3[%c32, %c0_32] : memref<72x8xbf16, #tpu.memory_space<vmem>>, vector<8x8xbf16>
    %cst_33 = arith.constant dense<0.000000e+00> : vector<24x8xf32>
    %29 = tpu.matmul %27, %28, %cst_33 {dimension_numbers = #tpu.dot_dimension_numbers<[1], [0], [0], [1], [0, 0, 1, 1], [], []>} : vector<24x8xbf16>, vector<8x8xbf16>, vector<24x8xf32> -> vector<24x8xf32>
    %c0_34 = arith.constant 0 : index
    %c0_35 = arith.constant 0 : index
    %30 = vector.load %arg6[%c0_34, %c0_35] : memref<24x8xf32, #tpu.memory_space<vmem>>, vector<24x8xf32>
    %31 = arith.addf %30, %29 : vector<24x8xf32>
    %c0_36 = arith.constant 0 : index
    %c0_37 = arith.constant 0 : index
    %32 = vector.load %arg6[%c0_36, %c0_37] : memref<24x8xf32, #tpu.memory_space<vmem>>, vector<24x8xf32>
    tpu.vector_store %arg6[%c0_36, %c0_37], %31 {strides = array<i32>} : memref<24x8xf32, #tpu.memory_space<vmem>>, vector<24x8xf32>,
    %c0_38 = arith.constant 0 : index
    %c8_39 = arith.constant 8 : index
    %c0_40 = arith.constant 0 : index
    %33 = vector.load %arg2[%c0_38, %c8_39, %c0_40] : memref<1x42x8xbf16, #tpu.memory_space<vmem>>, vector<1x24x8xbf16>
    %34 = vector.shape_cast %33 : vector<1x24x8xbf16> to vector<24x8xbf16>
    %c40 = arith.constant 40 : index
    %c0_41 = arith.constant 0 : index
    %35 = vector.load %arg3[%c40, %c0_41] : memref<72x8xbf16, #tpu.memory_space<vmem>>, vector<8x8xbf16>
    %cst_42 = arith.constant dense<0.000000e+00> : vector<24x8xf32>
    %36 = tpu.matmul %34, %35, %cst_42 {dimension_numbers = #tpu.dot_dimension_numbers<[1], [0], [0], [1], [0, 0, 1, 1], [], []>} : vector<24x8xbf16>, vector<8x8xbf16>, vector<24x8xf32> -> vector<24x8xf32>
    %c0_43 = arith.constant 0 : index
    %c0_44 = arith.constant 0 : index
    %37 = vector.load %arg6[%c0_43, %c0_44] : memref<24x8xf32, #tpu.memory_space<vmem>>, vector<24x8xf32>
    %38 = arith.addf %37, %36 : vector<24x8xf32>
    %c0_45 = arith.constant 0 : index
    %c0_46 = arith.constant 0 : index
    %39 = vector.load %arg6[%c0_45, %c0_46] : memref<24x8xf32, #tpu.memory_space<vmem>>, vector<24x8xf32>
    tpu.vector_store %arg6[%c0_45, %c0_46], %38 {strides = array<i32>} : memref<24x8xf32, #tpu.memory_space<vmem>>, vector<24x8xf32>,
    %c0_47 = arith.constant 0 : index
    %c12 = arith.constant 12 : index
    %c0_48 = arith.constant 0 : index
    %40 = vector.load %arg2[%c0_47, %c12, %c0_48] : memref<1x42x8xbf16, #tpu.memory_space<vmem>>, vector<1x24x8xbf16>
    %41 = vector.shape_cast %40 : vector<1x24x8xbf16> to vector<24x8xbf16>
    %c48 = arith.constant 48 : index
    %c0_49 = arith.constant 0 : index
    %42 = vector.load %arg3[%c48, %c0_49] : memref<72x8xbf16, #tpu.memory_space<vmem>>, vector<8x8xbf16>
    %cst_50 = arith.constant dense<0.000000e+00> : vector<24x8xf32>
    %43 = tpu.matmul %41, %42, %cst_50 {dimension_numbers = #tpu.dot_dimension_numbers<[1], [0], [0], [1], [0, 0, 1, 1], [], []>} : vector<24x8xbf16>, vector<8x8xbf16>, vector<24x8xf32> -> vector<24x8xf32>
    %c0_51 = arith.constant 0 : index
    %c0_52 = arith.constant 0 : index
    %44 = vector.load %arg6[%c0_51, %c0_52] : memref<24x8xf32, #tpu.memory_space<vmem>>, vector<24x8xf32>
    %45 = arith.addf %44, %43 : vector<24x8xf32>
    %c0_53 = arith.constant 0 : index
    %c0_54 = arith.constant 0 : index
    %46 = vector.load %arg6[%c0_53, %c0_54] : memref<24x8xf32, #tpu.memory_space<vmem>>, vector<24x8xf32>
    tpu.vector_store %arg6[%c0_53, %c0_54], %45 {strides = array<i32>} : memref<24x8xf32, #tpu.memory_space<vmem>>, vector<24x8xf32>,
    %c0_55 = arith.constant 0 : index
    %c13 = arith.constant 13 : index
    %c0_56 = arith.constant 0 : index
    %47 = vector.load %arg2[%c0_55, %c13, %c0_56] : memref<1x42x8xbf16, #tpu.memory_space<vmem>>, vector<1x24x8xbf16>
    %48 = vector.shape_cast %47 : vector<1x24x8xbf16> to vector<24x8xbf16>
    %c56 = arith.constant 56 : index
    %c0_57 = arith.constant 0 : index
    %49 = vector.load %arg3[%c56, %c0_57] : memref<72x8xbf16, #tpu.memory_space<vmem>>, vector<8x8xbf16>
    %cst_58 = arith.constant dense<0.000000e+00> : vector<24x8xf32>
    %50 = tpu.matmul %48, %49, %cst_58 {dimension_numbers = #tpu.dot_dimension_numbers<[1], [0], [0], [1], [0, 0, 1, 1], [], []>} : vector<24x8xbf16>, vector<8x8xbf16>, vector<24x8xf32> -> vector<24x8xf32>
    %c0_59 = arith.constant 0 : index
    %c0_60 = arith.constant 0 : index
    %51 = vector.load %arg6[%c0_59, %c0_60] : memref<24x8xf32, #tpu.memory_space<vmem>>, vector<24x8xf32>
    %52 = arith.addf %51, %50 : vector<24x8xf32>
    %c0_61 = arith.constant 0 : index
    %c0_62 = arith.constant 0 : index
    %53 = vector.load %arg6[%c0_61, %c0_62] : memref<24x8xf32, #tpu.memory_space<vmem>>, vector<24x8xf32>
    tpu.vector_store %arg6[%c0_61, %c0_62], %52 {strides = array<i32>} : memref<24x8xf32, #tpu.memory_space<vmem>>, vector<24x8xf32>,
    %c0_63 = arith.constant 0 : index
    %c14 = arith.constant 14 : index
    %c0_64 = arith.constant 0 : index
    %54 = vector.load %arg2[%c0_63, %c14, %c0_64] : memref<1x42x8xbf16, #tpu.memory_space<vmem>>, vector<1x24x8xbf16>
    %55 = vector.shape_cast %54 : vector<1x24x8xbf16> to vector<24x8xbf16>
    %c64 = arith.constant 64 : index
    %c0_65 = arith.constant 0 : index
    %56 = vector.load %arg3[%c64, %c0_65] : memref<72x8xbf16, #tpu.memory_space<vmem>>, vector<8x8xbf16>
    %cst_66 = arith.constant dense<0.000000e+00> : vector<24x8xf32>
    %57 = tpu.matmul %55, %56, %cst_66 {dimension_numbers = #tpu.dot_dimension_numbers<[1], [0], [0], [1], [0, 0, 1, 1], [], []>} : vector<24x8xbf16>, vector<8x8xbf16>, vector<24x8xf32> -> vector<24x8xf32>
    %c0_67 = arith.constant 0 : index
    %c0_68 = arith.constant 0 : index
    %58 = vector.load %arg6[%c0_67, %c0_68] : memref<24x8xf32, #tpu.memory_space<vmem>>, vector<24x8xf32>
    %59 = arith.addf %58, %57 : vector<24x8xf32>
    %c0_69 = arith.constant 0 : index
    %c0_70 = arith.constant 0 : index
    %60 = vector.load %arg6[%c0_69, %c0_70] : memref<24x8xf32, #tpu.memory_space<vmem>>, vector<24x8xf32>
    tpu.vector_store %arg6[%c0_69, %c0_70], %59 {strides = array<i32>} : memref<24x8xf32, #tpu.memory_space<vmem>>, vector<24x8xf32>,
    %c0_71 = arith.constant 0 : index
    %c0_72 = arith.constant 0 : index
    %61 = vector.load %arg6[%c0_71, %c0_72] : memref<24x8xf32, #tpu.memory_space<vmem>>, vector<24x8xf32>
    %c0_73 = arith.constant 0 : index
    %c0_74 = arith.constant 0 : index
    %62 = vector.load %arg4[%c0_73, %c0_74] : memref<1x8xf32, #tpu.memory_space<vmem>>, vector<1x8xf32>
    %63 = vector.broadcast %62 : vector<1x8xf32> to vector<24x8xf32>
    %64 = arith.addf %61, %63 : vector<24x8xf32>
    %cst_75 = arith.constant 0.000000e+00 : f32
    %65 = vector.broadcast %cst_75 : f32 to vector<24x8xf32>
    %66 = arith.maximumf %64, %65 : vector<24x8xf32>
    %67 = vector.shape_cast %66 : vector<24x8xf32> to vector<1x24x8xf32>
    %68 = arith.truncf %67 : vector<1x24x8xf32> to vector<1x24x8xbf16>
    %c0_76 = arith.constant 0 : index
    %c0_77 = arith.constant 0 : index
    %c0_78 = arith.constant 0 : index
    %69 = vector.load %arg5[%c0_76, %c0_77, %c0_78] : memref<1x24x8xbf16, #tpu.memory_space<vmem>>, vector<1x24x8xbf16>
    tpu.vector_store %arg5[%c0_76, %c0_77, %c0_78], %68 {strides = array<i32>} : memref<1x24x8xbf16, #tpu.memory_space<vmem>>, vector<1x24x8xbf16>,
    return
  }
  func.func @transform_0(%arg0: i32, %arg1: i32) -> (i32, i32, i32) {
    %c0_i32 = arith.constant 0 : i32
    %c0_i32_0 = arith.constant 0 : i32
    %c0_i32_1 = arith.constant 0 : i32
    return %arg1, %c0_i32, %c0_i32_0 : i32, i32, i32
  }
  func.func @transform_1(%arg0: i32, %arg1: i32) -> (i32, i32) {
    %c0_i32 = arith.constant 0 : i32
    %c0_i32_0 = arith.constant 0 : i32
    return %c0_i32, %arg0 : i32, i32
  }
  func.func @transform_2(%arg0: i32, %arg1: i32) -> (i32, i32) {
    %c0_i32 = arith.constant 0 : i32
    %c0_i32_0 = arith.constant 0 : i32
    return %c0_i32, %arg0 : i32, i32
  }
  func.func @transform_3(%arg0: i32, %arg1: i32) -> (i32, i32, i32) {
    %c0_i32 = arith.constant 0 : i32
    %c0_i32_0 = arith.constant 0 : i32
    return %arg1, %c0_i32, %arg0 : i32, i32, i32
  }
}

module attributes {stable_mosaic.version = 11 : i64} {
  func.func @kernel(%arg0: i32, %arg1: i32, %arg2: i32, %arg3: memref<32x8xbf16, #tpu.memory_space<vmem>>, %arg4: memref<8x32xbf16, #tpu.memory_space<vmem>>, %arg5: memref<1x32xf32, #tpu.memory_space<vmem>>, %arg6: memref<32x32xbf16, #tpu.memory_space<vmem>>, %arg7: memref<32x32xf32, #tpu.memory_space<vmem>>) attributes {dimension_semantics = [#tpu.dimension_semantics<parallel>, #tpu.dimension_semantics<parallel>, #tpu.dimension_semantics<arbitrary>], iteration_bounds = array<i64: 1, 1, 1>, scalar_prefetch = 0 : i64, scratch_operands = 1 : i64, tpu.core_type = #tpu.core_type<tc>, window_params = [{transform_indices = @transform_0, window_bounds = array<i64: 32, 8>}, {transform_indices = @transform_1, window_bounds = array<i64: 8, 32>}, {transform_indices = @transform_2, window_bounds = array<i64: 1, 32>}, {transform_indices = @transform_3, window_bounds = array<i64: 32, 32>}]} {
    %c0_i32 = arith.constant 0 : i32
    %0 = arith.cmpi eq, %arg2, %c0_i32 : i32
    %1 = arith.extui %0 : i1 to i32
    %c0_i32_0 = arith.constant 0 : i32
    %2 = arith.cmpi ne, %1, %c0_i32_0 : i32
    scf.if %2 {
      %cst_10 = arith.constant 0.000000e+00 : f32
      %12 = vector.broadcast %cst_10 : f32 to vector<32x32xf32>
      %c0_11 = arith.constant 0 : index
      %c0_12 = arith.constant 0 : index
      %13 = vector.load %arg7[%c0_11, %c0_12] : memref<32x32xf32, #tpu.memory_space<vmem>>, vector<32x32xf32>
      tpu.vector_store %arg7[%c0_11, %c0_12], %12 {strides = array<i32>} : memref<32x32xf32, #tpu.memory_space<vmem>>, vector<32x32xf32>,
    } else {
    }
    %c0 = arith.constant 0 : index
    %c0_1 = arith.constant 0 : index
    %3 = vector.load %arg7[%c0, %c0_1] : memref<32x32xf32, #tpu.memory_space<vmem>>, vector<32x32xf32>
    %c0_2 = arith.constant 0 : index
    %c0_3 = arith.constant 0 : index
    %4 = vector.load %arg3[%c0_2, %c0_3] : memref<32x8xbf16, #tpu.memory_space<vmem>>, vector<32x8xbf16>
    %c0_4 = arith.constant 0 : index
    %c0_5 = arith.constant 0 : index
    %5 = vector.load %arg4[%c0_4, %c0_5] : memref<8x32xbf16, #tpu.memory_space<vmem>>, vector<8x32xbf16>
    %cst = arith.constant dense<0.000000e+00> : vector<32x32xf32>
    %6 = tpu.matmul %4, %5, %cst {dimension_numbers = #tpu.dot_dimension_numbers<[1], [0], [0], [1], [0, 0, 1, 1], [], []>} : vector<32x8xbf16>, vector<8x32xbf16>, vector<32x32xf32> -> vector<32x32xf32>
    %7 = arith.addf %3, %6 : vector<32x32xf32>
    %c0_6 = arith.constant 0 : index
    %c0_7 = arith.constant 0 : index
    %8 = vector.load %arg7[%c0_6, %c0_7] : memref<32x32xf32, #tpu.memory_space<vmem>>, vector<32x32xf32>
    tpu.vector_store %arg7[%c0_6, %c0_7], %7 {strides = array<i32>} : memref<32x32xf32, #tpu.memory_space<vmem>>, vector<32x32xf32>,
    %c0_i32_8 = arith.constant 0 : i32
    %9 = arith.cmpi eq, %arg2, %c0_i32_8 : i32
    %10 = arith.extui %9 : i1 to i32
    %c0_i32_9 = arith.constant 0 : i32
    %11 = arith.cmpi ne, %10, %c0_i32_9 : i32
    scf.if %11 {
      %c0_10 = arith.constant 0 : index
      %c0_11 = arith.constant 0 : index
      %12 = vector.load %arg7[%c0_10, %c0_11] : memref<32x32xf32, #tpu.memory_space<vmem>>, vector<32x32xf32>
      %c0_12 = arith.constant 0 : index
      %c0_13 = arith.constant 0 : index
      %13 = vector.load %arg5[%c0_12, %c0_13] : memref<1x32xf32, #tpu.memory_space<vmem>>, vector<1x32xf32>
      %14 = vector.broadcast %13 : vector<1x32xf32> to vector<32x32xf32>
      %15 = arith.addf %12, %14 : vector<32x32xf32>
      %16 = arith.truncf %15 : vector<32x32xf32> to vector<32x32xbf16>
      %c0_14 = arith.constant 0 : index
      %c0_15 = arith.constant 0 : index
      %17 = vector.load %arg6[%c0_14, %c0_15] : memref<32x32xbf16, #tpu.memory_space<vmem>>, vector<32x32xbf16>
      tpu.vector_store %arg6[%c0_14, %c0_15], %16 {strides = array<i32>} : memref<32x32xbf16, #tpu.memory_space<vmem>>, vector<32x32xbf16>,
    } else {
    }
    return
  }
  func.func @transform_0(%arg0: i32, %arg1: i32, %arg2: i32) -> (i32, i32) {
    %c0_i32 = arith.constant 0 : i32
    return %arg0, %arg2 : i32, i32
  }
  func.func @transform_1(%arg0: i32, %arg1: i32, %arg2: i32) -> (i32, i32) {
    %c0_i32 = arith.constant 0 : i32
    return %arg2, %arg1 : i32, i32
  }
  func.func @transform_2(%arg0: i32, %arg1: i32, %arg2: i32) -> (i32, i32) {
    %c0_i32 = arith.constant 0 : i32
    %c0_i32_0 = arith.constant 0 : i32
    return %c0_i32, %arg1 : i32, i32
  }
  func.func @transform_3(%arg0: i32, %arg1: i32, %arg2: i32) -> (i32, i32) {
    %c0_i32 = arith.constant 0 : i32
    return %arg0, %arg1 : i32, i32
  }
}

module attributes {stable_mosaic.version = 11 : i64} {
  func.func @kernel(%arg0: i32, %arg1: i32, %arg2: i32, %arg3: memref<32x8xbf16, #tpu.memory_space<vmem>>, %arg4: memref<8x32xbf16, #tpu.memory_space<vmem>>, %arg5: memref<1x32xf32, #tpu.memory_space<vmem>>, %arg6: memref<32x32xbf16, #tpu.memory_space<vmem>>, %arg7: memref<32x32xbf16, #tpu.memory_space<vmem>>, %arg8: memref<32x32xf32, #tpu.memory_space<vmem>>) attributes {dimension_semantics = [#tpu.dimension_semantics<parallel>, #tpu.dimension_semantics<parallel>, #tpu.dimension_semantics<arbitrary>], iteration_bounds = array<i64: 1, 1, 1>, scalar_prefetch = 0 : i64, scratch_operands = 1 : i64, tpu.core_type = #tpu.core_type<tc>, window_params = [{transform_indices = @transform_0, window_bounds = array<i64: 32, 8>}, {transform_indices = @transform_1, window_bounds = array<i64: 8, 32>}, {transform_indices = @transform_2, window_bounds = array<i64: 1, 32>}, {transform_indices = @transform_3, window_bounds = array<i64: 32, 32>}, {transform_indices = @transform_4, window_bounds = array<i64: 32, 32>}]} {
    %c0_i32 = arith.constant 0 : i32
    %0 = arith.cmpi eq, %arg2, %c0_i32 : i32
    %1 = arith.extui %0 : i1 to i32
    %c0_i32_0 = arith.constant 0 : i32
    %2 = arith.cmpi ne, %1, %c0_i32_0 : i32
    scf.if %2 {
      %cst_10 = arith.constant 0.000000e+00 : f32
      %12 = vector.broadcast %cst_10 : f32 to vector<32x32xf32>
      %c0_11 = arith.constant 0 : index
      %c0_12 = arith.constant 0 : index
      %13 = vector.load %arg8[%c0_11, %c0_12] : memref<32x32xf32, #tpu.memory_space<vmem>>, vector<32x32xf32>
      tpu.vector_store %arg8[%c0_11, %c0_12], %12 {strides = array<i32>} : memref<32x32xf32, #tpu.memory_space<vmem>>, vector<32x32xf32>,
    } else {
    }
    %c0 = arith.constant 0 : index
    %c0_1 = arith.constant 0 : index
    %3 = vector.load %arg8[%c0, %c0_1] : memref<32x32xf32, #tpu.memory_space<vmem>>, vector<32x32xf32>
    %c0_2 = arith.constant 0 : index
    %c0_3 = arith.constant 0 : index
    %4 = vector.load %arg3[%c0_2, %c0_3] : memref<32x8xbf16, #tpu.memory_space<vmem>>, vector<32x8xbf16>
    %c0_4 = arith.constant 0 : index
    %c0_5 = arith.constant 0 : index
    %5 = vector.load %arg4[%c0_4, %c0_5] : memref<8x32xbf16, #tpu.memory_space<vmem>>, vector<8x32xbf16>
    %cst = arith.constant dense<0.000000e+00> : vector<32x32xf32>
    %6 = tpu.matmul %4, %5, %cst {dimension_numbers = #tpu.dot_dimension_numbers<[1], [0], [0], [1], [0, 0, 1, 1], [], []>} : vector<32x8xbf16>, vector<8x32xbf16>, vector<32x32xf32> -> vector<32x32xf32>
    %7 = arith.addf %3, %6 : vector<32x32xf32>
    %c0_6 = arith.constant 0 : index
    %c0_7 = arith.constant 0 : index
    %8 = vector.load %arg8[%c0_6, %c0_7] : memref<32x32xf32, #tpu.memory_space<vmem>>, vector<32x32xf32>
    tpu.vector_store %arg8[%c0_6, %c0_7], %7 {strides = array<i32>} : memref<32x32xf32, #tpu.memory_space<vmem>>, vector<32x32xf32>,
    %c0_i32_8 = arith.constant 0 : i32
    %9 = arith.cmpi eq, %arg2, %c0_i32_8 : i32
    %10 = arith.extui %9 : i1 to i32
    %c0_i32_9 = arith.constant 0 : i32
    %11 = arith.cmpi ne, %10, %c0_i32_9 : i32
    scf.if %11 {
      %c0_10 = arith.constant 0 : index
      %c0_11 = arith.constant 0 : index
      %12 = vector.load %arg8[%c0_10, %c0_11] : memref<32x32xf32, #tpu.memory_space<vmem>>, vector<32x32xf32>
      %c0_12 = arith.constant 0 : index
      %c0_13 = arith.constant 0 : index
      %13 = vector.load %arg5[%c0_12, %c0_13] : memref<1x32xf32, #tpu.memory_space<vmem>>, vector<1x32xf32>
      %14 = vector.broadcast %13 : vector<1x32xf32> to vector<32x32xf32>
      %15 = arith.addf %12, %14 : vector<32x32xf32>
      %c0_14 = arith.constant 0 : index
      %c0_15 = arith.constant 0 : index
      %16 = vector.load %arg6[%c0_14, %c0_15] : memref<32x32xbf16, #tpu.memory_space<vmem>>, vector<32x32xbf16>
      %17 = arith.extf %16 : vector<32x32xbf16> to vector<32x32xf32>
      %18 = arith.addf %15, %17 : vector<32x32xf32>
      %cst_16 = arith.constant 0.000000e+00 : f32
      %19 = vector.broadcast %cst_16 : f32 to vector<32x32xf32>
      %20 = arith.maximumf %18, %19 : vector<32x32xf32>
      %21 = arith.truncf %20 : vector<32x32xf32> to vector<32x32xbf16>
      %c0_17 = arith.constant 0 : index
      %c0_18 = arith.constant 0 : index
      %22 = vector.load %arg7[%c0_17, %c0_18] : memref<32x32xbf16, #tpu.memory_space<vmem>>, vector<32x32xbf16>
      tpu.vector_store %arg7[%c0_17, %c0_18], %21 {strides = array<i32>} : memref<32x32xbf16, #tpu.memory_space<vmem>>, vector<32x32xbf16>,
    } else {
    }
    return
  }
  func.func @transform_0(%arg0: i32, %arg1: i32, %arg2: i32) -> (i32, i32) {
    %c0_i32 = arith.constant 0 : i32
    return %arg0, %arg2 : i32, i32
  }
  func.func @transform_1(%arg0: i32, %arg1: i32, %arg2: i32) -> (i32, i32) {
    %c0_i32 = arith.constant 0 : i32
    return %arg2, %arg1 : i32, i32
  }
  func.func @transform_2(%arg0: i32, %arg1: i32, %arg2: i32) -> (i32, i32) {
    %c0_i32 = arith.constant 0 : i32
    %c0_i32_0 = arith.constant 0 : i32
    return %c0_i32, %arg1 : i32, i32
  }
  func.func @transform_3(%arg0: i32, %arg1: i32, %arg2: i32) -> (i32, i32) {
    %c0_i32 = arith.constant 0 : i32
    return %arg0, %arg1 : i32, i32
  }
  func.func @transform_4(%arg0: i32, %arg1: i32, %arg2: i32) -> (i32, i32) {
    %c0_i32 = arith.constant 0 : i32
    return %arg0, %arg1 : i32, i32
  }
}

module attributes {stable_mosaic.version = 11 : i64} {
  func.func @kernel(%arg0: i32, %arg1: i32, %arg2: i32, %arg3: memref<32x32xbf16, #tpu.memory_space<vmem>>, %arg4: memref<32x16xbf16, #tpu.memory_space<vmem>>, %arg5: memref<1x16xf32, #tpu.memory_space<vmem>>, %arg6: memref<32x16xbf16, #tpu.memory_space<vmem>>, %arg7: memref<32x16xf32, #tpu.memory_space<vmem>>) attributes {dimension_semantics = [#tpu.dimension_semantics<parallel>, #tpu.dimension_semantics<parallel>, #tpu.dimension_semantics<arbitrary>], iteration_bounds = array<i64: 1, 1, 1>, scalar_prefetch = 0 : i64, scratch_operands = 1 : i64, tpu.core_type = #tpu.core_type<tc>, window_params = [{transform_indices = @transform_0, window_bounds = array<i64: 32, 32>}, {transform_indices = @transform_1, window_bounds = array<i64: 32, 16>}, {transform_indices = @transform_2, window_bounds = array<i64: 1, 16>}, {transform_indices = @transform_3, window_bounds = array<i64: 32, 16>}]} {
    %c0_i32 = arith.constant 0 : i32
    %0 = arith.cmpi eq, %arg2, %c0_i32 : i32
    %1 = arith.extui %0 : i1 to i32
    %c0_i32_0 = arith.constant 0 : i32
    %2 = arith.cmpi ne, %1, %c0_i32_0 : i32
    scf.if %2 {
      %cst_10 = arith.constant 0.000000e+00 : f32
      %12 = vector.broadcast %cst_10 : f32 to vector<32x16xf32>
      %c0_11 = arith.constant 0 : index
      %c0_12 = arith.constant 0 : index
      %13 = vector.load %arg7[%c0_11, %c0_12] : memref<32x16xf32, #tpu.memory_space<vmem>>, vector<32x16xf32>
      tpu.vector_store %arg7[%c0_11, %c0_12], %12 {strides = array<i32>} : memref<32x16xf32, #tpu.memory_space<vmem>>, vector<32x16xf32>,
    } else {
    }
    %c0 = arith.constant 0 : index
    %c0_1 = arith.constant 0 : index
    %3 = vector.load %arg7[%c0, %c0_1] : memref<32x16xf32, #tpu.memory_space<vmem>>, vector<32x16xf32>
    %c0_2 = arith.constant 0 : index
    %c0_3 = arith.constant 0 : index
    %4 = vector.load %arg3[%c0_2, %c0_3] : memref<32x32xbf16, #tpu.memory_space<vmem>>, vector<32x32xbf16>
    %c0_4 = arith.constant 0 : index
    %c0_5 = arith.constant 0 : index
    %5 = vector.load %arg4[%c0_4, %c0_5] : memref<32x16xbf16, #tpu.memory_space<vmem>>, vector<32x16xbf16>
    %cst = arith.constant dense<0.000000e+00> : vector<32x16xf32>
    %6 = tpu.matmul %4, %5, %cst {dimension_numbers = #tpu.dot_dimension_numbers<[1], [0], [0], [1], [0, 0, 1, 1], [], []>} : vector<32x32xbf16>, vector<32x16xbf16>, vector<32x16xf32> -> vector<32x16xf32>
    %7 = arith.addf %3, %6 : vector<32x16xf32>
    %c0_6 = arith.constant 0 : index
    %c0_7 = arith.constant 0 : index
    %8 = vector.load %arg7[%c0_6, %c0_7] : memref<32x16xf32, #tpu.memory_space<vmem>>, vector<32x16xf32>
    tpu.vector_store %arg7[%c0_6, %c0_7], %7 {strides = array<i32>} : memref<32x16xf32, #tpu.memory_space<vmem>>, vector<32x16xf32>,
    %c0_i32_8 = arith.constant 0 : i32
    %9 = arith.cmpi eq, %arg2, %c0_i32_8 : i32
    %10 = arith.extui %9 : i1 to i32
    %c0_i32_9 = arith.constant 0 : i32
    %11 = arith.cmpi ne, %10, %c0_i32_9 : i32
    scf.if %11 {
      %c0_10 = arith.constant 0 : index
      %c0_11 = arith.constant 0 : index
      %12 = vector.load %arg7[%c0_10, %c0_11] : memref<32x16xf32, #tpu.memory_space<vmem>>, vector<32x16xf32>
      %c0_12 = arith.constant 0 : index
      %c0_13 = arith.constant 0 : index
      %13 = vector.load %arg5[%c0_12, %c0_13] : memref<1x16xf32, #tpu.memory_space<vmem>>, vector<1x16xf32>
      %14 = vector.broadcast %13 : vector<1x16xf32> to vector<32x16xf32>
      %15 = arith.addf %12, %14 : vector<32x16xf32>
      %cst_14 = arith.constant 0.000000e+00 : f32
      %16 = vector.broadcast %cst_14 : f32 to vector<32x16xf32>
      %17 = arith.maximumf %15, %16 : vector<32x16xf32>
      %18 = arith.truncf %17 : vector<32x16xf32> to vector<32x16xbf16>
      %c0_15 = arith.constant 0 : index
      %c0_16 = arith.constant 0 : index
      %19 = vector.load %arg6[%c0_15, %c0_16] : memref<32x16xbf16, #tpu.memory_space<vmem>>, vector<32x16xbf16>
      tpu.vector_store %arg6[%c0_15, %c0_16], %18 {strides = array<i32>} : memref<32x16xbf16, #tpu.memory_space<vmem>>, vector<32x16xbf16>,
    } else {
    }
    return
  }
  func.func @transform_0(%arg0: i32, %arg1: i32, %arg2: i32) -> (i32, i32) {
    %c0_i32 = arith.constant 0 : i32
    return %arg0, %arg2 : i32, i32
  }
  func.func @transform_1(%arg0: i32, %arg1: i32, %arg2: i32) -> (i32, i32) {
    %c0_i32 = arith.constant 0 : i32
    return %arg2, %arg1 : i32, i32
  }
  func.func @transform_2(%arg0: i32, %arg1: i32, %arg2: i32) -> (i32, i32) {
    %c0_i32 = arith.constant 0 : i32
    %c0_i32_0 = arith.constant 0 : i32
    return %c0_i32, %arg1 : i32, i32
  }
  func.func @transform_3(%arg0: i32, %arg1: i32, %arg2: i32) -> (i32, i32) {
    %c0_i32 = arith.constant 0 : i32
    return %arg0, %arg1 : i32, i32
  }
}

module attributes {stable_mosaic.version = 11 : i64} {
  func.func @kernel(%arg0: i32, %arg1: i32, %arg2: i32, %arg3: memref<8x144xbf16, #tpu.memory_space<vmem>>, %arg4: memref<144x16xbf16, #tpu.memory_space<vmem>>, %arg5: memref<1x16xf32, #tpu.memory_space<vmem>>, %arg6: memref<8x16xbf16, #tpu.memory_space<vmem>>, %arg7: memref<8x16xf32, #tpu.memory_space<vmem>>) attributes {dimension_semantics = [#tpu.dimension_semantics<parallel>, #tpu.dimension_semantics<parallel>, #tpu.dimension_semantics<arbitrary>], iteration_bounds = array<i64: 1, 1, 1>, scalar_prefetch = 0 : i64, scratch_operands = 1 : i64, tpu.core_type = #tpu.core_type<tc>, window_params = [{transform_indices = @transform_0, window_bounds = array<i64: 8, 144>}, {transform_indices = @transform_1, window_bounds = array<i64: 144, 16>}, {transform_indices = @transform_2, window_bounds = array<i64: 1, 16>}, {transform_indices = @transform_3, window_bounds = array<i64: 8, 16>}]} {
    %c0_i32 = arith.constant 0 : i32
    %0 = arith.cmpi eq, %arg2, %c0_i32 : i32
    %1 = arith.extui %0 : i1 to i32
    %c0_i32_0 = arith.constant 0 : i32
    %2 = arith.cmpi ne, %1, %c0_i32_0 : i32
    scf.if %2 {
      %cst_10 = arith.constant 0.000000e+00 : f32
      %12 = vector.broadcast %cst_10 : f32 to vector<8x16xf32>
      %c0_11 = arith.constant 0 : index
      %c0_12 = arith.constant 0 : index
      %13 = vector.load %arg7[%c0_11, %c0_12] : memref<8x16xf32, #tpu.memory_space<vmem>>, vector<8x16xf32>
      tpu.vector_store %arg7[%c0_11, %c0_12], %12 {strides = array<i32>} : memref<8x16xf32, #tpu.memory_space<vmem>>, vector<8x16xf32>,
    } else {
    }
    %c0 = arith.constant 0 : index
    %c0_1 = arith.constant 0 : index
    %3 = vector.load %arg7[%c0, %c0_1] : memref<8x16xf32, #tpu.memory_space<vmem>>, vector<8x16xf32>
    %c0_2 = arith.constant 0 : index
    %c0_3 = arith.constant 0 : index
    %4 = vector.load %arg3[%c0_2, %c0_3] : memref<8x144xbf16, #tpu.memory_space<vmem>>, vector<8x144xbf16>
    %c0_4 = arith.constant 0 : index
    %c0_5 = arith.constant 0 : index
    %5 = vector.load %arg4[%c0_4, %c0_5] : memref<144x16xbf16, #tpu.memory_space<vmem>>, vector<144x16xbf16>
    %cst = arith.constant dense<0.000000e+00> : vector<8x16xf32>
    %6 = tpu.matmul %4, %5, %cst {dimension_numbers = #tpu.dot_dimension_numbers<[1], [0], [0], [1], [0, 0, 1, 1], [], []>} : vector<8x144xbf16>, vector<144x16xbf16>, vector<8x16xf32> -> vector<8x16xf32>
    %7 = arith.addf %3, %6 : vector<8x16xf32>
    %c0_6 = arith.constant 0 : index
    %c0_7 = arith.constant 0 : index
    %8 = vector.load %arg7[%c0_6, %c0_7] : memref<8x16xf32, #tpu.memory_space<vmem>>, vector<8x16xf32>
    tpu.vector_store %arg7[%c0_6, %c0_7], %7 {strides = array<i32>} : memref<8x16xf32, #tpu.memory_space<vmem>>, vector<8x16xf32>,
    %c0_i32_8 = arith.constant 0 : i32
    %9 = arith.cmpi eq, %arg2, %c0_i32_8 : i32
    %10 = arith.extui %9 : i1 to i32
    %c0_i32_9 = arith.constant 0 : i32
    %11 = arith.cmpi ne, %10, %c0_i32_9 : i32
    scf.if %11 {
      %c0_10 = arith.constant 0 : index
      %c0_11 = arith.constant 0 : index
      %12 = vector.load %arg7[%c0_10, %c0_11] : memref<8x16xf32, #tpu.memory_space<vmem>>, vector<8x16xf32>
      %c0_12 = arith.constant 0 : index
      %c0_13 = arith.constant 0 : index
      %13 = vector.load %arg5[%c0_12, %c0_13] : memref<1x16xf32, #tpu.memory_space<vmem>>, vector<1x16xf32>
      %14 = vector.broadcast %13 : vector<1x16xf32> to vector<8x16xf32>
      %15 = arith.addf %12, %14 : vector<8x16xf32>
      %cst_14 = arith.constant 0.000000e+00 : f32
      %16 = vector.broadcast %cst_14 : f32 to vector<8x16xf32>
      %17 = arith.maximumf %15, %16 : vector<8x16xf32>
      %18 = arith.truncf %17 : vector<8x16xf32> to vector<8x16xbf16>
      %c0_15 = arith.constant 0 : index
      %c0_16 = arith.constant 0 : index
      %19 = vector.load %arg6[%c0_15, %c0_16] : memref<8x16xbf16, #tpu.memory_space<vmem>>, vector<8x16xbf16>
      tpu.vector_store %arg6[%c0_15, %c0_16], %18 {strides = array<i32>} : memref<8x16xbf16, #tpu.memory_space<vmem>>, vector<8x16xbf16>,
    } else {
    }
    return
  }
  func.func @transform_0(%arg0: i32, %arg1: i32, %arg2: i32) -> (i32, i32) {
    %c0_i32 = arith.constant 0 : i32
    return %arg0, %arg2 : i32, i32
  }
  func.func @transform_1(%arg0: i32, %arg1: i32, %arg2: i32) -> (i32, i32) {
    %c0_i32 = arith.constant 0 : i32
    return %arg2, %arg1 : i32, i32
  }
  func.func @transform_2(%arg0: i32, %arg1: i32, %arg2: i32) -> (i32, i32) {
    %c0_i32 = arith.constant 0 : i32
    %c0_i32_0 = arith.constant 0 : i32
    return %c0_i32, %arg1 : i32, i32
  }
  func.func @transform_3(%arg0: i32, %arg1: i32, %arg2: i32) -> (i32, i32) {
    %c0_i32 = arith.constant 0 : i32
    return %arg0, %arg1 : i32, i32
  }
}

module attributes {stable_mosaic.version = 11 : i64} {
  func.func @kernel(%arg0: i32, %arg1: i32, %arg2: i32, %arg3: memref<8x32xbf16, #tpu.memory_space<vmem>>, %arg4: memref<32x64xbf16, #tpu.memory_space<vmem>>, %arg5: memref<1x64xf32, #tpu.memory_space<vmem>>, %arg6: memref<8x64xbf16, #tpu.memory_space<vmem>>, %arg7: memref<8x64xf32, #tpu.memory_space<vmem>>) attributes {dimension_semantics = [#tpu.dimension_semantics<parallel>, #tpu.dimension_semantics<parallel>, #tpu.dimension_semantics<arbitrary>], iteration_bounds = array<i64: 1, 1, 1>, scalar_prefetch = 0 : i64, scratch_operands = 1 : i64, tpu.core_type = #tpu.core_type<tc>, window_params = [{transform_indices = @transform_0, window_bounds = array<i64: 8, 32>}, {transform_indices = @transform_1, window_bounds = array<i64: 32, 64>}, {transform_indices = @transform_2, window_bounds = array<i64: 1, 64>}, {transform_indices = @transform_3, window_bounds = array<i64: 8, 64>}]} {
    %c0_i32 = arith.constant 0 : i32
    %0 = arith.cmpi eq, %arg2, %c0_i32 : i32
    %1 = arith.extui %0 : i1 to i32
    %c0_i32_0 = arith.constant 0 : i32
    %2 = arith.cmpi ne, %1, %c0_i32_0 : i32
    scf.if %2 {
      %cst_10 = arith.constant 0.000000e+00 : f32
      %12 = vector.broadcast %cst_10 : f32 to vector<8x64xf32>
      %c0_11 = arith.constant 0 : index
      %c0_12 = arith.constant 0 : index
      %13 = vector.load %arg7[%c0_11, %c0_12] : memref<8x64xf32, #tpu.memory_space<vmem>>, vector<8x64xf32>
      tpu.vector_store %arg7[%c0_11, %c0_12], %12 {strides = array<i32>} : memref<8x64xf32, #tpu.memory_space<vmem>>, vector<8x64xf32>,
    } else {
    }
    %c0 = arith.constant 0 : index
    %c0_1 = arith.constant 0 : index
    %3 = vector.load %arg7[%c0, %c0_1] : memref<8x64xf32, #tpu.memory_space<vmem>>, vector<8x64xf32>
    %c0_2 = arith.constant 0 : index
    %c0_3 = arith.constant 0 : index
    %4 = vector.load %arg3[%c0_2, %c0_3] : memref<8x32xbf16, #tpu.memory_space<vmem>>, vector<8x32xbf16>
    %c0_4 = arith.constant 0 : index
    %c0_5 = arith.constant 0 : index
    %5 = vector.load %arg4[%c0_4, %c0_5] : memref<32x64xbf16, #tpu.memory_space<vmem>>, vector<32x64xbf16>
    %cst = arith.constant dense<0.000000e+00> : vector<8x64xf32>
    %6 = tpu.matmul %4, %5, %cst {dimension_numbers = #tpu.dot_dimension_numbers<[1], [0], [0], [1], [0, 0, 1, 1], [], []>} : vector<8x32xbf16>, vector<32x64xbf16>, vector<8x64xf32> -> vector<8x64xf32>
    %7 = arith.addf %3, %6 : vector<8x64xf32>
    %c0_6 = arith.constant 0 : index
    %c0_7 = arith.constant 0 : index
    %8 = vector.load %arg7[%c0_6, %c0_7] : memref<8x64xf32, #tpu.memory_space<vmem>>, vector<8x64xf32>
    tpu.vector_store %arg7[%c0_6, %c0_7], %7 {strides = array<i32>} : memref<8x64xf32, #tpu.memory_space<vmem>>, vector<8x64xf32>,
    %c0_i32_8 = arith.constant 0 : i32
    %9 = arith.cmpi eq, %arg2, %c0_i32_8 : i32
    %10 = arith.extui %9 : i1 to i32
    %c0_i32_9 = arith.constant 0 : i32
    %11 = arith.cmpi ne, %10, %c0_i32_9 : i32
    scf.if %11 {
      %c0_10 = arith.constant 0 : index
      %c0_11 = arith.constant 0 : index
      %12 = vector.load %arg7[%c0_10, %c0_11] : memref<8x64xf32, #tpu.memory_space<vmem>>, vector<8x64xf32>
      %c0_12 = arith.constant 0 : index
      %c0_13 = arith.constant 0 : index
      %13 = vector.load %arg5[%c0_12, %c0_13] : memref<1x64xf32, #tpu.memory_space<vmem>>, vector<1x64xf32>
      %14 = vector.broadcast %13 : vector<1x64xf32> to vector<8x64xf32>
      %15 = arith.addf %12, %14 : vector<8x64xf32>
      %16 = arith.truncf %15 : vector<8x64xf32> to vector<8x64xbf16>
      %c0_14 = arith.constant 0 : index
      %c0_15 = arith.constant 0 : index
      %17 = vector.load %arg6[%c0_14, %c0_15] : memref<8x64xbf16, #tpu.memory_space<vmem>>, vector<8x64xbf16>
      tpu.vector_store %arg6[%c0_14, %c0_15], %16 {strides = array<i32>} : memref<8x64xbf16, #tpu.memory_space<vmem>>, vector<8x64xbf16>,
    } else {
    }
    return
  }
  func.func @transform_0(%arg0: i32, %arg1: i32, %arg2: i32) -> (i32, i32) {
    %c0_i32 = arith.constant 0 : i32
    return %arg0, %arg2 : i32, i32
  }
  func.func @transform_1(%arg0: i32, %arg1: i32, %arg2: i32) -> (i32, i32) {
    %c0_i32 = arith.constant 0 : i32
    return %arg2, %arg1 : i32, i32
  }
  func.func @transform_2(%arg0: i32, %arg1: i32, %arg2: i32) -> (i32, i32) {
    %c0_i32 = arith.constant 0 : i32
    %c0_i32_0 = arith.constant 0 : i32
    return %c0_i32, %arg1 : i32, i32
  }
  func.func @transform_3(%arg0: i32, %arg1: i32, %arg2: i32) -> (i32, i32) {
    %c0_i32 = arith.constant 0 : i32
    return %arg0, %arg1 : i32, i32
  }
}

module attributes {stable_mosaic.version = 11 : i64} {
  func.func @kernel(%arg0: i32, %arg1: i32, %arg2: i32, %arg3: memref<8x16xbf16, #tpu.memory_space<vmem>>, %arg4: memref<16x64xbf16, #tpu.memory_space<vmem>>, %arg5: memref<1x64xf32, #tpu.memory_space<vmem>>, %arg6: memref<8x64xbf16, #tpu.memory_space<vmem>>, %arg7: memref<8x64xbf16, #tpu.memory_space<vmem>>, %arg8: memref<8x64xf32, #tpu.memory_space<vmem>>) attributes {dimension_semantics = [#tpu.dimension_semantics<parallel>, #tpu.dimension_semantics<parallel>, #tpu.dimension_semantics<arbitrary>], iteration_bounds = array<i64: 1, 1, 1>, scalar_prefetch = 0 : i64, scratch_operands = 1 : i64, tpu.core_type = #tpu.core_type<tc>, window_params = [{transform_indices = @transform_0, window_bounds = array<i64: 8, 16>}, {transform_indices = @transform_1, window_bounds = array<i64: 16, 64>}, {transform_indices = @transform_2, window_bounds = array<i64: 1, 64>}, {transform_indices = @transform_3, window_bounds = array<i64: 8, 64>}, {transform_indices = @transform_4, window_bounds = array<i64: 8, 64>}]} {
    %c0_i32 = arith.constant 0 : i32
    %0 = arith.cmpi eq, %arg2, %c0_i32 : i32
    %1 = arith.extui %0 : i1 to i32
    %c0_i32_0 = arith.constant 0 : i32
    %2 = arith.cmpi ne, %1, %c0_i32_0 : i32
    scf.if %2 {
      %cst_10 = arith.constant 0.000000e+00 : f32
      %12 = vector.broadcast %cst_10 : f32 to vector<8x64xf32>
      %c0_11 = arith.constant 0 : index
      %c0_12 = arith.constant 0 : index
      %13 = vector.load %arg8[%c0_11, %c0_12] : memref<8x64xf32, #tpu.memory_space<vmem>>, vector<8x64xf32>
      tpu.vector_store %arg8[%c0_11, %c0_12], %12 {strides = array<i32>} : memref<8x64xf32, #tpu.memory_space<vmem>>, vector<8x64xf32>,
    } else {
    }
    %c0 = arith.constant 0 : index
    %c0_1 = arith.constant 0 : index
    %3 = vector.load %arg8[%c0, %c0_1] : memref<8x64xf32, #tpu.memory_space<vmem>>, vector<8x64xf32>
    %c0_2 = arith.constant 0 : index
    %c0_3 = arith.constant 0 : index
    %4 = vector.load %arg3[%c0_2, %c0_3] : memref<8x16xbf16, #tpu.memory_space<vmem>>, vector<8x16xbf16>
    %c0_4 = arith.constant 0 : index
    %c0_5 = arith.constant 0 : index
    %5 = vector.load %arg4[%c0_4, %c0_5] : memref<16x64xbf16, #tpu.memory_space<vmem>>, vector<16x64xbf16>
    %cst = arith.constant dense<0.000000e+00> : vector<8x64xf32>
    %6 = tpu.matmul %4, %5, %cst {dimension_numbers = #tpu.dot_dimension_numbers<[1], [0], [0], [1], [0, 0, 1, 1], [], []>} : vector<8x16xbf16>, vector<16x64xbf16>, vector<8x64xf32> -> vector<8x64xf32>
    %7 = arith.addf %3, %6 : vector<8x64xf32>
    %c0_6 = arith.constant 0 : index
    %c0_7 = arith.constant 0 : index
    %8 = vector.load %arg8[%c0_6, %c0_7] : memref<8x64xf32, #tpu.memory_space<vmem>>, vector<8x64xf32>
    tpu.vector_store %arg8[%c0_6, %c0_7], %7 {strides = array<i32>} : memref<8x64xf32, #tpu.memory_space<vmem>>, vector<8x64xf32>,
    %c0_i32_8 = arith.constant 0 : i32
    %9 = arith.cmpi eq, %arg2, %c0_i32_8 : i32
    %10 = arith.extui %9 : i1 to i32
    %c0_i32_9 = arith.constant 0 : i32
    %11 = arith.cmpi ne, %10, %c0_i32_9 : i32
    scf.if %11 {
      %c0_10 = arith.constant 0 : index
      %c0_11 = arith.constant 0 : index
      %12 = vector.load %arg8[%c0_10, %c0_11] : memref<8x64xf32, #tpu.memory_space<vmem>>, vector<8x64xf32>
      %c0_12 = arith.constant 0 : index
      %c0_13 = arith.constant 0 : index
      %13 = vector.load %arg5[%c0_12, %c0_13] : memref<1x64xf32, #tpu.memory_space<vmem>>, vector<1x64xf32>
      %14 = vector.broadcast %13 : vector<1x64xf32> to vector<8x64xf32>
      %15 = arith.addf %12, %14 : vector<8x64xf32>
      %c0_14 = arith.constant 0 : index
      %c0_15 = arith.constant 0 : index
      %16 = vector.load %arg6[%c0_14, %c0_15] : memref<8x64xbf16, #tpu.memory_space<vmem>>, vector<8x64xbf16>
      %17 = arith.extf %16 : vector<8x64xbf16> to vector<8x64xf32>
      %18 = arith.addf %15, %17 : vector<8x64xf32>
      %cst_16 = arith.constant 0.000000e+00 : f32
      %19 = vector.broadcast %cst_16 : f32 to vector<8x64xf32>
      %20 = arith.maximumf %18, %19 : vector<8x64xf32>
      %21 = arith.truncf %20 : vector<8x64xf32> to vector<8x64xbf16>
      %c0_17 = arith.constant 0 : index
      %c0_18 = arith.constant 0 : index
      %22 = vector.load %arg7[%c0_17, %c0_18] : memref<8x64xbf16, #tpu.memory_space<vmem>>, vector<8x64xbf16>
      tpu.vector_store %arg7[%c0_17, %c0_18], %21 {strides = array<i32>} : memref<8x64xbf16, #tpu.memory_space<vmem>>, vector<8x64xbf16>,
    } else {
    }
    return
  }
  func.func @transform_0(%arg0: i32, %arg1: i32, %arg2: i32) -> (i32, i32) {
    %c0_i32 = arith.constant 0 : i32
    return %arg0, %arg2 : i32, i32
  }
  func.func @transform_1(%arg0: i32, %arg1: i32, %arg2: i32) -> (i32, i32) {
    %c0_i32 = arith.constant 0 : i32
    return %arg2, %arg1 : i32, i32
  }
  func.func @transform_2(%arg0: i32, %arg1: i32, %arg2: i32) -> (i32, i32) {
    %c0_i32 = arith.constant 0 : i32
    %c0_i32_0 = arith.constant 0 : i32
    return %c0_i32, %arg1 : i32, i32
  }
  func.func @transform_3(%arg0: i32, %arg1: i32, %arg2: i32) -> (i32, i32) {
    %c0_i32 = arith.constant 0 : i32
    return %arg0, %arg1 : i32, i32
  }
  func.func @transform_4(%arg0: i32, %arg1: i32, %arg2: i32) -> (i32, i32) {
    %c0_i32 = arith.constant 0 : i32
    return %arg0, %arg1 : i32, i32
  }
}

module attributes {stable_mosaic.version = 11 : i64} {
  func.func @kernel(%arg0: i32, %arg1: i32, %arg2: i32, %arg3: memref<8x64xbf16, #tpu.memory_space<vmem>>, %arg4: memref<64x32xbf16, #tpu.memory_space<vmem>>, %arg5: memref<1x32xf32, #tpu.memory_space<vmem>>, %arg6: memref<8x32xbf16, #tpu.memory_space<vmem>>, %arg7: memref<8x32xf32, #tpu.memory_space<vmem>>) attributes {dimension_semantics = [#tpu.dimension_semantics<parallel>, #tpu.dimension_semantics<parallel>, #tpu.dimension_semantics<arbitrary>], iteration_bounds = array<i64: 1, 1, 1>, scalar_prefetch = 0 : i64, scratch_operands = 1 : i64, tpu.core_type = #tpu.core_type<tc>, window_params = [{transform_indices = @transform_0, window_bounds = array<i64: 8, 64>}, {transform_indices = @transform_1, window_bounds = array<i64: 64, 32>}, {transform_indices = @transform_2, window_bounds = array<i64: 1, 32>}, {transform_indices = @transform_3, window_bounds = array<i64: 8, 32>}]} {
    %c0_i32 = arith.constant 0 : i32
    %0 = arith.cmpi eq, %arg2, %c0_i32 : i32
    %1 = arith.extui %0 : i1 to i32
    %c0_i32_0 = arith.constant 0 : i32
    %2 = arith.cmpi ne, %1, %c0_i32_0 : i32
    scf.if %2 {
      %cst_10 = arith.constant 0.000000e+00 : f32
      %12 = vector.broadcast %cst_10 : f32 to vector<8x32xf32>
      %c0_11 = arith.constant 0 : index
      %c0_12 = arith.constant 0 : index
      %13 = vector.load %arg7[%c0_11, %c0_12] : memref<8x32xf32, #tpu.memory_space<vmem>>, vector<8x32xf32>
      tpu.vector_store %arg7[%c0_11, %c0_12], %12 {strides = array<i32>} : memref<8x32xf32, #tpu.memory_space<vmem>>, vector<8x32xf32>,
    } else {
    }
    %c0 = arith.constant 0 : index
    %c0_1 = arith.constant 0 : index
    %3 = vector.load %arg7[%c0, %c0_1] : memref<8x32xf32, #tpu.memory_space<vmem>>, vector<8x32xf32>
    %c0_2 = arith.constant 0 : index
    %c0_3 = arith.constant 0 : index
    %4 = vector.load %arg3[%c0_2, %c0_3] : memref<8x64xbf16, #tpu.memory_space<vmem>>, vector<8x64xbf16>
    %c0_4 = arith.constant 0 : index
    %c0_5 = arith.constant 0 : index
    %5 = vector.load %arg4[%c0_4, %c0_5] : memref<64x32xbf16, #tpu.memory_space<vmem>>, vector<64x32xbf16>
    %cst = arith.constant dense<0.000000e+00> : vector<8x32xf32>
    %6 = tpu.matmul %4, %5, %cst {dimension_numbers = #tpu.dot_dimension_numbers<[1], [0], [0], [1], [0, 0, 1, 1], [], []>} : vector<8x64xbf16>, vector<64x32xbf16>, vector<8x32xf32> -> vector<8x32xf32>
    %7 = arith.addf %3, %6 : vector<8x32xf32>
    %c0_6 = arith.constant 0 : index
    %c0_7 = arith.constant 0 : index
    %8 = vector.load %arg7[%c0_6, %c0_7] : memref<8x32xf32, #tpu.memory_space<vmem>>, vector<8x32xf32>
    tpu.vector_store %arg7[%c0_6, %c0_7], %7 {strides = array<i32>} : memref<8x32xf32, #tpu.memory_space<vmem>>, vector<8x32xf32>,
    %c0_i32_8 = arith.constant 0 : i32
    %9 = arith.cmpi eq, %arg2, %c0_i32_8 : i32
    %10 = arith.extui %9 : i1 to i32
    %c0_i32_9 = arith.constant 0 : i32
    %11 = arith.cmpi ne, %10, %c0_i32_9 : i32
    scf.if %11 {
      %c0_10 = arith.constant 0 : index
      %c0_11 = arith.constant 0 : index
      %12 = vector.load %arg7[%c0_10, %c0_11] : memref<8x32xf32, #tpu.memory_space<vmem>>, vector<8x32xf32>
      %c0_12 = arith.constant 0 : index
      %c0_13 = arith.constant 0 : index
      %13 = vector.load %arg5[%c0_12, %c0_13] : memref<1x32xf32, #tpu.memory_space<vmem>>, vector<1x32xf32>
      %14 = vector.broadcast %13 : vector<1x32xf32> to vector<8x32xf32>
      %15 = arith.addf %12, %14 : vector<8x32xf32>
      %cst_14 = arith.constant 0.000000e+00 : f32
      %16 = vector.broadcast %cst_14 : f32 to vector<8x32xf32>
      %17 = arith.maximumf %15, %16 : vector<8x32xf32>
      %18 = arith.truncf %17 : vector<8x32xf32> to vector<8x32xbf16>
      %c0_15 = arith.constant 0 : index
      %c0_16 = arith.constant 0 : index
      %19 = vector.load %arg6[%c0_15, %c0_16] : memref<8x32xbf16, #tpu.memory_space<vmem>>, vector<8x32xbf16>
      tpu.vector_store %arg6[%c0_15, %c0_16], %18 {strides = array<i32>} : memref<8x32xbf16, #tpu.memory_space<vmem>>, vector<8x32xbf16>,
    } else {
    }
    return
  }
  func.func @transform_0(%arg0: i32, %arg1: i32, %arg2: i32) -> (i32, i32) {
    %c0_i32 = arith.constant 0 : i32
    return %arg0, %arg2 : i32, i32
  }
  func.func @transform_1(%arg0: i32, %arg1: i32, %arg2: i32) -> (i32, i32) {
    %c0_i32 = arith.constant 0 : i32
    return %arg2, %arg1 : i32, i32
  }
  func.func @transform_2(%arg0: i32, %arg1: i32, %arg2: i32) -> (i32, i32) {
    %c0_i32 = arith.constant 0 : i32
    %c0_i32_0 = arith.constant 0 : i32
    return %c0_i32, %arg1 : i32, i32
  }
  func.func @transform_3(%arg0: i32, %arg1: i32, %arg2: i32) -> (i32, i32) {
    %c0_i32 = arith.constant 0 : i32
    return %arg0, %arg1 : i32, i32
  }
}

module attributes {stable_mosaic.version = 11 : i64} {
  func.func @kernel(%arg0: i32, %arg1: i32, %arg2: i32, %arg3: memref<2x288xbf16, #tpu.memory_space<vmem>>, %arg4: memref<288x32xbf16, #tpu.memory_space<vmem>>, %arg5: memref<1x32xf32, #tpu.memory_space<vmem>>, %arg6: memref<2x32xbf16, #tpu.memory_space<vmem>>, %arg7: memref<2x32xf32, #tpu.memory_space<vmem>>) attributes {dimension_semantics = [#tpu.dimension_semantics<parallel>, #tpu.dimension_semantics<parallel>, #tpu.dimension_semantics<arbitrary>], iteration_bounds = array<i64: 1, 1, 1>, scalar_prefetch = 0 : i64, scratch_operands = 1 : i64, tpu.core_type = #tpu.core_type<tc>, window_params = [{transform_indices = @transform_0, window_bounds = array<i64: 2, 288>}, {transform_indices = @transform_1, window_bounds = array<i64: 288, 32>}, {transform_indices = @transform_2, window_bounds = array<i64: 1, 32>}, {transform_indices = @transform_3, window_bounds = array<i64: 2, 32>}]} {
    %c0_i32 = arith.constant 0 : i32
    %0 = arith.cmpi eq, %arg2, %c0_i32 : i32
    %1 = arith.extui %0 : i1 to i32
    %c0_i32_0 = arith.constant 0 : i32
    %2 = arith.cmpi ne, %1, %c0_i32_0 : i32
    scf.if %2 {
      %cst_10 = arith.constant 0.000000e+00 : f32
      %12 = vector.broadcast %cst_10 : f32 to vector<2x32xf32>
      %c0_11 = arith.constant 0 : index
      %c0_12 = arith.constant 0 : index
      %13 = vector.load %arg7[%c0_11, %c0_12] : memref<2x32xf32, #tpu.memory_space<vmem>>, vector<2x32xf32>
      tpu.vector_store %arg7[%c0_11, %c0_12], %12 {strides = array<i32>} : memref<2x32xf32, #tpu.memory_space<vmem>>, vector<2x32xf32>,
    } else {
    }
    %c0 = arith.constant 0 : index
    %c0_1 = arith.constant 0 : index
    %3 = vector.load %arg7[%c0, %c0_1] : memref<2x32xf32, #tpu.memory_space<vmem>>, vector<2x32xf32>
    %c0_2 = arith.constant 0 : index
    %c0_3 = arith.constant 0 : index
    %4 = vector.load %arg3[%c0_2, %c0_3] : memref<2x288xbf16, #tpu.memory_space<vmem>>, vector<2x288xbf16>
    %c0_4 = arith.constant 0 : index
    %c0_5 = arith.constant 0 : index
    %5 = vector.load %arg4[%c0_4, %c0_5] : memref<288x32xbf16, #tpu.memory_space<vmem>>, vector<288x32xbf16>
    %cst = arith.constant dense<0.000000e+00> : vector<2x32xf32>
    %6 = tpu.matmul %4, %5, %cst {dimension_numbers = #tpu.dot_dimension_numbers<[1], [0], [0], [1], [0, 0, 1, 1], [], []>} : vector<2x288xbf16>, vector<288x32xbf16>, vector<2x32xf32> -> vector<2x32xf32>
    %7 = arith.addf %3, %6 : vector<2x32xf32>
    %c0_6 = arith.constant 0 : index
    %c0_7 = arith.constant 0 : index
    %8 = vector.load %arg7[%c0_6, %c0_7] : memref<2x32xf32, #tpu.memory_space<vmem>>, vector<2x32xf32>
    tpu.vector_store %arg7[%c0_6, %c0_7], %7 {strides = array<i32>} : memref<2x32xf32, #tpu.memory_space<vmem>>, vector<2x32xf32>,
    %c0_i32_8 = arith.constant 0 : i32
    %9 = arith.cmpi eq, %arg2, %c0_i32_8 : i32
    %10 = arith.extui %9 : i1 to i32
    %c0_i32_9 = arith.constant 0 : i32
    %11 = arith.cmpi ne, %10, %c0_i32_9 : i32
    scf.if %11 {
      %c0_10 = arith.constant 0 : index
      %c0_11 = arith.constant 0 : index
      %12 = vector.load %arg7[%c0_10, %c0_11] : memref<2x32xf32, #tpu.memory_space<vmem>>, vector<2x32xf32>
      %c0_12 = arith.constant 0 : index
      %c0_13 = arith.constant 0 : index
      %13 = vector.load %arg5[%c0_12, %c0_13] : memref<1x32xf32, #tpu.memory_space<vmem>>, vector<1x32xf32>
      %14 = vector.broadcast %13 : vector<1x32xf32> to vector<2x32xf32>
      %15 = arith.addf %12, %14 : vector<2x32xf32>
      %cst_14 = arith.constant 0.000000e+00 : f32
      %16 = vector.broadcast %cst_14 : f32 to vector<2x32xf32>
      %17 = arith.maximumf %15, %16 : vector<2x32xf32>
      %18 = arith.truncf %17 : vector<2x32xf32> to vector<2x32xbf16>
      %c0_15 = arith.constant 0 : index
      %c0_16 = arith.constant 0 : index
      %19 = vector.load %arg6[%c0_15, %c0_16] : memref<2x32xbf16, #tpu.memory_space<vmem>>, vector<2x32xbf16>
      tpu.vector_store %arg6[%c0_15, %c0_16], %18 {strides = array<i32>} : memref<2x32xbf16, #tpu.memory_space<vmem>>, vector<2x32xbf16>,
    } else {
    }
    return
  }
  func.func @transform_0(%arg0: i32, %arg1: i32, %arg2: i32) -> (i32, i32) {
    %c0_i32 = arith.constant 0 : i32
    return %arg0, %arg2 : i32, i32
  }
  func.func @transform_1(%arg0: i32, %arg1: i32, %arg2: i32) -> (i32, i32) {
    %c0_i32 = arith.constant 0 : i32
    return %arg2, %arg1 : i32, i32
  }
  func.func @transform_2(%arg0: i32, %arg1: i32, %arg2: i32) -> (i32, i32) {
    %c0_i32 = arith.constant 0 : i32
    %c0_i32_0 = arith.constant 0 : i32
    return %c0_i32, %arg1 : i32, i32
  }
  func.func @transform_3(%arg0: i32, %arg1: i32, %arg2: i32) -> (i32, i32) {
    %c0_i32 = arith.constant 0 : i32
    return %arg0, %arg1 : i32, i32
  }
}

module attributes {stable_mosaic.version = 11 : i64} {
  func.func @kernel(%arg0: i32, %arg1: i32, %arg2: i32, %arg3: memref<2x64xbf16, #tpu.memory_space<vmem>>, %arg4: memref<64x128xbf16, #tpu.memory_space<vmem>>, %arg5: memref<1x128xf32, #tpu.memory_space<vmem>>, %arg6: memref<2x128xbf16, #tpu.memory_space<vmem>>, %arg7: memref<2x128xf32, #tpu.memory_space<vmem>>) attributes {dimension_semantics = [#tpu.dimension_semantics<parallel>, #tpu.dimension_semantics<parallel>, #tpu.dimension_semantics<arbitrary>], iteration_bounds = array<i64: 1, 1, 1>, scalar_prefetch = 0 : i64, scratch_operands = 1 : i64, tpu.core_type = #tpu.core_type<tc>, window_params = [{transform_indices = @transform_0, window_bounds = array<i64: 2, 64>}, {transform_indices = @transform_1, window_bounds = array<i64: 64, 128>}, {transform_indices = @transform_2, window_bounds = array<i64: 1, 128>}, {transform_indices = @transform_3, window_bounds = array<i64: 2, 128>}]} {
    %c0_i32 = arith.constant 0 : i32
    %0 = arith.cmpi eq, %arg2, %c0_i32 : i32
    %1 = arith.extui %0 : i1 to i32
    %c0_i32_0 = arith.constant 0 : i32
    %2 = arith.cmpi ne, %1, %c0_i32_0 : i32
    scf.if %2 {
      %cst_10 = arith.constant 0.000000e+00 : f32
      %12 = vector.broadcast %cst_10 : f32 to vector<2x128xf32>
      %c0_11 = arith.constant 0 : index
      %c0_12 = arith.constant 0 : index
      %13 = vector.load %arg7[%c0_11, %c0_12] : memref<2x128xf32, #tpu.memory_space<vmem>>, vector<2x128xf32>
      tpu.vector_store %arg7[%c0_11, %c0_12], %12 {strides = array<i32>} : memref<2x128xf32, #tpu.memory_space<vmem>>, vector<2x128xf32>,
    } else {
    }
    %c0 = arith.constant 0 : index
    %c0_1 = arith.constant 0 : index
    %3 = vector.load %arg7[%c0, %c0_1] : memref<2x128xf32, #tpu.memory_space<vmem>>, vector<2x128xf32>
    %c0_2 = arith.constant 0 : index
    %c0_3 = arith.constant 0 : index
    %4 = vector.load %arg3[%c0_2, %c0_3] : memref<2x64xbf16, #tpu.memory_space<vmem>>, vector<2x64xbf16>
    %c0_4 = arith.constant 0 : index
    %c0_5 = arith.constant 0 : index
    %5 = vector.load %arg4[%c0_4, %c0_5] : memref<64x128xbf16, #tpu.memory_space<vmem>>, vector<64x128xbf16>
    %cst = arith.constant dense<0.000000e+00> : vector<2x128xf32>
    %6 = tpu.matmul %4, %5, %cst {dimension_numbers = #tpu.dot_dimension_numbers<[1], [0], [0], [1], [0, 0, 1, 1], [], []>} : vector<2x64xbf16>, vector<64x128xbf16>, vector<2x128xf32> -> vector<2x128xf32>
    %7 = arith.addf %3, %6 : vector<2x128xf32>
    %c0_6 = arith.constant 0 : index
    %c0_7 = arith.constant 0 : index
    %8 = vector.load %arg7[%c0_6, %c0_7] : memref<2x128xf32, #tpu.memory_space<vmem>>, vector<2x128xf32>
    tpu.vector_store %arg7[%c0_6, %c0_7], %7 {strides = array<i32>} : memref<2x128xf32, #tpu.memory_space<vmem>>, vector<2x128xf32>,
    %c0_i32_8 = arith.constant 0 : i32
    %9 = arith.cmpi eq, %arg2, %c0_i32_8 : i32
    %10 = arith.extui %9 : i1 to i32
    %c0_i32_9 = arith.constant 0 : i32
    %11 = arith.cmpi ne, %10, %c0_i32_9 : i32
    scf.if %11 {
      %c0_10 = arith.constant 0 : index
      %c0_11 = arith.constant 0 : index
      %12 = vector.load %arg7[%c0_10, %c0_11] : memref<2x128xf32, #tpu.memory_space<vmem>>, vector<2x128xf32>
      %c0_12 = arith.constant 0 : index
      %c0_13 = arith.constant 0 : index
      %13 = vector.load %arg5[%c0_12, %c0_13] : memref<1x128xf32, #tpu.memory_space<vmem>>, vector<1x128xf32>
      %14 = vector.broadcast %13 : vector<1x128xf32> to vector<2x128xf32>
      %15 = arith.addf %12, %14 : vector<2x128xf32>
      %16 = arith.truncf %15 : vector<2x128xf32> to vector<2x128xbf16>
      %c0_14 = arith.constant 0 : index
      %c0_15 = arith.constant 0 : index
      %17 = vector.load %arg6[%c0_14, %c0_15] : memref<2x128xbf16, #tpu.memory_space<vmem>>, vector<2x128xbf16>
      tpu.vector_store %arg6[%c0_14, %c0_15], %16 {strides = array<i32>} : memref<2x128xbf16, #tpu.memory_space<vmem>>, vector<2x128xbf16>,
    } else {
    }
    return
  }
  func.func @transform_0(%arg0: i32, %arg1: i32, %arg2: i32) -> (i32, i32) {
    %c0_i32 = arith.constant 0 : i32
    return %arg0, %arg2 : i32, i32
  }
  func.func @transform_1(%arg0: i32, %arg1: i32, %arg2: i32) -> (i32, i32) {
    %c0_i32 = arith.constant 0 : i32
    return %arg2, %arg1 : i32, i32
  }
  func.func @transform_2(%arg0: i32, %arg1: i32, %arg2: i32) -> (i32, i32) {
    %c0_i32 = arith.constant 0 : i32
    %c0_i32_0 = arith.constant 0 : i32
    return %c0_i32, %arg1 : i32, i32
  }
  func.func @transform_3(%arg0: i32, %arg1: i32, %arg2: i32) -> (i32, i32) {
    %c0_i32 = arith.constant 0 : i32
    return %arg0, %arg1 : i32, i32
  }
}

module attributes {stable_mosaic.version = 11 : i64} {
  func.func @kernel(%arg0: i32, %arg1: i32, %arg2: i32, %arg3: memref<2x32xbf16, #tpu.memory_space<vmem>>, %arg4: memref<32x128xbf16, #tpu.memory_space<vmem>>, %arg5: memref<1x128xf32, #tpu.memory_space<vmem>>, %arg6: memref<2x128xbf16, #tpu.memory_space<vmem>>, %arg7: memref<2x128xbf16, #tpu.memory_space<vmem>>, %arg8: memref<2x128xf32, #tpu.memory_space<vmem>>) attributes {dimension_semantics = [#tpu.dimension_semantics<parallel>, #tpu.dimension_semantics<parallel>, #tpu.dimension_semantics<arbitrary>], iteration_bounds = array<i64: 1, 1, 1>, scalar_prefetch = 0 : i64, scratch_operands = 1 : i64, tpu.core_type = #tpu.core_type<tc>, window_params = [{transform_indices = @transform_0, window_bounds = array<i64: 2, 32>}, {transform_indices = @transform_1, window_bounds = array<i64: 32, 128>}, {transform_indices = @transform_2, window_bounds = array<i64: 1, 128>}, {transform_indices = @transform_3, window_bounds = array<i64: 2, 128>}, {transform_indices = @transform_4, window_bounds = array<i64: 2, 128>}]} {
    %c0_i32 = arith.constant 0 : i32
    %0 = arith.cmpi eq, %arg2, %c0_i32 : i32
    %1 = arith.extui %0 : i1 to i32
    %c0_i32_0 = arith.constant 0 : i32
    %2 = arith.cmpi ne, %1, %c0_i32_0 : i32
    scf.if %2 {
      %cst_10 = arith.constant 0.000000e+00 : f32
      %12 = vector.broadcast %cst_10 : f32 to vector<2x128xf32>
      %c0_11 = arith.constant 0 : index
      %c0_12 = arith.constant 0 : index
      %13 = vector.load %arg8[%c0_11, %c0_12] : memref<2x128xf32, #tpu.memory_space<vmem>>, vector<2x128xf32>
      tpu.vector_store %arg8[%c0_11, %c0_12], %12 {strides = array<i32>} : memref<2x128xf32, #tpu.memory_space<vmem>>, vector<2x128xf32>,
    } else {
    }
    %c0 = arith.constant 0 : index
    %c0_1 = arith.constant 0 : index
    %3 = vector.load %arg8[%c0, %c0_1] : memref<2x128xf32, #tpu.memory_space<vmem>>, vector<2x128xf32>
    %c0_2 = arith.constant 0 : index
    %c0_3 = arith.constant 0 : index
    %4 = vector.load %arg3[%c0_2, %c0_3] : memref<2x32xbf16, #tpu.memory_space<vmem>>, vector<2x32xbf16>
    %c0_4 = arith.constant 0 : index
    %c0_5 = arith.constant 0 : index
    %5 = vector.load %arg4[%c0_4, %c0_5] : memref<32x128xbf16, #tpu.memory_space<vmem>>, vector<32x128xbf16>
    %cst = arith.constant dense<0.000000e+00> : vector<2x128xf32>
    %6 = tpu.matmul %4, %5, %cst {dimension_numbers = #tpu.dot_dimension_numbers<[1], [0], [0], [1], [0, 0, 1, 1], [], []>} : vector<2x32xbf16>, vector<32x128xbf16>, vector<2x128xf32> -> vector<2x128xf32>
    %7 = arith.addf %3, %6 : vector<2x128xf32>
    %c0_6 = arith.constant 0 : index
    %c0_7 = arith.constant 0 : index
    %8 = vector.load %arg8[%c0_6, %c0_7] : memref<2x128xf32, #tpu.memory_space<vmem>>, vector<2x128xf32>
    tpu.vector_store %arg8[%c0_6, %c0_7], %7 {strides = array<i32>} : memref<2x128xf32, #tpu.memory_space<vmem>>, vector<2x128xf32>,
    %c0_i32_8 = arith.constant 0 : i32
    %9 = arith.cmpi eq, %arg2, %c0_i32_8 : i32
    %10 = arith.extui %9 : i1 to i32
    %c0_i32_9 = arith.constant 0 : i32
    %11 = arith.cmpi ne, %10, %c0_i32_9 : i32
    scf.if %11 {
      %c0_10 = arith.constant 0 : index
      %c0_11 = arith.constant 0 : index
      %12 = vector.load %arg8[%c0_10, %c0_11] : memref<2x128xf32, #tpu.memory_space<vmem>>, vector<2x128xf32>
      %c0_12 = arith.constant 0 : index
      %c0_13 = arith.constant 0 : index
      %13 = vector.load %arg5[%c0_12, %c0_13] : memref<1x128xf32, #tpu.memory_space<vmem>>, vector<1x128xf32>
      %14 = vector.broadcast %13 : vector<1x128xf32> to vector<2x128xf32>
      %15 = arith.addf %12, %14 : vector<2x128xf32>
      %c0_14 = arith.constant 0 : index
      %c0_15 = arith.constant 0 : index
      %16 = vector.load %arg6[%c0_14, %c0_15] : memref<2x128xbf16, #tpu.memory_space<vmem>>, vector<2x128xbf16>
      %17 = arith.extf %16 : vector<2x128xbf16> to vector<2x128xf32>
      %18 = arith.addf %15, %17 : vector<2x128xf32>
      %cst_16 = arith.constant 0.000000e+00 : f32
      %19 = vector.broadcast %cst_16 : f32 to vector<2x128xf32>
      %20 = arith.maximumf %18, %19 : vector<2x128xf32>
      %21 = arith.truncf %20 : vector<2x128xf32> to vector<2x128xbf16>
      %c0_17 = arith.constant 0 : index
      %c0_18 = arith.constant 0 : index
      %22 = vector.load %arg7[%c0_17, %c0_18] : memref<2x128xbf16, #tpu.memory_space<vmem>>, vector<2x128xbf16>
      tpu.vector_store %arg7[%c0_17, %c0_18], %21 {strides = array<i32>} : memref<2x128xbf16, #tpu.memory_space<vmem>>, vector<2x128xbf16>,
    } else {
    }
    return
  }
  func.func @transform_0(%arg0: i32, %arg1: i32, %arg2: i32) -> (i32, i32) {
    %c0_i32 = arith.constant 0 : i32
    return %arg0, %arg2 : i32, i32
  }
  func.func @transform_1(%arg0: i32, %arg1: i32, %arg2: i32) -> (i32, i32) {
    %c0_i32 = arith.constant 0 : i32
    return %arg2, %arg1 : i32, i32
  }
  func.func @transform_2(%arg0: i32, %arg1: i32, %arg2: i32) -> (i32, i32) {
    %c0_i32 = arith.constant 0 : i32
    %c0_i32_0 = arith.constant 0 : i32
    return %c0_i32, %arg1 : i32, i32
  }
  func.func @transform_3(%arg0: i32, %arg1: i32, %arg2: i32) -> (i32, i32) {
    %c0_i32 = arith.constant 0 : i32
    return %arg0, %arg1 : i32, i32
  }
  func.func @transform_4(%arg0: i32, %arg1: i32, %arg2: i32) -> (i32, i32) {
    %c0_i32 = arith.constant 0 : i32
    return %arg0, %arg1 : i32, i32
  }
}

module attributes {stable_mosaic.version = 11 : i64} {
  func.func @kernel(%arg0: i32, %arg1: i32, %arg2: i32, %arg3: memref<2x128xbf16, #tpu.memory_space<vmem>>, %arg4: memref<128x64xbf16, #tpu.memory_space<vmem>>, %arg5: memref<1x64xf32, #tpu.memory_space<vmem>>, %arg6: memref<2x64xbf16, #tpu.memory_space<vmem>>, %arg7: memref<2x64xf32, #tpu.memory_space<vmem>>) attributes {dimension_semantics = [#tpu.dimension_semantics<parallel>, #tpu.dimension_semantics<parallel>, #tpu.dimension_semantics<arbitrary>], iteration_bounds = array<i64: 1, 1, 1>, scalar_prefetch = 0 : i64, scratch_operands = 1 : i64, tpu.core_type = #tpu.core_type<tc>, window_params = [{transform_indices = @transform_0, window_bounds = array<i64: 2, 128>}, {transform_indices = @transform_1, window_bounds = array<i64: 128, 64>}, {transform_indices = @transform_2, window_bounds = array<i64: 1, 64>}, {transform_indices = @transform_3, window_bounds = array<i64: 2, 64>}]} {
    %c0_i32 = arith.constant 0 : i32
    %0 = arith.cmpi eq, %arg2, %c0_i32 : i32
    %1 = arith.extui %0 : i1 to i32
    %c0_i32_0 = arith.constant 0 : i32
    %2 = arith.cmpi ne, %1, %c0_i32_0 : i32
    scf.if %2 {
      %cst_10 = arith.constant 0.000000e+00 : f32
      %12 = vector.broadcast %cst_10 : f32 to vector<2x64xf32>
      %c0_11 = arith.constant 0 : index
      %c0_12 = arith.constant 0 : index
      %13 = vector.load %arg7[%c0_11, %c0_12] : memref<2x64xf32, #tpu.memory_space<vmem>>, vector<2x64xf32>
      tpu.vector_store %arg7[%c0_11, %c0_12], %12 {strides = array<i32>} : memref<2x64xf32, #tpu.memory_space<vmem>>, vector<2x64xf32>,
    } else {
    }
    %c0 = arith.constant 0 : index
    %c0_1 = arith.constant 0 : index
    %3 = vector.load %arg7[%c0, %c0_1] : memref<2x64xf32, #tpu.memory_space<vmem>>, vector<2x64xf32>
    %c0_2 = arith.constant 0 : index
    %c0_3 = arith.constant 0 : index
    %4 = vector.load %arg3[%c0_2, %c0_3] : memref<2x128xbf16, #tpu.memory_space<vmem>>, vector<2x128xbf16>
    %c0_4 = arith.constant 0 : index
    %c0_5 = arith.constant 0 : index
    %5 = vector.load %arg4[%c0_4, %c0_5] : memref<128x64xbf16, #tpu.memory_space<vmem>>, vector<128x64xbf16>
    %cst = arith.constant dense<0.000000e+00> : vector<2x64xf32>
    %6 = tpu.matmul %4, %5, %cst {dimension_numbers = #tpu.dot_dimension_numbers<[1], [0], [0], [1], [0, 0, 1, 1], [], []>} : vector<2x128xbf16>, vector<128x64xbf16>, vector<2x64xf32> -> vector<2x64xf32>
    %7 = arith.addf %3, %6 : vector<2x64xf32>
    %c0_6 = arith.constant 0 : index
    %c0_7 = arith.constant 0 : index
    %8 = vector.load %arg7[%c0_6, %c0_7] : memref<2x64xf32, #tpu.memory_space<vmem>>, vector<2x64xf32>
    tpu.vector_store %arg7[%c0_6, %c0_7], %7 {strides = array<i32>} : memref<2x64xf32, #tpu.memory_space<vmem>>, vector<2x64xf32>,
    %c0_i32_8 = arith.constant 0 : i32
    %9 = arith.cmpi eq, %arg2, %c0_i32_8 : i32
    %10 = arith.extui %9 : i1 to i32
    %c0_i32_9 = arith.constant 0 : i32
    %11 = arith.cmpi ne, %10, %c0_i32_9 : i32
    scf.if %11 {
      %c0_10 = arith.constant 0 : index
      %c0_11 = arith.constant 0 : index
      %12 = vector.load %arg7[%c0_10, %c0_11] : memref<2x64xf32, #tpu.memory_space<vmem>>, vector<2x64xf32>
      %c0_12 = arith.constant 0 : index
      %c0_13 = arith.constant 0 : index
      %13 = vector.load %arg5[%c0_12, %c0_13] : memref<1x64xf32, #tpu.memory_space<vmem>>, vector<1x64xf32>
      %14 = vector.broadcast %13 : vector<1x64xf32> to vector<2x64xf32>
      %15 = arith.addf %12, %14 : vector<2x64xf32>
      %cst_14 = arith.constant 0.000000e+00 : f32
      %16 = vector.broadcast %cst_14 : f32 to vector<2x64xf32>
      %17 = arith.maximumf %15, %16 : vector<2x64xf32>
      %18 = arith.truncf %17 : vector<2x64xf32> to vector<2x64xbf16>
      %c0_15 = arith.constant 0 : index
      %c0_16 = arith.constant 0 : index
      %19 = vector.load %arg6[%c0_15, %c0_16] : memref<2x64xbf16, #tpu.memory_space<vmem>>, vector<2x64xbf16>
      tpu.vector_store %arg6[%c0_15, %c0_16], %18 {strides = array<i32>} : memref<2x64xbf16, #tpu.memory_space<vmem>>, vector<2x64xbf16>,
    } else {
    }
    return
  }
  func.func @transform_0(%arg0: i32, %arg1: i32, %arg2: i32) -> (i32, i32) {
    %c0_i32 = arith.constant 0 : i32
    return %arg0, %arg2 : i32, i32
  }
  func.func @transform_1(%arg0: i32, %arg1: i32, %arg2: i32) -> (i32, i32) {
    %c0_i32 = arith.constant 0 : i32
    return %arg2, %arg1 : i32, i32
  }
  func.func @transform_2(%arg0: i32, %arg1: i32, %arg2: i32) -> (i32, i32) {
    %c0_i32 = arith.constant 0 : i32
    %c0_i32_0 = arith.constant 0 : i32
    return %c0_i32, %arg1 : i32, i32
  }
  func.func @transform_3(%arg0: i32, %arg1: i32, %arg2: i32) -> (i32, i32) {
    %c0_i32 = arith.constant 0 : i32
    return %arg0, %arg1 : i32, i32
  }
}

module attributes {stable_mosaic.version = 11 : i64} {
  func.func @kernel(%arg0: i32, %arg1: i32, %arg2: i32, %arg3: memref<2x128xbf16, #tpu.memory_space<vmem>>, %arg4: memref<128x256xbf16, #tpu.memory_space<vmem>>, %arg5: memref<1x256xf32, #tpu.memory_space<vmem>>, %arg6: memref<2x256xbf16, #tpu.memory_space<vmem>>, %arg7: memref<2x256xf32, #tpu.memory_space<vmem>>) attributes {dimension_semantics = [#tpu.dimension_semantics<parallel>, #tpu.dimension_semantics<parallel>, #tpu.dimension_semantics<arbitrary>], iteration_bounds = array<i64: 1, 1, 1>, scalar_prefetch = 0 : i64, scratch_operands = 1 : i64, tpu.core_type = #tpu.core_type<tc>, window_params = [{transform_indices = @transform_0, window_bounds = array<i64: 2, 128>}, {transform_indices = @transform_1, window_bounds = array<i64: 128, 256>}, {transform_indices = @transform_2, window_bounds = array<i64: 1, 256>}, {transform_indices = @transform_3, window_bounds = array<i64: 2, 256>}]} {
    %c0_i32 = arith.constant 0 : i32
    %0 = arith.cmpi eq, %arg2, %c0_i32 : i32
    %1 = arith.extui %0 : i1 to i32
    %c0_i32_0 = arith.constant 0 : i32
    %2 = arith.cmpi ne, %1, %c0_i32_0 : i32
    scf.if %2 {
      %cst_10 = arith.constant 0.000000e+00 : f32
      %12 = vector.broadcast %cst_10 : f32 to vector<2x256xf32>
      %c0_11 = arith.constant 0 : index
      %c0_12 = arith.constant 0 : index
      %13 = vector.load %arg7[%c0_11, %c0_12] : memref<2x256xf32, #tpu.memory_space<vmem>>, vector<2x256xf32>
      tpu.vector_store %arg7[%c0_11, %c0_12], %12 {strides = array<i32>} : memref<2x256xf32, #tpu.memory_space<vmem>>, vector<2x256xf32>,
    } else {
    }
    %c0 = arith.constant 0 : index
    %c0_1 = arith.constant 0 : index
    %3 = vector.load %arg7[%c0, %c0_1] : memref<2x256xf32, #tpu.memory_space<vmem>>, vector<2x256xf32>
    %c0_2 = arith.constant 0 : index
    %c0_3 = arith.constant 0 : index
    %4 = vector.load %arg3[%c0_2, %c0_3] : memref<2x128xbf16, #tpu.memory_space<vmem>>, vector<2x128xbf16>
    %c0_4 = arith.constant 0 : index
    %c0_5 = arith.constant 0 : index
    %5 = vector.load %arg4[%c0_4, %c0_5] : memref<128x256xbf16, #tpu.memory_space<vmem>>, vector<128x256xbf16>
    %cst = arith.constant dense<0.000000e+00> : vector<2x256xf32>
    %6 = tpu.matmul %4, %5, %cst {dimension_numbers = #tpu.dot_dimension_numbers<[1], [0], [0], [1], [0, 0, 1, 1], [], []>} : vector<2x128xbf16>, vector<128x256xbf16>, vector<2x256xf32> -> vector<2x256xf32>
    %7 = arith.addf %3, %6 : vector<2x256xf32>
    %c0_6 = arith.constant 0 : index
    %c0_7 = arith.constant 0 : index
    %8 = vector.load %arg7[%c0_6, %c0_7] : memref<2x256xf32, #tpu.memory_space<vmem>>, vector<2x256xf32>
    tpu.vector_store %arg7[%c0_6, %c0_7], %7 {strides = array<i32>} : memref<2x256xf32, #tpu.memory_space<vmem>>, vector<2x256xf32>,
    %c0_i32_8 = arith.constant 0 : i32
    %9 = arith.cmpi eq, %arg2, %c0_i32_8 : i32
    %10 = arith.extui %9 : i1 to i32
    %c0_i32_9 = arith.constant 0 : i32
    %11 = arith.cmpi ne, %10, %c0_i32_9 : i32
    scf.if %11 {
      %c0_10 = arith.constant 0 : index
      %c0_11 = arith.constant 0 : index
      %12 = vector.load %arg7[%c0_10, %c0_11] : memref<2x256xf32, #tpu.memory_space<vmem>>, vector<2x256xf32>
      %c0_12 = arith.constant 0 : index
      %c0_13 = arith.constant 0 : index
      %13 = vector.load %arg5[%c0_12, %c0_13] : memref<1x256xf32, #tpu.memory_space<vmem>>, vector<1x256xf32>
      %14 = vector.broadcast %13 : vector<1x256xf32> to vector<2x256xf32>
      %15 = arith.addf %12, %14 : vector<2x256xf32>
      %16 = arith.truncf %15 : vector<2x256xf32> to vector<2x256xbf16>
      %c0_14 = arith.constant 0 : index
      %c0_15 = arith.constant 0 : index
      %17 = vector.load %arg6[%c0_14, %c0_15] : memref<2x256xbf16, #tpu.memory_space<vmem>>, vector<2x256xbf16>
      tpu.vector_store %arg6[%c0_14, %c0_15], %16 {strides = array<i32>} : memref<2x256xbf16, #tpu.memory_space<vmem>>, vector<2x256xbf16>,
    } else {
    }
    return
  }
  func.func @transform_0(%arg0: i32, %arg1: i32, %arg2: i32) -> (i32, i32) {
    %c0_i32 = arith.constant 0 : i32
    return %arg0, %arg2 : i32, i32
  }
  func.func @transform_1(%arg0: i32, %arg1: i32, %arg2: i32) -> (i32, i32) {
    %c0_i32 = arith.constant 0 : i32
    return %arg2, %arg1 : i32, i32
  }
  func.func @transform_2(%arg0: i32, %arg1: i32, %arg2: i32) -> (i32, i32) {
    %c0_i32 = arith.constant 0 : i32
    %c0_i32_0 = arith.constant 0 : i32
    return %c0_i32, %arg1 : i32, i32
  }
  func.func @transform_3(%arg0: i32, %arg1: i32, %arg2: i32) -> (i32, i32) {
    %c0_i32 = arith.constant 0 : i32
    return %arg0, %arg1 : i32, i32
  }
}

module attributes {stable_mosaic.version = 11 : i64} {
  func.func @kernel(%arg0: i32, %arg1: i32, %arg2: i32, %arg3: memref<2x576xbf16, #tpu.memory_space<vmem>>, %arg4: memref<576x64xbf16, #tpu.memory_space<vmem>>, %arg5: memref<1x64xf32, #tpu.memory_space<vmem>>, %arg6: memref<2x64xbf16, #tpu.memory_space<vmem>>, %arg7: memref<2x64xf32, #tpu.memory_space<vmem>>) attributes {dimension_semantics = [#tpu.dimension_semantics<parallel>, #tpu.dimension_semantics<parallel>, #tpu.dimension_semantics<arbitrary>], iteration_bounds = array<i64: 1, 1, 1>, scalar_prefetch = 0 : i64, scratch_operands = 1 : i64, tpu.core_type = #tpu.core_type<tc>, window_params = [{transform_indices = @transform_0, window_bounds = array<i64: 2, 576>}, {transform_indices = @transform_1, window_bounds = array<i64: 576, 64>}, {transform_indices = @transform_2, window_bounds = array<i64: 1, 64>}, {transform_indices = @transform_3, window_bounds = array<i64: 2, 64>}]} {
    %c0_i32 = arith.constant 0 : i32
    %0 = arith.cmpi eq, %arg2, %c0_i32 : i32
    %1 = arith.extui %0 : i1 to i32
    %c0_i32_0 = arith.constant 0 : i32
    %2 = arith.cmpi ne, %1, %c0_i32_0 : i32
    scf.if %2 {
      %cst_10 = arith.constant 0.000000e+00 : f32
      %12 = vector.broadcast %cst_10 : f32 to vector<2x64xf32>
      %c0_11 = arith.constant 0 : index
      %c0_12 = arith.constant 0 : index
      %13 = vector.load %arg7[%c0_11, %c0_12] : memref<2x64xf32, #tpu.memory_space<vmem>>, vector<2x64xf32>
      tpu.vector_store %arg7[%c0_11, %c0_12], %12 {strides = array<i32>} : memref<2x64xf32, #tpu.memory_space<vmem>>, vector<2x64xf32>,
    } else {
    }
    %c0 = arith.constant 0 : index
    %c0_1 = arith.constant 0 : index
    %3 = vector.load %arg7[%c0, %c0_1] : memref<2x64xf32, #tpu.memory_space<vmem>>, vector<2x64xf32>
    %c0_2 = arith.constant 0 : index
    %c0_3 = arith.constant 0 : index
    %4 = vector.load %arg3[%c0_2, %c0_3] : memref<2x576xbf16, #tpu.memory_space<vmem>>, vector<2x576xbf16>
    %c0_4 = arith.constant 0 : index
    %c0_5 = arith.constant 0 : index
    %5 = vector.load %arg4[%c0_4, %c0_5] : memref<576x64xbf16, #tpu.memory_space<vmem>>, vector<576x64xbf16>
    %cst = arith.constant dense<0.000000e+00> : vector<2x64xf32>
    %6 = tpu.matmul %4, %5, %cst {dimension_numbers = #tpu.dot_dimension_numbers<[1], [0], [0], [1], [0, 0, 1, 1], [], []>} : vector<2x576xbf16>, vector<576x64xbf16>, vector<2x64xf32> -> vector<2x64xf32>
    %7 = arith.addf %3, %6 : vector<2x64xf32>
    %c0_6 = arith.constant 0 : index
    %c0_7 = arith.constant 0 : index
    %8 = vector.load %arg7[%c0_6, %c0_7] : memref<2x64xf32, #tpu.memory_space<vmem>>, vector<2x64xf32>
    tpu.vector_store %arg7[%c0_6, %c0_7], %7 {strides = array<i32>} : memref<2x64xf32, #tpu.memory_space<vmem>>, vector<2x64xf32>,
    %c0_i32_8 = arith.constant 0 : i32
    %9 = arith.cmpi eq, %arg2, %c0_i32_8 : i32
    %10 = arith.extui %9 : i1 to i32
    %c0_i32_9 = arith.constant 0 : i32
    %11 = arith.cmpi ne, %10, %c0_i32_9 : i32
    scf.if %11 {
      %c0_10 = arith.constant 0 : index
      %c0_11 = arith.constant 0 : index
      %12 = vector.load %arg7[%c0_10, %c0_11] : memref<2x64xf32, #tpu.memory_space<vmem>>, vector<2x64xf32>
      %c0_12 = arith.constant 0 : index
      %c0_13 = arith.constant 0 : index
      %13 = vector.load %arg5[%c0_12, %c0_13] : memref<1x64xf32, #tpu.memory_space<vmem>>, vector<1x64xf32>
      %14 = vector.broadcast %13 : vector<1x64xf32> to vector<2x64xf32>
      %15 = arith.addf %12, %14 : vector<2x64xf32>
      %cst_14 = arith.constant 0.000000e+00 : f32
      %16 = vector.broadcast %cst_14 : f32 to vector<2x64xf32>
      %17 = arith.maximumf %15, %16 : vector<2x64xf32>
      %18 = arith.truncf %17 : vector<2x64xf32> to vector<2x64xbf16>
      %c0_15 = arith.constant 0 : index
      %c0_16 = arith.constant 0 : index
      %19 = vector.load %arg6[%c0_15, %c0_16] : memref<2x64xbf16, #tpu.memory_space<vmem>>, vector<2x64xbf16>
      tpu.vector_store %arg6[%c0_15, %c0_16], %18 {strides = array<i32>} : memref<2x64xbf16, #tpu.memory_space<vmem>>, vector<2x64xbf16>,
    } else {
    }
    return
  }
  func.func @transform_0(%arg0: i32, %arg1: i32, %arg2: i32) -> (i32, i32) {
    %c0_i32 = arith.constant 0 : i32
    return %arg0, %arg2 : i32, i32
  }
  func.func @transform_1(%arg0: i32, %arg1: i32, %arg2: i32) -> (i32, i32) {
    %c0_i32 = arith.constant 0 : i32
    return %arg2, %arg1 : i32, i32
  }
  func.func @transform_2(%arg0: i32, %arg1: i32, %arg2: i32) -> (i32, i32) {
    %c0_i32 = arith.constant 0 : i32
    %c0_i32_0 = arith.constant 0 : i32
    return %c0_i32, %arg1 : i32, i32
  }
  func.func @transform_3(%arg0: i32, %arg1: i32, %arg2: i32) -> (i32, i32) {
    %c0_i32 = arith.constant 0 : i32
    return %arg0, %arg1 : i32, i32
  }
}

module attributes {stable_mosaic.version = 11 : i64} {
  func.func @kernel(%arg0: i32, %arg1: i32, %arg2: i32, %arg3: memref<2x64xbf16, #tpu.memory_space<vmem>>, %arg4: memref<64x256xbf16, #tpu.memory_space<vmem>>, %arg5: memref<1x256xf32, #tpu.memory_space<vmem>>, %arg6: memref<2x256xbf16, #tpu.memory_space<vmem>>, %arg7: memref<2x256xbf16, #tpu.memory_space<vmem>>, %arg8: memref<2x256xf32, #tpu.memory_space<vmem>>) attributes {dimension_semantics = [#tpu.dimension_semantics<parallel>, #tpu.dimension_semantics<parallel>, #tpu.dimension_semantics<arbitrary>], iteration_bounds = array<i64: 1, 1, 1>, scalar_prefetch = 0 : i64, scratch_operands = 1 : i64, tpu.core_type = #tpu.core_type<tc>, window_params = [{transform_indices = @transform_0, window_bounds = array<i64: 2, 64>}, {transform_indices = @transform_1, window_bounds = array<i64: 64, 256>}, {transform_indices = @transform_2, window_bounds = array<i64: 1, 256>}, {transform_indices = @transform_3, window_bounds = array<i64: 2, 256>}, {transform_indices = @transform_4, window_bounds = array<i64: 2, 256>}]} {
    %c0_i32 = arith.constant 0 : i32
    %0 = arith.cmpi eq, %arg2, %c0_i32 : i32
    %1 = arith.extui %0 : i1 to i32
    %c0_i32_0 = arith.constant 0 : i32
    %2 = arith.cmpi ne, %1, %c0_i32_0 : i32
    scf.if %2 {
      %cst_10 = arith.constant 0.000000e+00 : f32
      %12 = vector.broadcast %cst_10 : f32 to vector<2x256xf32>
      %c0_11 = arith.constant 0 : index
      %c0_12 = arith.constant 0 : index
      %13 = vector.load %arg8[%c0_11, %c0_12] : memref<2x256xf32, #tpu.memory_space<vmem>>, vector<2x256xf32>
      tpu.vector_store %arg8[%c0_11, %c0_12], %12 {strides = array<i32>} : memref<2x256xf32, #tpu.memory_space<vmem>>, vector<2x256xf32>,
    } else {
    }
    %c0 = arith.constant 0 : index
    %c0_1 = arith.constant 0 : index
    %3 = vector.load %arg8[%c0, %c0_1] : memref<2x256xf32, #tpu.memory_space<vmem>>, vector<2x256xf32>
    %c0_2 = arith.constant 0 : index
    %c0_3 = arith.constant 0 : index
    %4 = vector.load %arg3[%c0_2, %c0_3] : memref<2x64xbf16, #tpu.memory_space<vmem>>, vector<2x64xbf16>
    %c0_4 = arith.constant 0 : index
    %c0_5 = arith.constant 0 : index
    %5 = vector.load %arg4[%c0_4, %c0_5] : memref<64x256xbf16, #tpu.memory_space<vmem>>, vector<64x256xbf16>
    %cst = arith.constant dense<0.000000e+00> : vector<2x256xf32>
    %6 = tpu.matmul %4, %5, %cst {dimension_numbers = #tpu.dot_dimension_numbers<[1], [0], [0], [1], [0, 0, 1, 1], [], []>} : vector<2x64xbf16>, vector<64x256xbf16>, vector<2x256xf32> -> vector<2x256xf32>
    %7 = arith.addf %3, %6 : vector<2x256xf32>
    %c0_6 = arith.constant 0 : index
    %c0_7 = arith.constant 0 : index
    %8 = vector.load %arg8[%c0_6, %c0_7] : memref<2x256xf32, #tpu.memory_space<vmem>>, vector<2x256xf32>
    tpu.vector_store %arg8[%c0_6, %c0_7], %7 {strides = array<i32>} : memref<2x256xf32, #tpu.memory_space<vmem>>, vector<2x256xf32>,
    %c0_i32_8 = arith.constant 0 : i32
    %9 = arith.cmpi eq, %arg2, %c0_i32_8 : i32
    %10 = arith.extui %9 : i1 to i32
    %c0_i32_9 = arith.constant 0 : i32
    %11 = arith.cmpi ne, %10, %c0_i32_9 : i32
    scf.if %11 {
      %c0_10 = arith.constant 0 : index
      %c0_11 = arith.constant 0 : index
      %12 = vector.load %arg8[%c0_10, %c0_11] : memref<2x256xf32, #tpu.memory_space<vmem>>, vector<2x256xf32>
      %c0_12 = arith.constant 0 : index
      %c0_13 = arith.constant 0 : index
      %13 = vector.load %arg5[%c0_12, %c0_13] : memref<1x256xf32, #tpu.memory_space<vmem>>, vector<1x256xf32>
      %14 = vector.broadcast %13 : vector<1x256xf32> to vector<2x256xf32>
      %15 = arith.addf %12, %14 : vector<2x256xf32>
      %c0_14 = arith.constant 0 : index
      %c0_15 = arith.constant 0 : index
      %16 = vector.load %arg6[%c0_14, %c0_15] : memref<2x256xbf16, #tpu.memory_space<vmem>>, vector<2x256xbf16>
      %17 = arith.extf %16 : vector<2x256xbf16> to vector<2x256xf32>
      %18 = arith.addf %15, %17 : vector<2x256xf32>
      %cst_16 = arith.constant 0.000000e+00 : f32
      %19 = vector.broadcast %cst_16 : f32 to vector<2x256xf32>
      %20 = arith.maximumf %18, %19 : vector<2x256xf32>
      %21 = arith.truncf %20 : vector<2x256xf32> to vector<2x256xbf16>
      %c0_17 = arith.constant 0 : index
      %c0_18 = arith.constant 0 : index
      %22 = vector.load %arg7[%c0_17, %c0_18] : memref<2x256xbf16, #tpu.memory_space<vmem>>, vector<2x256xbf16>
      tpu.vector_store %arg7[%c0_17, %c0_18], %21 {strides = array<i32>} : memref<2x256xbf16, #tpu.memory_space<vmem>>, vector<2x256xbf16>,
    } else {
    }
    return
  }
  func.func @transform_0(%arg0: i32, %arg1: i32, %arg2: i32) -> (i32, i32) {
    %c0_i32 = arith.constant 0 : i32
    return %arg0, %arg2 : i32, i32
  }
  func.func @transform_1(%arg0: i32, %arg1: i32, %arg2: i32) -> (i32, i32) {
    %c0_i32 = arith.constant 0 : i32
    return %arg2, %arg1 : i32, i32
  }
  func.func @transform_2(%arg0: i32, %arg1: i32, %arg2: i32) -> (i32, i32) {
    %c0_i32 = arith.constant 0 : i32
    %c0_i32_0 = arith.constant 0 : i32
    return %c0_i32, %arg1 : i32, i32
  }
  func.func @transform_3(%arg0: i32, %arg1: i32, %arg2: i32) -> (i32, i32) {
    %c0_i32 = arith.constant 0 : i32
    return %arg0, %arg1 : i32, i32
  }
  func.func @transform_4(%arg0: i32, %arg1: i32, %arg2: i32) -> (i32, i32) {
    %c0_i32 = arith.constant 0 : i32
    return %arg0, %arg1 : i32, i32
  }
}

module attributes {stable_mosaic.version = 11 : i64} {
  func.func @kernel(%arg0: i32, %arg1: memref<1x1x256xbf16, #tpu.memory_space<vmem>>, %arg2: memref<1x1x256xf32, #tpu.memory_space<vmem>>) attributes {dimension_semantics = [#tpu.dimension_semantics<parallel>], iteration_bounds = array<i64: 2>, scalar_prefetch = 0 : i64, scratch_operands = 0 : i64, tpu.core_type = #tpu.core_type<tc>, window_params = [{transform_indices = @transform_0, window_bounds = array<i64: 1, 1, 256>}, {transform_indices = @transform_1, window_bounds = array<i64: 1, 1, 256>}]} {
    %c0 = arith.constant 0 : index
    %c0_0 = arith.constant 0 : index
    %c0_1 = arith.constant 0 : index
    %0 = vector.load %arg1[%c0, %c0_0, %c0_1] : memref<1x1x256xbf16, #tpu.memory_space<vmem>>, vector<1x1x256xbf16>
    %1 = vector.shape_cast %0 : vector<1x1x256xbf16> to vector<1x256xbf16>
    %2 = arith.extf %1 : vector<1x256xbf16> to vector<1x256xf32>
    %cst = arith.constant dense<0.000000e+00> : vector<256xf32>
    %3 = vector.multi_reduction <add>, %2, %cst [0] : vector<1x256xf32> to vector<256xf32>
    %4 = vector.shape_cast %3 : vector<256xf32> to vector<1x256xf32>
    %cst_2 = arith.constant 1.000000e+00 : f32
    %5 = vector.broadcast %cst_2 : f32 to vector<1x256xf32>
    %6 = arith.divf %4, %5 : vector<1x256xf32>
    %7 = vector.shape_cast %6 : vector<1x256xf32> to vector<1x1x256xf32>
    %c0_3 = arith.constant 0 : index
    %c0_4 = arith.constant 0 : index
    %c0_5 = arith.constant 0 : index
    %8 = vector.load %arg2[%c0_3, %c0_4, %c0_5] : memref<1x1x256xf32, #tpu.memory_space<vmem>>, vector<1x1x256xf32>
    tpu.vector_store %arg2[%c0_3, %c0_4, %c0_5], %7 {strides = array<i32>} : memref<1x1x256xf32, #tpu.memory_space<vmem>>, vector<1x1x256xf32>,
    return
  }
  func.func @transform_0(%arg0: i32) -> (i32, i32, i32) {
    %c0_i32 = arith.constant 0 : i32
    %c0_i32_0 = arith.constant 0 : i32
    %c0_i32_1 = arith.constant 0 : i32
    return %arg0, %c0_i32, %c0_i32_0 : i32, i32, i32
  }
  func.func @transform_1(%arg0: i32) -> (i32, i32, i32) {
    %c0_i32 = arith.constant 0 : i32
    %c0_i32_0 = arith.constant 0 : i32
    %c0_i32_1 = arith.constant 0 : i32
    return %arg0, %c0_i32, %c0_i32_0 : i32, i32, i32
  }
}

module attributes {stable_mosaic.version = 11 : i64} {
  func.func @_mdn_kernel(%arg0: memref<2x256xf32, #tpu.memory_space<vmem>>, %arg1: memref<2x2xf32, #tpu.memory_space<vmem>>, %arg2: memref<2x2xf32, #tpu.memory_space<vmem>>, %arg3: memref<2x256xf32, #tpu.memory_space<vmem>>) attributes {dimension_semantics = [], scalar_prefetch = 0 : i64, scratch_operands = 0 : i64, tpu.core_type = #tpu.core_type<tc>} {
    %c0 = arith.constant 0 : index
    %c0_0 = arith.constant 0 : index
    %0 = vector.load %arg0[%c0, %c0_0] : memref<2x256xf32, #tpu.memory_space<vmem>>, vector<2x256xf32>
    %c0_1 = arith.constant 0 : index
    %c0_2 = arith.constant 0 : index
    %1 = vector.load %arg1[%c0_1, %c0_2] : memref<2x2xf32, #tpu.memory_space<vmem>>, vector<2x2xf32>
    %c0_3 = arith.constant 0 : index
    %c0_4 = arith.constant 0 : index
    %2 = vector.load %arg2[%c0_3, %c0_4] : memref<2x2xf32, #tpu.memory_space<vmem>>, vector<2x2xf32>
    %3 = vector.shape_cast %1 : vector<2x2xf32> to vector<2x2x1xf32>
    %4 = vector.shape_cast %0 : vector<2x256xf32> to vector<2x1x256xf32>
    %5 = vector.broadcast %3 : vector<2x2x1xf32> to vector<2x2x256xf32>
    %6 = vector.broadcast %4 : vector<2x1x256xf32> to vector<2x2x256xf32>
    %7 = arith.mulf %5, %6 : vector<2x2x256xf32>
    %cst = arith.constant dense<0.000000e+00> : vector<2x256xf32>
    %8 = vector.multi_reduction <add>, %7, %cst [0] : vector<2x2x256xf32> to vector<2x256xf32>
    %9 = vector.shape_cast %2 : vector<2x2xf32> to vector<2x2x1xf32>
    %10 = vector.shape_cast %8 : vector<2x256xf32> to vector<1x2x256xf32>
    %11 = vector.broadcast %9 : vector<2x2x1xf32> to vector<2x2x256xf32>
    %12 = vector.broadcast %10 : vector<1x2x256xf32> to vector<2x2x256xf32>
    %13 = arith.mulf %11, %12 : vector<2x2x256xf32>
    %cst_5 = arith.constant dense<0.000000e+00> : vector<2x256xf32>
    %14 = vector.multi_reduction <add>, %13, %cst_5 [1] : vector<2x2x256xf32> to vector<2x256xf32>
    %cst_6 = arith.constant 3.200000e+01 : f32
    %15 = vector.broadcast %cst_6 : f32 to vector<2x256xf32>
    %16 = arith.mulf %14, %15 : vector<2x256xf32>
    %17 = vector.shape_cast %1 : vector<2x2xf32> to vector<2x2x1xf32>
    %18 = vector.shape_cast %16 : vector<2x256xf32> to vector<1x2x256xf32>
    %19 = vector.broadcast %17 : vector<2x2x1xf32> to vector<2x2x256xf32>
    %20 = vector.broadcast %18 : vector<1x2x256xf32> to vector<2x2x256xf32>
    %21 = arith.mulf %19, %20 : vector<2x2x256xf32>
    %cst_7 = arith.constant dense<0.000000e+00> : vector<2x256xf32>
    %22 = vector.multi_reduction <add>, %21, %cst_7 [1] : vector<2x2x256xf32> to vector<2x256xf32>
    %23 = arith.subf %0, %22 : vector<2x256xf32>
    %c0_8 = arith.constant 0 : index
    %c0_9 = arith.constant 0 : index
    %24 = vector.load %arg3[%c0_8, %c0_9] : memref<2x256xf32, #tpu.memory_space<vmem>>, vector<2x256xf32>
    tpu.vector_store %arg3[%c0_8, %c0_9], %23 {strides = array<i32>} : memref<2x256xf32, #tpu.memory_space<vmem>>, vector<2x256xf32>,
    return
  }
}

module attributes {stable_mosaic.version = 11 : i64} {
  func.func @kernel(%arg0: i32, %arg1: i32, %arg2: i32, %arg3: memref<2x256xbf16, #tpu.memory_space<vmem>>, %arg4: memref<256x256xbf16, #tpu.memory_space<vmem>>, %arg5: memref<1x256xf32, #tpu.memory_space<vmem>>, %arg6: memref<2x256xf32, #tpu.memory_space<vmem>>, %arg7: memref<2x256xf32, #tpu.memory_space<vmem>>) attributes {dimension_semantics = [#tpu.dimension_semantics<parallel>, #tpu.dimension_semantics<parallel>, #tpu.dimension_semantics<arbitrary>], iteration_bounds = array<i64: 1, 1, 1>, scalar_prefetch = 0 : i64, scratch_operands = 1 : i64, tpu.core_type = #tpu.core_type<tc>, window_params = [{transform_indices = @transform_0, window_bounds = array<i64: 2, 256>}, {transform_indices = @transform_1, window_bounds = array<i64: 256, 256>}, {transform_indices = @transform_2, window_bounds = array<i64: 1, 256>}, {transform_indices = @transform_3, window_bounds = array<i64: 2, 256>}]} {
    %c0_i32 = arith.constant 0 : i32
    %0 = arith.cmpi eq, %arg2, %c0_i32 : i32
    %1 = arith.extui %0 : i1 to i32
    %c0_i32_0 = arith.constant 0 : i32
    %2 = arith.cmpi ne, %1, %c0_i32_0 : i32
    scf.if %2 {
      %cst_10 = arith.constant 0.000000e+00 : f32
      %12 = vector.broadcast %cst_10 : f32 to vector<2x256xf32>
      %c0_11 = arith.constant 0 : index
      %c0_12 = arith.constant 0 : index
      %13 = vector.load %arg7[%c0_11, %c0_12] : memref<2x256xf32, #tpu.memory_space<vmem>>, vector<2x256xf32>
      tpu.vector_store %arg7[%c0_11, %c0_12], %12 {strides = array<i32>} : memref<2x256xf32, #tpu.memory_space<vmem>>, vector<2x256xf32>,
    } else {
    }
    %c0 = arith.constant 0 : index
    %c0_1 = arith.constant 0 : index
    %3 = vector.load %arg7[%c0, %c0_1] : memref<2x256xf32, #tpu.memory_space<vmem>>, vector<2x256xf32>
    %c0_2 = arith.constant 0 : index
    %c0_3 = arith.constant 0 : index
    %4 = vector.load %arg3[%c0_2, %c0_3] : memref<2x256xbf16, #tpu.memory_space<vmem>>, vector<2x256xbf16>
    %c0_4 = arith.constant 0 : index
    %c0_5 = arith.constant 0 : index
    %5 = vector.load %arg4[%c0_4, %c0_5] : memref<256x256xbf16, #tpu.memory_space<vmem>>, vector<256x256xbf16>
    %cst = arith.constant dense<0.000000e+00> : vector<2x256xf32>
    %6 = tpu.matmul %4, %5, %cst {dimension_numbers = #tpu.dot_dimension_numbers<[1], [0], [0], [1], [0, 0, 1, 1], [], []>} : vector<2x256xbf16>, vector<256x256xbf16>, vector<2x256xf32> -> vector<2x256xf32>
    %7 = arith.addf %3, %6 : vector<2x256xf32>
    %c0_6 = arith.constant 0 : index
    %c0_7 = arith.constant 0 : index
    %8 = vector.load %arg7[%c0_6, %c0_7] : memref<2x256xf32, #tpu.memory_space<vmem>>, vector<2x256xf32>
    tpu.vector_store %arg7[%c0_6, %c0_7], %7 {strides = array<i32>} : memref<2x256xf32, #tpu.memory_space<vmem>>, vector<2x256xf32>,
    %c0_i32_8 = arith.constant 0 : i32
    %9 = arith.cmpi eq, %arg2, %c0_i32_8 : i32
    %10 = arith.extui %9 : i1 to i32
    %c0_i32_9 = arith.constant 0 : i32
    %11 = arith.cmpi ne, %10, %c0_i32_9 : i32
    scf.if %11 {
      %c0_10 = arith.constant 0 : index
      %c0_11 = arith.constant 0 : index
      %12 = vector.load %arg7[%c0_10, %c0_11] : memref<2x256xf32, #tpu.memory_space<vmem>>, vector<2x256xf32>
      %c0_12 = arith.constant 0 : index
      %c0_13 = arith.constant 0 : index
      %13 = vector.load %arg5[%c0_12, %c0_13] : memref<1x256xf32, #tpu.memory_space<vmem>>, vector<1x256xf32>
      %14 = vector.broadcast %13 : vector<1x256xf32> to vector<2x256xf32>
      %15 = arith.addf %12, %14 : vector<2x256xf32>
      %cst_14 = arith.constant 0.000000e+00 : f32
      %16 = vector.broadcast %cst_14 : f32 to vector<2x256xf32>
      %17 = arith.maximumf %15, %16 : vector<2x256xf32>
      %c0_15 = arith.constant 0 : index
      %c0_16 = arith.constant 0 : index
      %18 = vector.load %arg6[%c0_15, %c0_16] : memref<2x256xf32, #tpu.memory_space<vmem>>, vector<2x256xf32>
      tpu.vector_store %arg6[%c0_15, %c0_16], %17 {strides = array<i32>} : memref<2x256xf32, #tpu.memory_space<vmem>>, vector<2x256xf32>,
    } else {
    }
    return
  }
  func.func @transform_0(%arg0: i32, %arg1: i32, %arg2: i32) -> (i32, i32) {
    %c0_i32 = arith.constant 0 : i32
    return %arg0, %arg2 : i32, i32
  }
  func.func @transform_1(%arg0: i32, %arg1: i32, %arg2: i32) -> (i32, i32) {
    %c0_i32 = arith.constant 0 : i32
    return %arg2, %arg1 : i32, i32
  }
  func.func @transform_2(%arg0: i32, %arg1: i32, %arg2: i32) -> (i32, i32) {
    %c0_i32 = arith.constant 0 : i32
    %c0_i32_0 = arith.constant 0 : i32
    return %c0_i32, %arg1 : i32, i32
  }
  func.func @transform_3(%arg0: i32, %arg1: i32, %arg2: i32) -> (i32, i32) {
    %c0_i32 = arith.constant 0 : i32
    return %arg0, %arg1 : i32, i32
  }
}

module attributes {stable_mosaic.version = 11 : i64} {
  func.func @kernel(%arg0: i32, %arg1: i32, %arg2: i32, %arg3: memref<2x256xbf16, #tpu.memory_space<vmem>>, %arg4: memref<256x2xbf16, #tpu.memory_space<vmem>>, %arg5: memref<1x2xf32, #tpu.memory_space<vmem>>, %arg6: memref<2x2xf32, #tpu.memory_space<vmem>>, %arg7: memref<2x2xf32, #tpu.memory_space<vmem>>) attributes {dimension_semantics = [#tpu.dimension_semantics<parallel>, #tpu.dimension_semantics<parallel>, #tpu.dimension_semantics<arbitrary>], iteration_bounds = array<i64: 1, 1, 1>, scalar_prefetch = 0 : i64, scratch_operands = 1 : i64, tpu.core_type = #tpu.core_type<tc>, window_params = [{transform_indices = @transform_0, window_bounds = array<i64: 2, 256>}, {transform_indices = @transform_1, window_bounds = array<i64: 256, 2>}, {transform_indices = @transform_2, window_bounds = array<i64: 1, 2>}, {transform_indices = @transform_3, window_bounds = array<i64: 2, 2>}]} {
    %c0_i32 = arith.constant 0 : i32
    %0 = arith.cmpi eq, %arg2, %c0_i32 : i32
    %1 = arith.extui %0 : i1 to i32
    %c0_i32_0 = arith.constant 0 : i32
    %2 = arith.cmpi ne, %1, %c0_i32_0 : i32
    scf.if %2 {
      %cst_10 = arith.constant 0.000000e+00 : f32
      %12 = vector.broadcast %cst_10 : f32 to vector<2x2xf32>
      %c0_11 = arith.constant 0 : index
      %c0_12 = arith.constant 0 : index
      %13 = vector.load %arg7[%c0_11, %c0_12] : memref<2x2xf32, #tpu.memory_space<vmem>>, vector<2x2xf32>
      tpu.vector_store %arg7[%c0_11, %c0_12], %12 {strides = array<i32>} : memref<2x2xf32, #tpu.memory_space<vmem>>, vector<2x2xf32>,
    } else {
    }
    %c0 = arith.constant 0 : index
    %c0_1 = arith.constant 0 : index
    %3 = vector.load %arg7[%c0, %c0_1] : memref<2x2xf32, #tpu.memory_space<vmem>>, vector<2x2xf32>
    %c0_2 = arith.constant 0 : index
    %c0_3 = arith.constant 0 : index
    %4 = vector.load %arg3[%c0_2, %c0_3] : memref<2x256xbf16, #tpu.memory_space<vmem>>, vector<2x256xbf16>
    %c0_4 = arith.constant 0 : index
    %c0_5 = arith.constant 0 : index
    %5 = vector.load %arg4[%c0_4, %c0_5] : memref<256x2xbf16, #tpu.memory_space<vmem>>, vector<256x2xbf16>
    %cst = arith.constant dense<0.000000e+00> : vector<2x2xf32>
    %6 = tpu.matmul %4, %5, %cst {dimension_numbers = #tpu.dot_dimension_numbers<[1], [0], [0], [1], [0, 0, 1, 1], [], []>} : vector<2x256xbf16>, vector<256x2xbf16>, vector<2x2xf32> -> vector<2x2xf32>
    %7 = arith.addf %3, %6 : vector<2x2xf32>
    %c0_6 = arith.constant 0 : index
    %c0_7 = arith.constant 0 : index
    %8 = vector.load %arg7[%c0_6, %c0_7] : memref<2x2xf32, #tpu.memory_space<vmem>>, vector<2x2xf32>
    tpu.vector_store %arg7[%c0_6, %c0_7], %7 {strides = array<i32>} : memref<2x2xf32, #tpu.memory_space<vmem>>, vector<2x2xf32>,
    %c0_i32_8 = arith.constant 0 : i32
    %9 = arith.cmpi eq, %arg2, %c0_i32_8 : i32
    %10 = arith.extui %9 : i1 to i32
    %c0_i32_9 = arith.constant 0 : i32
    %11 = arith.cmpi ne, %10, %c0_i32_9 : i32
    scf.if %11 {
      %c0_10 = arith.constant 0 : index
      %c0_11 = arith.constant 0 : index
      %12 = vector.load %arg7[%c0_10, %c0_11] : memref<2x2xf32, #tpu.memory_space<vmem>>, vector<2x2xf32>
      %c0_12 = arith.constant 0 : index
      %c0_13 = arith.constant 0 : index
      %13 = vector.load %arg5[%c0_12, %c0_13] : memref<1x2xf32, #tpu.memory_space<vmem>>, vector<1x2xf32>
      %14 = vector.broadcast %13 : vector<1x2xf32> to vector<2x2xf32>
      %15 = arith.addf %12, %14 : vector<2x2xf32>
      %c0_14 = arith.constant 0 : index
      %c0_15 = arith.constant 0 : index
      %16 = vector.load %arg6[%c0_14, %c0_15] : memref<2x2xf32, #tpu.memory_space<vmem>>, vector<2x2xf32>
      tpu.vector_store %arg6[%c0_14, %c0_15], %15 {strides = array<i32>} : memref<2x2xf32, #tpu.memory_space<vmem>>, vector<2x2xf32>,
    } else {
    }
    return
  }
  func.func @transform_0(%arg0: i32, %arg1: i32, %arg2: i32) -> (i32, i32) {
    %c0_i32 = arith.constant 0 : i32
    return %arg0, %arg2 : i32, i32
  }
  func.func @transform_1(%arg0: i32, %arg1: i32, %arg2: i32) -> (i32, i32) {
    %c0_i32 = arith.constant 0 : i32
    return %arg2, %arg1 : i32, i32
  }
  func.func @transform_2(%arg0: i32, %arg1: i32, %arg2: i32) -> (i32, i32) {
    %c0_i32 = arith.constant 0 : i32
    %c0_i32_0 = arith.constant 0 : i32
    return %c0_i32, %arg1 : i32, i32
  }
  func.func @transform_3(%arg0: i32, %arg1: i32, %arg2: i32) -> (i32, i32) {
    %c0_i32 = arith.constant 0 : i32
    return %arg0, %arg1 : i32, i32
  }
}

</mosaic_0001>

<bundles_post_ra>
// kernel: _lambda_.28
= control target key start
LH: loop header
LB: loop body
LE: loop exit
PB: predicated region body
PF: predicated region fallthrough
CT: control target
= control target key end

     0   :  { %vm50_vm0 = vcmask 1043456   ;;  %vm19_vm1 = vcmask 64512   ;;  %v184_v1 = vmov 0.0   ;;  %vm149_vm2 = vcmask 60416   ;;  %s239_s1 = inlined_call_operand.vmem [shape: bf16[8,8], index: 1, kind: input, shape index: {}]   ;;  %s240_s0 = inlined_call_operand.vmem [shape: bf16[32,8], index: 0, kind: input, shape index: {}]   ;;  %s241_s2 = inlined_call_operand.vmem [shape: f32[1,8], index: 2, kind: input, shape index: {}]   ;;  %s242_s3 = inlined_call_operand.vmem [shape: bf16[32,8], index: 3, kind: output, shape index: {}]  }
   0x1   :  { %v32_v0 = vld [vmem:[%s239_s1] sm:$0xf]  ;;  %22 = vst.msk [vmem:[#allocation2 + $0x10] sm:$0xff] %vm19_vm1, %v184_v1  ;;  %20 = vst.msk [vmem:[#allocation2] sm:$0xff] %vm19_vm1, %v184_v1  ;;  %v183_v4 = vld [vmem:[%s240_s0 + $0x8] sm:$0xff]  }
   0x2   :  { %21 = vst.msk [vmem:[#allocation2 + $0x8] sm:$0xff] %vm19_vm1, %v184_v1  ;;  %23 = vst.msk [vmem:[#allocation2 + $0x18] sm:$0xff] %vm19_vm1, %v184_v1  ;;  %180 = vmatprep.subr.msk.bf16.mxu0 %vm50_vm0, %v32_v0  ;;  %v52_v2 = vsel %vm50_vm0, %v32_v0, 0  ;;  %v182_v3 = vld [vmem:[%s240_s0] sm:$0xff]  }
   0x3   :  { %175 = vmatpush3.bf16.msra.mxu0 %v52_v2  ;;  %176 = vmatprep.mubr.msk.bf16.mxu0 %vm19_vm1, %v182_v3  ;;  %v162_v17 = vld [vmem:[%s241_s2] ss:$0 sm:$0xff] }
   0x6   :  { %177 = vmatmul.mubr.msk.bf16.vlgmr.msra.gmra.mrb[0].mxu0 %vm19_vm1, %v183_v4 }
   0x8   :  { %v26_v5 = vld [vmem:[#allocation2 + $0x10] sm:$0xff]  ;;  %v24_v6 = vld [vmem:[#allocation2] sm:$0xff] }
   0x9   :  { %v27_v8 = vld [vmem:[#allocation2 + $0x18] sm:$0xff]  ;;  %v25_v11 = vld [vmem:[#allocation2 + $0x8] sm:$0xff] }
  0xd9   :  { %v178_v7 = vpop.f32.mrb[0].mxu0 }
  0xda   :  { %v105_v9 = vadd.f32 %v178_v7, %v26_v5  ;;  %v88_v10 = vpop.f32.mrb[1].mxu0 }
  0xdb   :  { %v103_v12 = vadd.f32 %v88_v10, %v24_v6  ;;  %v179_v13 = vpop.f32.mrb[2].mxu0 }
  0xdc   :  { %109 = vst.msk [vmem:[#allocation2 + $0x10] sm:$0xff] %vm19_vm1, %v105_v9  ;;  %v106_v14 = vadd.f32 %v179_v13, %v27_v8  ;;  %v91_v15 = vpop.f32.mrb[3].mxu0 }
  0xdd   :  { %107 = vst.msk [vmem:[#allocation2] sm:$0xff] %vm19_vm1, %v103_v12  ;;  %v104_v16 = vadd.f32 %v91_v15, %v25_v11 }
  0xde   :  { %110 = vst.msk [vmem:[#allocation2 + $0x18] sm:$0xff] %vm19_vm1, %v106_v14 }
  0xdf   :  { %108 = vst.msk [vmem:[#allocation2 + $0x8] sm:$0xff] %vm19_vm1, %v104_v16 }
  0xe3   :  { %v116_v18 = vld [vmem:[#allocation2 + $0x10] sm:$0xff] }
  0xe4   :  { %v127_v19 = vadd.f32 %v162_v17, %v116_v18  ;;  %v114_v20 = vld [vmem:[#allocation2] sm:$0xff] }
  0xe5   :  { %v125_v21 = vadd.f32 %v162_v17, %v114_v20  ;;  %v117_v22 = vld [vmem:[#allocation2 + $0x18] sm:$0xff] }
  0xe6   :  { %v131_v23 = vmax.f32 %v127_v19, 0.0  ;;  %v128_v24 = vadd.f32 %v162_v17, %v117_v22  ;;  %v115_v25 = vld [vmem:[#allocation2 + $0x8] sm:$0xff] }
  0xe7   :  { %v129_v26 = vmax.f32 %v125_v21, 0.0  ;;  %v126_v27 = vadd.f32 %v162_v17, %v115_v25 }
  0xe8   :  { %v169_v28 = vpack.c.bf16 %v131_v23, %v131_v23  ;;  %v132_v29 = vmax.f32 %v128_v24, 0.0 }
  0xe9   :  { %v167_v30 = vpack.c.bf16 %v129_v26, %v129_v26  ;;  %v130_v31 = vmax.f32 %v126_v27, 0.0 }
  0xea   :  { %152 = vst.msk [vmem:[%s242_s3 + $0x8] sm:$0xf] %vm149_vm2, %v169_v28  ;;  %v170_v32 = vpack.c.bf16 %v132_v29, %v132_v29 }
  0xeb   :  { %150 = vst.msk [vmem:[%s242_s3] sm:$0xf] %vm149_vm2, %v167_v30  ;;  %v168_v33 = vpack.c.bf16 %v130_v31, %v130_v31 }
  0xec   :  { %153 = vst.msk [vmem:[%s242_s3 + $0xc] sm:$0xf] %vm149_vm2, %v170_v32 }
  0xed   :  { %151 = vst.msk [vmem:[%s242_s3 + $0x4] sm:$0xf] %vm149_vm2, %v168_v33 }

// kernel: _lambda_.26
= control target key start
LH: loop header
LB: loop body
LE: loop exit
PB: predicated region body
PF: predicated region fallthrough
CT: control target
= control target key end

     0   :  { %s612_s15 = smov 0   ;;  %s696_s0 = inlined_call_operand.vmem [shape: bf16[2,5,5,8], index: 0, kind: input, shape index: {}]   ;;  %s697_s1 = inlined_call_operand.vmem [shape: bf16[2,5,5,8], index: 1, kind: input, shape index: {}]   ;;  %s698_s2 = inlined_call_operand.vmem [shape: bf16[2,5,5,8], index: 2, kind: input, shape index: {}]   ;;  %s699_s3 = inlined_call_operand.vmem [shape: bf16[2,5,5,8], index: 3, kind: input, shape index: {}]   ;;  %s700_s4 = inlined_call_operand.vmem [shape: bf16[2,4,4,8], index: 4, kind: output, shape index: {}]  }
   0x1 LB: > { %s544_s16 = sadd.s32 4294967295, %s585_s15   ;;  %p548_p0 = scmp.ge.s32.totalorder %s585_s15, 1  ;;  %s585_s15 = sphi %s612_s15, %s14_s15  }
   0x2   : > { %p192_p1 = scmp.lt.s32.totalorder %s585_s15, 3 }
   0x4   : > { %p193_p2 = pnand %p548_p0, %p192_p1 }
   0x5   : > { %p233_p3 = scmp.lt.s32.totalorder (!%p193_p2), %s544_s16, 1  ;;  %vm448_vm0 = vcmask (!%p193_p2), 58368  }
   0x6   : > { %196 = sbr.rel (%p193_p2) target bundleno = 55 (0x37), region = 36 }
   0xd   : > { %s702_s16 = smov (!%p233_p3, %s544_s16), 1 }
   0xe   : > { %s570_s17 = smul.u32 20, %s702_s16  ;;  %s569_s30 = sshll.u32 %s702_s16, 3 }
   0xf   : > { %s672_s7 = scalar_lea.vmem %s700_s4, %s569_s30 }
  0x10   : > { %s626_s20 = scalar_lea.vmem %s696_s0, %s570_s17  ;;  %s631_s23 = scalar_lea.vmem %s697_s1, %s570_s17 }
  0x11   : > { %s636_s26 = scalar_lea.vmem %s698_s2, %s570_s17  ;;  %s641_s29 = scalar_lea.vmem %s699_s3, %s570_s17  ;;  %v262_v0 = vld [vmem:[%s631_s23] sm:$0x3]  ;;  %v563_v13 = vld [vmem:[%s626_s20 + $0x4] sm:$0x7]  ;;  %v564_v39 = vld [vmem:[%s626_s20 + $0x8] sm:$0x7] }
  0x12   : > { %v286_v1 = vld [vmem:[%s626_s20] sm:$0x7]  ;;  %v405_v15 = vshrl.u32 %v563_v13, 16  ;;  %v408_v16 = vshll.u32 %v563_v13, 16  ;;  %v259_v17 = vld [vmem:[%s641_s29 + $0x4] sm:$0x3] }
  0x13   : > { %v258_v2 = vld [vmem:[%s641_s29] sm:$0x3]  ;;  %v291_v4 = vshrl.u32 %v286_v1, 16  ;;  %v294_v5 = vshll.u32 %v286_v1, 16  ;;  %v263_v18 = vld [vmem:[%s631_s23 + $0x4] sm:$0x3] }
  0x14   : > { %v270_v3 = vld [vmem:[%s636_s26] sm:$0x3]  ;;  %v266_v6 = vmax.bf16 %v262_v0, %v258_v2  ;;  %v267_v22 = vmax.bf16 %v263_v18, %v259_v17  ;;  %v271_v23 = vld [vmem:[%s636_s26 + $0x4] sm:$0x3]  ;;  %v407_v25 = vrot.slane %v405_v15, 4  ;;  %v410_v26 = vrot.slane %v408_v16, 5 }
  0x15   : > { %v278_v7 = vld [vmem:[%s626_s20] sm:$0x3]  ;;  %v293_v9 = vrot.slane %v291_v4, 4  ;;  %v296_v10 = vrot.slane %v294_v5, 5  ;;  %v279_v27 = vld [vmem:[%s626_s20 + $0x4] sm:$0x3] }
  0x16   : > { %v343_v8 = vld [vmem:[%s636_s26] sm:$0x7]  ;;  %v274_v14 = vmax.bf16 %v270_v3, %v266_v6  ;;  %v287_v28 = vld [vmem:[%s626_s20 + $0x4] sm:$0x7]  ;;  %v275_v32 = vmax.bf16 %v271_v23, %v267_v22  ;;  %v411_v35 = vor.u32 %v410_v26, %v407_v25  ;;  %v260_v44 = vld [vmem:[%s641_s29 + $0x8] sm:$0x3] }
  0x17   : > { %v348_v11 = vshrl.u32 %v343_v8, 16  ;;  %v351_v12 = vshll.u32 %v343_v8, 16  ;;  %v297_v19 = vor.u32 %v296_v10, %v293_v9  ;;  %v555_v30 = vld [vmem:[%s631_s23 + $0x4] sm:$0x3]  ;;  %v300_v33 = vshrl.u32 %v287_v28, 16 }
  0x18   : > { %v282_v24 = vmax.bf16 %v278_v7, %v274_v14  ;;  %v344_v34 = vld [vmem:[%s636_s26 + $0x4] sm:$0x7]  ;;  %v303_v36 = vshll.u32 %v287_v28, 16  ;;  %v283_v42 = vmax.bf16 %v279_v27, %v275_v32  ;;  %v264_v45 = vld [vmem:[%s631_s23 + $0x8] sm:$0x3]  ;;  %v412_v46 = vrot.slane %v411_v35, 4 }
  0x19   : > { %v350_v20 = vrot.slane %v348_v11, 4  ;;  %v353_v21 = vrot.slane %v351_v12, 5  ;;  %v298_v29 = vrot.slane %v297_v19, 4  ;;  %v357_v37 = vshrl.u32 %v344_v34, 16  ;;  %v272_v50 = vld [vmem:[%s636_s26 + $0x8] sm:$0x3] }
  0x1a   : > { %v360_v38 = vshll.u32 %v344_v34, 16  ;;  %v302_v43 = vrot.slane %v300_v33, 4  ;;  %v305_v47 = vrot.slane %v303_v36, 5  ;;  %v559_v52 = vld [vmem:[%s626_s20 + $0x4] sm:$0x3]  ;;  %v414_v53 = vshrl.u32 %v564_v39, 16 }
  0x1b   : > { %v354_v31 = vor.u32 %v353_v21, %v350_v20  ;;  %v330_v40 = vmax.bf16 %v298_v29, %v282_v24  ;;  %v359_v48 = vrot.slane %v357_v37, 4  ;;  %v417_v54 = vshll.u32 %v564_v39, 16  ;;  %v288_v56 = vld [vmem:[%s626_s20 + $0x8] sm:$0x7]  ;;  %v565_v3 = vld [vmem:[%s626_s20 + $0xc] sm:$0x7] }
  0x1c   : > { %v362_v49 = vrot.slane %v360_v38, 5  ;;  %v268_v55 = vmax.bf16 %v264_v45, %v260_v44  ;;  %v306_v57 = vor.u32 %v305_v47, %v302_v43  ;;  %v280_v59 = vld [vmem:[%s626_s20 + $0x8] sm:$0x3]  ;;  %v309_v60 = vshrl.u32 %v288_v56, 16  ;;  %v261_v13 = vld [vmem:[%s641_s29 + $0xc] sm:$0x3] }
  0x1d   : > { %v355_v41 = vrot.slane %v354_v31, 4  ;;  %v339_v51 = vmax.bf16 %v555_v30, %v330_v40  ;;  %v312_v61 = vshll.u32 %v288_v56, 16  ;;  %v345_v62 = vld [vmem:[%s636_s26 + $0x8] sm:$0x7]  ;;  %v416_v0 = vrot.slane %v414_v53, 4 }
  0x1e   : > { %v363_v58 = vor.u32 %v362_v49, %v359_v48  ;;  %v419_v1 = vrot.slane %v417_v54, 5  ;;  %v276_v2 = vmax.bf16 %v272_v50, %v268_v55  ;;  %v307_v4 = vrot.slane %v306_v57, 4  ;;  %v556_v9 = vld [vmem:[%s631_s23 + $0x8] sm:$0x3]  ;;  %v265_v18 = vld [vmem:[%s631_s23 + $0xc] sm:$0x3] }
  0x1f   : > { %v387_v63 = vmax.bf16 %v355_v41, %v339_v51  ;;  %v311_v6 = vrot.slane %v309_v60, 4  ;;  %v314_v7 = vrot.slane %v312_v61, 5  ;;  %v366_v12 = vshrl.u32 %v345_v62, 16  ;;  %v289_v19 = vld [vmem:[%s626_s20 + $0xc] sm:$0x7] }
  0x20   : > { %v364_v5 = vrot.slane %v363_v58, 4  ;;  %v420_v10 = vor.u32 %v419_v1, %v416_v0  ;;  %v284_v11 = vmax.bf16 %v280_v59, %v276_v2  ;;  %v331_v14 = vmax.bf16 %v307_v4, %v283_v42  ;;  %v560_v21 = vld [vmem:[%s626_s20 + $0x8] sm:$0x3]  ;;  %v273_v25 = vld [vmem:[%s636_s26 + $0xc] sm:$0x3] }
  0x21   : > { %v396_v8 = vmax.bf16 %v559_v52, %v387_v63  ;;  %v315_v15 = vor.u32 %v314_v7, %v311_v6  ;;  %v369_v16 = vshll.u32 %v345_v62, 16  ;;  %v423_v17 = vshrl.u32 %v565_v3, 16  ;;  %v346_v30 = vld [vmem:[%s636_s26 + $0xc] sm:$0x7]  ;;  %v566_v45 = vld [vmem:[%s626_s20 + $0x10] sm:$0x7] }
  0x22   : > { %v421_v22 = vrot.slane %v420_v10, 4  ;;  %v368_v23 = vrot.slane %v366_v12, 4  ;;  %v426_v24 = vshll.u32 %v565_v3, 16  ;;  %v340_v26 = vmax.bf16 %v556_v9, %v331_v14  ;;  %v557_v31 = vld [vmem:[%s631_s23 + $0xc] sm:$0x3] }
  0x23   : > { %v444_v20 = vmax.bf16 %v412_v46, %v396_v8  ;;  %v316_v27 = vrot.slane %v315_v15, 4  ;;  %v371_v28 = vrot.slane %v369_v16, 5  ;;  %v425_v29 = vrot.slane %v423_v17, 4  ;;  %v281_v39 = vld [vmem:[%s626_s20 + $0xc] sm:$0x3] }
  0x24   : > { %v428_v32 = vrot.slane %v426_v24, 5  ;;  %v269_v33 = vmax.bf16 %v265_v18, %v261_v13  ;;  %v318_v34 = vshrl.u32 %v289_v19, 16  ;;  %v321_v35 = vshll.u32 %v289_v19, 16  ;;  %v561_v50 = vld [vmem:[%s626_s20 + $0xc] sm:$0x3] }
  0x25   : > { %449 = vst.msk [vmem:[%s672_s7] sm:$0x3] %vm448_vm0, %v444_v20  ;;  %v388_v36 = vmax.bf16 %v364_v5, %v340_v26  ;;  %v332_v37 = vmax.bf16 %v316_v27, %v284_v11  ;;  %v372_v38 = vor.u32 %v371_v28, %v368_v23  ;;  %v375_v40 = vshrl.u32 %v346_v30, 16  ;;  %v558_v62 = vld [vmem:[%s631_s23 + $0x10] sm:$0x3] }
  0x26   : > { %v429_v41 = vor.u32 %v428_v32, %v425_v29  ;;  %v277_v42 = vmax.bf16 %v273_v25, %v269_v33  ;;  %v320_v43 = vrot.slane %v318_v34, 4  ;;  %v323_v44 = vrot.slane %v321_v35, 5  ;;  %v562_v7 = vld [vmem:[%s626_s20 + $0x10] sm:$0x3] }
  0x27   : > { %v397_v46 = vmax.bf16 %v560_v21, %v388_v36  ;;  %v341_v47 = vmax.bf16 %v557_v31, %v332_v37  ;;  %v373_v48 = vrot.slane %v372_v38, 4  ;;  %v377_v49 = vrot.slane %v375_v40, 4 }
  0x28   : > { %v430_v51 = vrot.slane %v429_v41, 4  ;;  %v285_v52 = vmax.bf16 %v281_v39, %v277_v42  ;;  %v324_v53 = vor.u32 %v323_v44, %v320_v43  ;;  %v378_v54 = vshll.u32 %v346_v30, 16 }
  0x29   : > { %v445_v55 = vmax.bf16 %v421_v22, %v397_v46  ;;  %v389_v56 = vmax.bf16 %v373_v48, %v341_v47  ;;  %v432_v57 = vshrl.u32 %v566_v45, 16  ;;  %v435_v58 = vshll.u32 %v566_v45, 16 }
  0x2a   : > { %v325_v59 = vrot.slane %v324_v53, 4  ;;  %v380_v60 = vrot.slane %v378_v54, 5 }
  0x2b   : > { %450 = vst.msk [vmem:[%s672_s7 + $0x2] sm:$0x3] %vm448_vm0, %v445_v55  ;;  %v398_v61 = vmax.bf16 %v561_v50, %v389_v56  ;;  %v434_v63 = vrot.slane %v432_v57, 4  ;;  %v437_v0 = vrot.slane %v435_v58, 5 }
  0x2c   : > { %v333_v1 = vmax.bf16 %v325_v59, %v285_v52  ;;  %v381_v2 = vor.u32 %v380_v60, %v377_v49 }
  0x2d   : > { %v446_v3 = vmax.bf16 %v430_v51, %v398_v61  ;;  %v438_v4 = vor.u32 %v437_v0, %v434_v63 }
  0x2e   : > { %v342_v5 = vmax.bf16 %v558_v62, %v333_v1  ;;  %v382_v6 = vrot.slane %v381_v2, 4 }
  0x2f   : > { %451 = vst.msk [vmem:[%s672_s7 + $0x4] sm:$0x3] %vm448_vm0, %v446_v3  ;;  %v439_v9 = vrot.slane %v438_v4, 4 }
  0x30   : > { %v390_v8 = vmax.bf16 %v382_v6, %v342_v5 }
  0x32   : > { %v399_v10 = vmax.bf16 %v562_v7, %v390_v8 }
  0x34   : > { %v447_v11 = vmax.bf16 %v439_v9, %v399_v10 }
  0x36   : > { %452 = vst.msk [vmem:[%s672_s7 + $0x6] sm:$0x3] %vm448_vm0, %v447_v11 }
  0x37 PF: > { %s14_s15 = sadd.s32 1, %s585_s15  }
  0x38   : > { %p11_p4 = scmp.ge.s32.totalorder %s14_s15, 4  }
  0x3a   :  { %13 = sbr.rel (!%p11_p4) target bundleno = 1 (0x1), region = 77 }

// kernel: _lambda_.25
= control target key start
LH: loop header
LB: loop body
LE: loop exit
PB: predicated region body
PF: predicated region fallthrough
CT: control target
= control target key end

     0   :  { %v645_v0 = vmov 0   ;;  %vm19_vm0 = vcmask 64512   ;;  %v646_v3 = vmov 0.0   ;;  %vm216_vm1 = vcmask 154624   ;;  %s891_s1 = inlined_call_operand.vmem [shape: bf16[147,8], index: 1, kind: input, shape index: {}]   ;;  %s892_s0 = inlined_call_operand.vmem [shape: bf16[128,147], index: 0, kind: input, shape index: {}]   ;;  %s893_s2 = inlined_call_operand.vmem [shape: f32[1,8], index: 2, kind: input, shape index: {}]   ;;  %s894_s3 = inlined_call_operand.vmem [shape: bf16[128,8], index: 3, kind: output, shape index: {}]  }
   0x1   :  { %248 = vmatprep.subr.bf16.mxu0 %v645_v0  ;;  %588 = vmatprep.subr.bf16.mxu1 %v645_v0  ;;  %v611_v1 = vld [vmem:[%s891_s1] sm:$0xff]   ;;  %v612_v2 = vld [vmem:[%s891_s1 + $0x8] sm:$0xff]   ;;  %20 = vst.msk [vmem:[#allocation2] sm:$0xff] %vm19_vm0, %v646_v3  ;;  %21 = vst.msk [vmem:[#allocation2 + $0x8] sm:$0xff] %vm19_vm0, %v646_v3  ;;  %vm241_vm2 = vcmask 1040384   ;;  %vm242_vm3 = vcmask 1041408  }
   0x2   :  { %249 = vmatpush1.bf16.msra.mxu0 %v611_v1  ;;  %598 = vmatpush1.bf16.msra.mxu1 %v611_v1  ;;  %22 = vst.msk [vmem:[#allocation2 + $0x10] sm:$0xff] %vm19_vm0, %v646_v3  ;;  %23 = vst.msk [vmem:[#allocation2 + $0x18] sm:$0xff] %vm19_vm0, %v646_v3  ;;  %v613_v4 = vld [vmem:[%s891_s1 + $0x10] sm:$0xff]   ;;  %v614_v5 = vld [vmem:[%s891_s1 + $0x18] sm:$0xff]   ;;  %v647_v12 = vmov 65535   ;;  %vm500_vm4 = vcmask 60416  }
   0x3   :  { %250 = vmatprep.subr.bf16.mxu0 %v645_v0  ;;  %589 = vmatprep.subr.bf16.mxu1 %v645_v0  ;;  %24 = vst.msk [vmem:[#allocation2 + $0x20] sm:$0xff] %vm19_vm0, %v646_v3  ;;  %25 = vst.msk [vmem:[#allocation2 + $0x28] sm:$0xff] %vm19_vm0, %v646_v3  ;;  %v623_v6 = vld [vmem:[%s892_s0 + $0x4] ss:$8 sps:$4 sm:$0xff]   ;;  %v617_v10 = vld [vmem:[%s891_s1 + $0x30] sm:$0xff]   ;;  %v243_v13 = vsel %vm241_vm2, 4294967295, %v647_v12 }
   0x4   :  { %26 = vst.msk [vmem:[#allocation2 + $0x30] sm:$0xff] %vm19_vm0, %v646_v3  ;;  %27 = vst.msk [vmem:[#allocation2 + $0x38] sm:$0xff] %vm19_vm0, %v646_v3  ;;  %547 = vmatprep.mubr.msk.bf16.mxu0 %vm216_vm1, %v623_v6  ;;  %v626_v7 = vld [vmem:[%s892_s0 + $0x44] ss:$8 sps:$4 sm:$0xff]   ;;  %v618_v11 = vld [vmem:[%s891_s1 + $0x38] sm:$0xff]   ;;  %v244_v16 = vsel %vm242_vm3, %v243_v13, 0 }
   0x5   :  { %28 = vst.msk [vmem:[#allocation2 + $0x40] sm:$0xff] %vm19_vm0, %v646_v3  ;;  %29 = vst.msk [vmem:[#allocation2 + $0x48] sm:$0xff] %vm19_vm0, %v646_v3  ;;  %v615_v8 = vld [vmem:[%s891_s1 + $0x20] sm:$0xff]   ;;  %551 = vmatprep.mubr.msk.bf16.mxu1 %vm216_vm1, %v626_v7  ;;  %v616_v9 = vld [vmem:[%s891_s1 + $0x28] sm:$0xff]  }
   0x6   :  { %30 = vst.msk [vmem:[#allocation2 + $0x50] sm:$0xff] %vm19_vm0, %v646_v3  ;;  %31 = vst.msk [vmem:[#allocation2 + $0x58] sm:$0xff] %vm19_vm0, %v646_v3  ;;  %251 = vmatpush1.bf16.msra.mxu0 %v612_v2  ;;  %599 = vmatpush1.bf16.msra.mxu1 %v612_v2  ;;  %v619_v14 = vld [vmem:[%s891_s1 + $0x40] sm:$0xff]   ;;  %v620_v15 = vld [vmem:[%s891_s1 + $0x48] ss:$0 sps:$4 sm:$0x33]  }
   0x7   :  { %32 = vst.msk [vmem:[#allocation2 + $0x60] sm:$0xff] %vm19_vm0, %v646_v3  ;;  %33 = vst.msk [vmem:[#allocation2 + $0x68] sm:$0xff] %vm19_vm0, %v646_v3  ;;  %252 = vmatprep.subr.bf16.mxu0 %v645_v0  ;;  %590 = vmatprep.subr.bf16.mxu1 %v645_v0  ;;  %v246_v17 = vand.u32 %v620_v15, %v244_v16  ;;  %v621_v18 = vld [vmem:[%s892_s0] ss:$8 sps:$4 sm:$0xff]   ;;  %v627_v20 = vld [vmem:[%s892_s0 + $0x14] ss:$8 sps:$4 sm:$0xff]  }
   0x8   :  { %34 = vst.msk [vmem:[#allocation2 + $0x70] sm:$0xff] %vm19_vm0, %v646_v3  ;;  %35 = vst.msk [vmem:[#allocation2 + $0x78] sm:$0xff] %vm19_vm0, %v646_v3  ;;  %v624_v19 = vld [vmem:[%s892_s0 + $0x40] ss:$8 sps:$4 sm:$0xff]   ;;  %v629_v21 = vld [vmem:[%s892_s0 + $0x54] ss:$8 sps:$4 sm:$0xff]  }
   0x9   :  { %v631_v22 = vld [vmem:[%s892_s0 + $0x10] ss:$8 sps:$4 sm:$0xff]   ;;  %v633_v24 = vld [vmem:[%s892_s0 + $0x24] ss:$8 sps:$4 sm:$0xff]   ;;  %v637_v26 = vld [vmem:[%s892_s0 + $0x20] ss:$8 sps:$4 sm:$0xff]  }
   0xa   :  { %253 = vmatpush1.bf16.msra.mxu0 %v613_v4  ;;  %600 = vmatpush1.bf16.msra.mxu1 %v613_v4  ;;  %v632_v23 = vld [vmem:[%s892_s0 + $0x50] ss:$8 sps:$4 sm:$0xff]   ;;  %v635_v25 = vld [vmem:[%s892_s0 + $0x64] ss:$8 sps:$4 sm:$0xff]   ;;  %v638_v27 = vld [vmem:[%s892_s0 + $0x60] ss:$8 sps:$4 sm:$0xff]  }
   0xb   :  { %254 = vmatprep.subr.bf16.mxu0 %v645_v0  ;;  %591 = vmatprep.subr.bf16.mxu1 %v645_v0  ;;  %v639_v28 = vld [vmem:[%s892_s0 + $0x34] ss:$8 sps:$4 sm:$0xff]   ;;  %v643_v30 = vld [vmem:[%s892_s0 + $0x30] ss:$8 sps:$4 sm:$0xff]   ;;  %v36_v32 = vld [vmem:[#allocation2] sm:$0xff] }
   0xc   :  { %v641_v29 = vld [vmem:[%s892_s0 + $0x74] ss:$8 sps:$4 sm:$0xff]   ;;  %v644_v31 = vld [vmem:[%s892_s0 + $0x70] ss:$8 sps:$4 sm:$0xff]   ;;  %v44_v33 = vld [vmem:[#allocation2 + $0x40] sm:$0xff] }
   0xd   :  { %v37_v36 = vld [vmem:[#allocation2 + $0x8] sm:$0xff]  ;;  %v38_v48 = vld [vmem:[#allocation2 + $0x10] sm:$0xff]  ;;  %v797_v50 = vld [vmem:[%s893_s2] ss:$0 sm:$0xff] }
   0xe   :  { %255 = vmatpush1.bf16.msra.mxu0 %v614_v5  ;;  %601 = vmatpush1.bf16.msra.mxu1 %v614_v5  ;;  %v45_v37 = vld [vmem:[#allocation2 + $0x48] sm:$0xff]  ;;  %v46_v49 = vld [vmem:[#allocation2 + $0x50] sm:$0xff]  ;;  %v39_v53 = vld [vmem:[#allocation2 + $0x18] sm:$0xff] }
   0xf   :  { %256 = vmatprep.subr.bf16.mxu0 %v645_v0  ;;  %592 = vmatprep.subr.bf16.mxu1 %v645_v0  ;;  %v47_v54 = vld [vmem:[#allocation2 + $0x58] sm:$0xff]  ;;  %v48_v12 = vld [vmem:[#allocation2 + $0x60] sm:$0xff] }
  0x12   :  { %257 = vmatpush1.bf16.msra.mxu0 %v615_v8  ;;  %602 = vmatpush1.bf16.msra.mxu1 %v615_v8 }
  0x13   :  { %258 = vmatprep.subr.bf16.mxu0 %v645_v0  ;;  %593 = vmatprep.subr.bf16.mxu1 %v645_v0 }
  0x16   :  { %259 = vmatpush1.bf16.msra.mxu0 %v616_v9  ;;  %603 = vmatpush1.bf16.msra.mxu1 %v616_v9 }
  0x17   :  { %260 = vmatprep.subr.bf16.mxu0 %v645_v0  ;;  %594 = vmatprep.subr.bf16.mxu1 %v645_v0 }
  0x1a   :  { %261 = vmatpush1.bf16.msra.mxu0 %v617_v10  ;;  %604 = vmatpush1.bf16.msra.mxu1 %v617_v10 }
  0x1b   :  { %262 = vmatprep.subr.bf16.mxu0 %v645_v0  ;;  %595 = vmatprep.subr.bf16.mxu1 %v645_v0 }
  0x1e   :  { %263 = vmatpush1.bf16.msra.mxu0 %v618_v11  ;;  %605 = vmatpush1.bf16.msra.mxu1 %v618_v11  ;;  %v40_v11 = vld [vmem:[#allocation2 + $0x20] sm:$0xff] }
  0x1f   :  { %264 = vmatprep.subr.bf16.mxu0 %v645_v0  ;;  %596 = vmatprep.subr.bf16.mxu1 %v645_v0 }
  0x22   :  { %265 = vmatpush1.bf16.msra.mxu0 %v619_v14  ;;  %606 = vmatpush1.bf16.msra.mxu1 %v619_v14 }
  0x23   :  { %266 = vmatprep.subr.bf16.mxu0 %v645_v0  ;;  %597 = vmatprep.subr.bf16.mxu1 %v645_v0 }
  0x26   :  { %267 = vmatpush1.bf16.msra.mxu0 %v246_v17  ;;  %607 = vmatpush1.bf16.msra.mxu1 %v246_v17 }
  0x29   :  { %281 = vmatmul.mubr.bf16.vlgmr.msra.gmra.mrb[0].mxu0 %v621_v18  ;;  %313 = vmatmul.mubr.bf16.vlgmr.msra.gmra.mrb[0].mxu1 %v624_v19  ;;  %v41_v19 = vld [vmem:[#allocation2 + $0x28] sm:$0xff] }
  0x2a   :  { %548 = vmatprep.mubr.msk.bf16.mxu0 %vm216_vm1, %v627_v20  ;;  %552 = vmatprep.mubr.msk.bf16.mxu1 %vm216_vm1, %v629_v21  ;;  %v49_v20 = vld [vmem:[#allocation2 + $0x68] sm:$0xff] }
  0x31   :  { %289 = vmatmul.mubr.bf16.gmra.mrb[4].mxu0 %v631_v22  ;;  %321 = vmatmul.mubr.bf16.gmra.mrb[4].mxu1 %v632_v23 }
  0x32   :  { %549 = vmatprep.mubr.msk.bf16.mxu0 %vm216_vm1, %v633_v24  ;;  %553 = vmatprep.mubr.msk.bf16.mxu1 %vm216_vm1, %v635_v25 }
  0x39   :  { %297 = vmatmul.mubr.bf16.gmra.mrb[8].mxu0 %v637_v26  ;;  %329 = vmatmul.mubr.bf16.gmra.mrb[8].mxu1 %v638_v27 }
  0x3a   :  { %550 = vmatprep.mubr.msk.bf16.mxu0 %vm216_vm1, %v639_v28  ;;  %554 = vmatprep.mubr.msk.bf16.mxu1 %vm216_vm1, %v641_v29 }
  0x41   :  { %305 = vmatmul.mubr.bf16.gmra.mrb[12].mxu0 %v643_v30  ;;  %337 = vmatmul.mubr.bf16.gmra.mrb[12].mxu1 %v644_v31 }
  0xfc   :  { %v282_v34 = vpop.f32.mrb[0].mxu0  ;;  %v314_v35 = vpop.f32.mrb[0].mxu1 }
  0xfd   :  { %v345_v38 = vadd.f32 %v282_v34, %v36_v32  ;;  %v353_v39 = vadd.f32 %v314_v35, %v44_v33  ;;  %v284_v40 = vpop.f32.mrb[1].mxu0  ;;  %v316_v41 = vpop.f32.mrb[1].mxu1 }
  0xfe   :  { %v285_v42 = vpop.f32.mrb[2].mxu0  ;;  %v317_v43 = vpop.f32.mrb[2].mxu1 }
  0xff   :  { %362 = vst.msk [vmem:[#allocation2] sm:$0xff] %vm19_vm0, %v345_v38  ;;  %370 = vst.msk [vmem:[#allocation2 + $0x40] sm:$0xff] %vm19_vm0, %v353_v39  ;;  %v346_v44 = vadd.f32 %v285_v42, %v37_v36  ;;  %v354_v45 = vadd.f32 %v317_v43, %v45_v37  ;;  %v287_v46 = vpop.f32.mrb[3].mxu0  ;;  %v319_v47 = vpop.f32.mrb[3].mxu1  ;;  %v42_v43 = vld [vmem:[#allocation2 + $0x30] sm:$0xff] }
 0x101   :  { %363 = vst.msk [vmem:[#allocation2 + $0x8] sm:$0xff] %vm19_vm0, %v346_v44  ;;  %371 = vst.msk [vmem:[#allocation2 + $0x48] sm:$0xff] %vm19_vm0, %v354_v45  ;;  %v50_v44 = vld [vmem:[#allocation2 + $0x70] sm:$0xff] }
 0x104   :  { %v290_v51 = vpop.f32.mrb[4].mxu0  ;;  %v322_v52 = vpop.f32.mrb[4].mxu1 }
 0x105   :  { %v347_v55 = vadd.f32 %v290_v51, %v38_v48  ;;  %v355_v56 = vadd.f32 %v322_v52, %v46_v49  ;;  %v292_v57 = vpop.f32.mrb[5].mxu0  ;;  %v324_v58 = vpop.f32.mrb[5].mxu1  ;;  %v43_v52 = vld [vmem:[#allocation2 + $0x38] sm:$0xff] }
 0x106   :  { %v381_v59 = vld [vmem:[#allocation2] sm:$0xff]  ;;  %v293_v61 = vpop.f32.mrb[6].mxu0  ;;  %v325_v62 = vpop.f32.mrb[6].mxu1 }
 0x107   :  { %v389_v60 = vld [vmem:[#allocation2 + $0x40] sm:$0xff]  ;;  %v404_v63 = vadd.f32 %v797_v50, %v381_v59  ;;  %364 = vst.msk [vmem:[#allocation2 + $0x10] sm:$0xff] %vm19_vm0, %v347_v55  ;;  %372 = vst.msk [vmem:[#allocation2 + $0x50] sm:$0xff] %vm19_vm0, %v355_v56  ;;  %v348_v1 = vadd.f32 %v293_v61, %v39_v53  ;;  %v356_v2 = vadd.f32 %v325_v62, %v47_v54  ;;  %v295_v3 = vpop.f32.mrb[7].mxu0  ;;  %v327_v4 = vpop.f32.mrb[7].mxu1  ;;  %v51_v53 = vld [vmem:[#allocation2 + $0x78] sm:$0xff] }
 0x108   :  { %v412_v0 = vadd.f32 %v797_v50, %v389_v60  ;;  %v382_v5 = vld [vmem:[#allocation2 + $0x8] sm:$0xff] }
 0x109   :  { %v390_v6 = vld [vmem:[#allocation2 + $0x48] sm:$0xff]  ;;  %v420_v7 = vmax.f32 %v404_v63, 0.0  ;;  %v405_v9 = vadd.f32 %v797_v50, %v382_v5  ;;  %365 = vst.msk [vmem:[#allocation2 + $0x18] sm:$0xff] %vm19_vm0, %v348_v1  ;;  %373 = vst.msk [vmem:[#allocation2 + $0x58] sm:$0xff] %vm19_vm0, %v356_v2 }
 0x10a   :  { %v428_v8 = vmax.f32 %v412_v0, 0.0  ;;  %v413_v10 = vadd.f32 %v797_v50, %v390_v6 }
 0x10b   :  { %v572_v13 = vpack.c.bf16 %v420_v7, %v420_v7  ;;  %v421_v15 = vmax.f32 %v405_v9, 0.0 }
 0x10c   :  { %v580_v14 = vpack.c.bf16 %v428_v8, %v428_v8  ;;  %v429_v16 = vmax.f32 %v413_v10, 0.0  ;;  %v298_v17 = vpop.f32.mrb[8].mxu0  ;;  %v330_v18 = vpop.f32.mrb[8].mxu1 }
 0x10d   :  { %501 = vst.msk [vmem:[%s894_s3] sm:$0xf] %vm500_vm4, %v572_v13  ;;  %v573_v21 = vpack.c.bf16 %v421_v15, %v421_v15  ;;  %v349_v23 = vadd.f32 %v298_v17, %v40_v11  ;;  %v357_v24 = vadd.f32 %v330_v18, %v48_v12  ;;  %v300_v25 = vpop.f32.mrb[9].mxu0  ;;  %v332_v26 = vpop.f32.mrb[9].mxu1 }
 0x10e   :  { %509 = vst.msk [vmem:[%s894_s3 + $0x20] sm:$0xf] %vm500_vm4, %v580_v14  ;;  %v581_v22 = vpack.c.bf16 %v429_v16, %v429_v16  ;;  %v383_v27 = vld [vmem:[#allocation2 + $0x10] sm:$0xff]  ;;  %v301_v29 = vpop.f32.mrb[10].mxu0  ;;  %v333_v30 = vpop.f32.mrb[10].mxu1 }
 0x10f   :  { %v391_v28 = vld [vmem:[#allocation2 + $0x50] sm:$0xff]  ;;  %502 = vst.msk [vmem:[%s894_s3 + $0x4] sm:$0xf] %vm500_vm4, %v573_v21  ;;  %v406_v31 = vadd.f32 %v797_v50, %v383_v27  ;;  %v350_v33 = vadd.f32 %v301_v29, %v41_v19  ;;  %v358_v34 = vadd.f32 %v333_v30, %v49_v20  ;;  %v303_v35 = vpop.f32.mrb[11].mxu0  ;;  %v335_v36 = vpop.f32.mrb[11].mxu1 }
 0x110   :  { %510 = vst.msk [vmem:[%s894_s3 + $0x24] sm:$0xf] %vm500_vm4, %v581_v22  ;;  %v414_v32 = vadd.f32 %v797_v50, %v391_v28  ;;  %v384_v37 = vld [vmem:[#allocation2 + $0x18] sm:$0xff] }
 0x111   :  { %366 = vst.msk [vmem:[#allocation2 + $0x20] sm:$0xff] %vm19_vm0, %v349_v23  ;;  %374 = vst.msk [vmem:[#allocation2 + $0x60] sm:$0xff] %vm19_vm0, %v357_v24  ;;  %v392_v38 = vld [vmem:[#allocation2 + $0x58] sm:$0xff]  ;;  %v422_v39 = vmax.f32 %v406_v31, 0.0  ;;  %v407_v41 = vadd.f32 %v797_v50, %v384_v37 }
 0x112   :  { %v430_v40 = vmax.f32 %v414_v32, 0.0  ;;  %v415_v42 = vadd.f32 %v797_v50, %v392_v38  ;;  %367 = vst.msk [vmem:[#allocation2 + $0x28] sm:$0xff] %vm19_vm0, %v350_v33  ;;  %375 = vst.msk [vmem:[#allocation2 + $0x68] sm:$0xff] %vm19_vm0, %v358_v34 }
 0x113   :  { %v574_v45 = vpack.c.bf16 %v422_v39, %v422_v39  ;;  %v423_v47 = vmax.f32 %v407_v41, 0.0 }
 0x114   :  { %v582_v46 = vpack.c.bf16 %v430_v40, %v430_v40  ;;  %v431_v48 = vmax.f32 %v415_v42, 0.0  ;;  %v306_v49 = vpop.f32.mrb[12].mxu0  ;;  %v338_v51 = vpop.f32.mrb[12].mxu1 }
 0x115   :  { %503 = vst.msk [vmem:[%s894_s3 + $0x8] sm:$0xf] %vm500_vm4, %v574_v45  ;;  %v575_v54 = vpack.c.bf16 %v423_v47, %v423_v47  ;;  %v351_v56 = vadd.f32 %v306_v49, %v42_v43  ;;  %v359_v57 = vadd.f32 %v338_v51, %v50_v44  ;;  %v308_v58 = vpop.f32.mrb[13].mxu0  ;;  %v340_v59 = vpop.f32.mrb[13].mxu1 }
 0x116   :  { %511 = vst.msk [vmem:[%s894_s3 + $0x28] sm:$0xf] %vm500_vm4, %v582_v46  ;;  %v583_v55 = vpack.c.bf16 %v431_v48, %v431_v48  ;;  %v309_v62 = vpop.f32.mrb[14].mxu0  ;;  %v341_v63 = vpop.f32.mrb[14].mxu1 }
 0x117   :  { %504 = vst.msk [vmem:[%s894_s3 + $0xc] sm:$0xf] %vm500_vm4, %v575_v54  ;;  %v352_v2 = vadd.f32 %v309_v62, %v43_v52  ;;  %v360_v3 = vadd.f32 %v341_v63, %v51_v53  ;;  %v311_v4 = vpop.f32.mrb[15].mxu0  ;;  %v343_v5 = vpop.f32.mrb[15].mxu1 }
 0x118   :  { %v385_v60 = vld [vmem:[#allocation2 + $0x20] sm:$0xff]  ;;  %512 = vst.msk [vmem:[%s894_s3 + $0x2c] sm:$0xf] %vm500_vm4, %v583_v55 }
 0x119   :  { %v393_v61 = vld [vmem:[#allocation2 + $0x60] sm:$0xff]  ;;  %v408_v0 = vadd.f32 %v797_v50, %v385_v60  ;;  %368 = vst.msk [vmem:[#allocation2 + $0x30] sm:$0xff] %vm19_vm0, %v351_v56  ;;  %376 = vst.msk [vmem:[#allocation2 + $0x70] sm:$0xff] %vm19_vm0, %v359_v57  ;;  %v386_v6 = vld [vmem:[#allocation2 + $0x28] sm:$0xff] }
 0x11a   :  { %v416_v1 = vadd.f32 %v797_v50, %v393_v61  ;;  %v394_v7 = vld [vmem:[#allocation2 + $0x68] sm:$0xff]  ;;  %v409_v10 = vadd.f32 %v797_v50, %v386_v6  ;;  %369 = vst.msk [vmem:[#allocation2 + $0x38] sm:$0xff] %vm19_vm0, %v352_v2  ;;  %377 = vst.msk [vmem:[#allocation2 + $0x78] sm:$0xff] %vm19_vm0, %v360_v3 }
 0x11b   :  { %v424_v8 = vmax.f32 %v408_v0, 0.0  ;;  %v417_v11 = vadd.f32 %v797_v50, %v394_v7 }
 0x11c   :  { %v432_v9 = vmax.f32 %v416_v1, 0.0  ;;  %v425_v14 = vmax.f32 %v409_v10, 0.0 }
 0x11d   :  { %v576_v12 = vpack.c.bf16 %v424_v8, %v424_v8  ;;  %v433_v15 = vmax.f32 %v417_v11, 0.0 }
 0x11e   :  { %v584_v13 = vpack.c.bf16 %v432_v9, %v432_v9  ;;  %v577_v16 = vpack.c.bf16 %v425_v14, %v425_v14 }
 0x11f   :  { %505 = vst.msk [vmem:[%s894_s3 + $0x10] sm:$0xf] %vm500_vm4, %v576_v12  ;;  %v585_v17 = vpack.c.bf16 %v433_v15, %v433_v15 }
 0x120   :  { %513 = vst.msk [vmem:[%s894_s3 + $0x30] sm:$0xf] %vm500_vm4, %v584_v13  ;;  %v387_v18 = vld [vmem:[#allocation2 + $0x30] sm:$0xff]  ;;  %506 = vst.msk [vmem:[%s894_s3 + $0x14] sm:$0xf] %vm500_vm4, %v577_v16 }
 0x121   :  { %v395_v19 = vld [vmem:[#allocation2 + $0x70] sm:$0xff]  ;;  %514 = vst.msk [vmem:[%s894_s3 + $0x34] sm:$0xf] %vm500_vm4, %v585_v17  ;;  %v410_v20 = vadd.f32 %v797_v50, %v387_v18  ;;  %v388_v22 = vld [vmem:[#allocation2 + $0x38] sm:$0xff] }
 0x122   :  { %v418_v21 = vadd.f32 %v797_v50, %v395_v19  ;;  %v396_v23 = vld [vmem:[#allocation2 + $0x78] sm:$0xff]  ;;  %v411_v26 = vadd.f32 %v797_v50, %v388_v22 }
 0x123   :  { %v426_v24 = vmax.f32 %v410_v20, 0.0  ;;  %v419_v27 = vadd.f32 %v797_v50, %v396_v23 }
 0x124   :  { %v434_v25 = vmax.f32 %v418_v21, 0.0  ;;  %v427_v30 = vmax.f32 %v411_v26, 0.0 }
 0x125   :  { %v578_v28 = vpack.c.bf16 %v426_v24, %v426_v24  ;;  %v435_v31 = vmax.f32 %v419_v27, 0.0 }
 0x126   :  { %v586_v29 = vpack.c.bf16 %v434_v25, %v434_v25  ;;  %v579_v32 = vpack.c.bf16 %v427_v30, %v427_v30 }
 0x127   :  { %507 = vst.msk [vmem:[%s894_s3 + $0x18] sm:$0xf] %vm500_vm4, %v578_v28  ;;  %v587_v33 = vpack.c.bf16 %v435_v31, %v435_v31 }
 0x128   :  { %515 = vst.msk [vmem:[%s894_s3 + $0x38] sm:$0xf] %vm500_vm4, %v586_v29  ;;  %508 = vst.msk [vmem:[%s894_s3 + $0x1c] sm:$0xf] %vm500_vm4, %v579_v32 }
 0x129   :  { %516 = vst.msk [vmem:[%s894_s3 + $0x3c] sm:$0xf] %vm500_vm4, %v587_v33 }

// kernel: _lambda_.27
= control target key start
LH: loop header
LB: loop body
LE: loop exit
PB: predicated region body
PF: predicated region fallthrough
CT: control target
= control target key end

     0   :  { %vm50_vm0 = vcmask 1043456   ;;  %vm43_vm1 = vcmask 64512   ;;  %vm19_vm2 = vcmask 261120   ;;  %v181_v1 = vmov 0.0   ;;  %s234_s1 = inlined_call_operand.vmem [shape: bf16[8,32], index: 1, kind: input, shape index: {}]   ;;  %s235_s0 = inlined_call_operand.vmem [shape: bf16[32,8], index: 0, kind: input, shape index: {}]   ;;  %s236_s2 = inlined_call_operand.vmem [shape: f32[1,32], index: 2, kind: input, shape index: {}]   ;;  %s237_s3 = inlined_call_operand.vmem [shape: bf16[32,32], index: 3, kind: output, shape index: {}]  }
   0x1   :  { %v32_v0 = vld [vmem:[%s234_s1] sm:$0xf]  ;;  %22 = vst.msk [vmem:[#allocation2 + $0x10] sm:$0xff] %vm19_vm2, %v181_v1  ;;  %20 = vst.msk [vmem:[#allocation2] sm:$0xff] %vm19_vm2, %v181_v1  ;;  %v180_v4 = vld [vmem:[%s235_s0 + $0x8] sm:$0xff]   ;;  %vm146_vm3 = vcmask 257024  }
   0x2   :  { %21 = vst.msk [vmem:[#allocation2 + $0x8] sm:$0xff] %vm19_vm2, %v181_v1  ;;  %23 = vst.msk [vmem:[#allocation2 + $0x18] sm:$0xff] %vm19_vm2, %v181_v1  ;;  %177 = vmatprep.subr.msk.bf16.mxu0 %vm50_vm0, %v32_v0  ;;  %v52_v2 = vsel %vm50_vm0, %v32_v0, 0  ;;  %v179_v3 = vld [vmem:[%s235_s0] sm:$0xff]  }
   0x3   :  { %172 = vmatpush3.bf16.msra.mxu0 %v52_v2  ;;  %173 = vmatprep.mubr.msk.bf16.mxu0 %vm43_vm1, %v179_v3  ;;  %v159_v17 = vld [vmem:[%s236_s2] ss:$0 sm:$0xff] }
   0x6   :  { %174 = vmatmul.mubr.msk.bf16.vlgmr.msra.gmra.mrb[0].mxu0 %vm43_vm1, %v180_v4 }
   0x8   :  { %v26_v5 = vld [vmem:[#allocation2 + $0x10] sm:$0xff]  ;;  %v24_v6 = vld [vmem:[#allocation2] sm:$0xff] }
   0x9   :  { %v27_v8 = vld [vmem:[#allocation2 + $0x18] sm:$0xff]  ;;  %v25_v11 = vld [vmem:[#allocation2 + $0x8] sm:$0xff] }
  0xd9   :  { %v175_v7 = vpop.f32.mrb[0].mxu0 }
  0xda   :  { %v105_v9 = vadd.f32 %v175_v7, %v26_v5  ;;  %v88_v10 = vpop.f32.mrb[1].mxu0 }
  0xdb   :  { %v103_v12 = vadd.f32 %v88_v10, %v24_v6  ;;  %v176_v13 = vpop.f32.mrb[2].mxu0 }
  0xdc   :  { %110 = vst.msk [vmem:[#allocation2 + $0x10] sm:$0xff] %vm19_vm2, %v105_v9  ;;  %v106_v14 = vadd.f32 %v176_v13, %v27_v8  ;;  %v91_v15 = vpop.f32.mrb[3].mxu0 }
  0xdd   :  { %108 = vst.msk [vmem:[#allocation2] sm:$0xff] %vm19_vm2, %v103_v12  ;;  %v104_v16 = vadd.f32 %v91_v15, %v25_v11 }
  0xde   :  { %111 = vst.msk [vmem:[#allocation2 + $0x18] sm:$0xff] %vm19_vm2, %v106_v14 }
  0xdf   :  { %109 = vst.msk [vmem:[#allocation2 + $0x8] sm:$0xff] %vm19_vm2, %v104_v16 }
  0xe3   :  { %v117_v18 = vld [vmem:[#allocation2 + $0x10] sm:$0xff] }
  0xe4   :  { %v128_v19 = vadd.f32 %v159_v17, %v117_v18  ;;  %v115_v20 = vld [vmem:[#allocation2] sm:$0xff] }
  0xe5   :  { %v126_v21 = vadd.f32 %v159_v17, %v115_v20  ;;  %v118_v22 = vld [vmem:[#allocation2 + $0x18] sm:$0xff] }
  0xe6   :  { %v166_v23 = vpack.c.bf16 %v128_v19, %v128_v19  ;;  %v129_v24 = vadd.f32 %v159_v17, %v118_v22  ;;  %v116_v25 = vld [vmem:[#allocation2 + $0x8] sm:$0xff] }
  0xe7   :  { %v164_v26 = vpack.c.bf16 %v126_v21, %v126_v21  ;;  %v127_v27 = vadd.f32 %v159_v17, %v116_v25 }
  0xe8   :  { %149 = vst.msk [vmem:[%s237_s3 + $0x8] sm:$0xf] %vm146_vm3, %v166_v23  ;;  %v167_v28 = vpack.c.bf16 %v129_v24, %v129_v24 }
  0xe9   :  { %147 = vst.msk [vmem:[%s237_s3] sm:$0xf] %vm146_vm3, %v164_v26  ;;  %v165_v29 = vpack.c.bf16 %v127_v27, %v127_v27 }
  0xea   :  { %150 = vst.msk [vmem:[%s237_s3 + $0xc] sm:$0xf] %vm146_vm3, %v167_v28 }
  0xeb   :  { %148 = vst.msk [vmem:[%s237_s3 + $0x4] sm:$0xf] %vm146_vm3, %v165_v29 }

// kernel: _lambda_.30
= control target key start
LH: loop header
LB: loop body
LE: loop exit
PB: predicated region body
PF: predicated region fallthrough
CT: control target
= control target key end

     0   :  { %vm53_vm0 = vcmask 1043456   ;;  %vm46_vm1 = vcmask 64512   ;;  %vm22_vm2 = vcmask 261120   ;;  %v209_v1 = vmov 0.0   ;;  %s273_s1 = inlined_call_operand.vmem [shape: bf16[8,32], index: 1, kind: input, shape index: {}]   ;;  %s274_s0 = inlined_call_operand.vmem [shape: bf16[32,8], index: 0, kind: input, shape index: {}]   ;;  %s275_s3 = inlined_call_operand.vmem [shape: bf16[32,32], index: 3, kind: input, shape index: {}]   ;;  %s276_s2 = inlined_call_operand.vmem [shape: f32[1,32], index: 2, kind: input, shape index: {}]   ;;  %s277_s4 = inlined_call_operand.vmem [shape: bf16[32,32], index: 4, kind: output, shape index: {}]  }
   0x1   :  { %v35_v0 = vld [vmem:[%s273_s1] sm:$0xf]  ;;  %25 = vst.msk [vmem:[#allocation2 + $0x10] sm:$0xff] %vm22_vm2, %v209_v1  ;;  %23 = vst.msk [vmem:[#allocation2] sm:$0xff] %vm22_vm2, %v209_v1  ;;  %v208_v4 = vld [vmem:[%s274_s0 + $0x8] sm:$0xff]   ;;  %vm165_vm3 = vcmask 257024  }
   0x2   :  { %24 = vst.msk [vmem:[#allocation2 + $0x8] sm:$0xff] %vm22_vm2, %v209_v1  ;;  %26 = vst.msk [vmem:[#allocation2 + $0x18] sm:$0xff] %vm22_vm2, %v209_v1  ;;  %205 = vmatprep.subr.msk.bf16.mxu0 %vm53_vm0, %v35_v0  ;;  %v55_v2 = vsel %vm53_vm0, %v35_v0, 0  ;;  %v207_v3 = vld [vmem:[%s274_s0] sm:$0xff]   ;;  %v195_v17 = vld [vmem:[%s275_s3 + $0x8] sm:$0xff]  }
   0x3   :  { %200 = vmatpush3.bf16.msra.mxu0 %v55_v2  ;;  %201 = vmatprep.mubr.msk.bf16.mxu0 %vm46_vm1, %v207_v3  ;;  %v188_v18 = vld [vmem:[%s275_s3] sm:$0xff]   ;;  %v193_v20 = vunpack.c.l.bf16 %v195_v17  ;;  %v194_v25 = vunpack.c.h.bf16 %v195_v17 }
   0x4   :  { %v178_v19 = vld [vmem:[%s276_s2] ss:$0 sm:$0xff]  ;;  %v189_v22 = vunpack.c.l.bf16 %v188_v18  ;;  %v190_v28 = vunpack.c.h.bf16 %v188_v18 }
   0x6   :  { %202 = vmatmul.mubr.msk.bf16.vlgmr.msra.gmra.mrb[0].mxu0 %vm46_vm1, %v208_v4 }
   0x8   :  { %v29_v5 = vld [vmem:[#allocation2 + $0x10] sm:$0xff]  ;;  %v27_v6 = vld [vmem:[#allocation2] sm:$0xff] }
   0x9   :  { %v30_v8 = vld [vmem:[#allocation2 + $0x18] sm:$0xff]  ;;  %v28_v11 = vld [vmem:[#allocation2 + $0x8] sm:$0xff] }
  0xd9   :  { %v203_v7 = vpop.f32.mrb[0].mxu0 }
  0xda   :  { %v108_v9 = vadd.f32 %v203_v7, %v29_v5  ;;  %v91_v10 = vpop.f32.mrb[1].mxu0 }
  0xdb   :  { %v106_v12 = vadd.f32 %v91_v10, %v27_v6  ;;  %v204_v13 = vpop.f32.mrb[2].mxu0 }
  0xdc   :  { %113 = vst.msk [vmem:[#allocation2 + $0x10] sm:$0xff] %vm22_vm2, %v108_v9  ;;  %v109_v14 = vadd.f32 %v204_v13, %v30_v8  ;;  %v94_v15 = vpop.f32.mrb[3].mxu0 }
  0xdd   :  { %111 = vst.msk [vmem:[#allocation2] sm:$0xff] %vm22_vm2, %v106_v12  ;;  %v107_v16 = vadd.f32 %v94_v15, %v28_v11 }
  0xde   :  { %114 = vst.msk [vmem:[#allocation2 + $0x18] sm:$0xff] %vm22_vm2, %v109_v14 }
  0xdf   :  { %112 = vst.msk [vmem:[#allocation2 + $0x8] sm:$0xff] %vm22_vm2, %v107_v16 }
  0xe3   :  { %v120_v21 = vld [vmem:[#allocation2 + $0x10] sm:$0xff] }
  0xe4   :  { %v131_v23 = vadd.f32 %v178_v19, %v120_v21  ;;  %v118_v24 = vld [vmem:[#allocation2] sm:$0xff] }
  0xe5   :  { %v129_v26 = vadd.f32 %v178_v19, %v118_v24  ;;  %v121_v27 = vld [vmem:[#allocation2 + $0x18] sm:$0xff] }
  0xe6   :  { %v143_v29 = vadd.f32 %v193_v20, %v131_v23  ;;  %v132_v30 = vadd.f32 %v178_v19, %v121_v27  ;;  %v119_v31 = vld [vmem:[#allocation2 + $0x8] sm:$0xff] }
  0xe7   :  { %v141_v32 = vadd.f32 %v189_v22, %v129_v26  ;;  %v130_v33 = vadd.f32 %v178_v19, %v119_v31 }
  0xe8   :  { %v147_v34 = vmax.f32 %v143_v29, 0.0  ;;  %v144_v35 = vadd.f32 %v194_v25, %v132_v30 }
  0xe9   :  { %v145_v36 = vmax.f32 %v141_v32, 0.0  ;;  %v142_v37 = vadd.f32 %v190_v28, %v130_v33 }
  0xea   :  { %v185_v38 = vpack.c.bf16 %v147_v34, %v147_v34  ;;  %v148_v39 = vmax.f32 %v144_v35, 0.0 }
  0xeb   :  { %v183_v40 = vpack.c.bf16 %v145_v36, %v145_v36  ;;  %v146_v41 = vmax.f32 %v142_v37, 0.0 }
  0xec   :  { %168 = vst.msk [vmem:[%s277_s4 + $0x8] sm:$0xf] %vm165_vm3, %v185_v38  ;;  %v186_v42 = vpack.c.bf16 %v148_v39, %v148_v39 }
  0xed   :  { %166 = vst.msk [vmem:[%s277_s4] sm:$0xf] %vm165_vm3, %v183_v40  ;;  %v184_v43 = vpack.c.bf16 %v146_v41, %v146_v41 }
  0xee   :  { %169 = vst.msk [vmem:[%s277_s4 + $0xc] sm:$0xf] %vm165_vm3, %v186_v42 }
  0xef   :  { %167 = vst.msk [vmem:[%s277_s4 + $0x4] sm:$0xf] %vm165_vm3, %v184_v43 }

// kernel: _lambda_.29
= control target key start
LH: loop header
LB: loop body
LE: loop exit
PB: predicated region body
PF: predicated region fallthrough
CT: control target
= control target key end

     0   :  { %s1379_s12 = smov 0   ;;  %s1381_s13 = smov 0   ;;  %s1534_s0 = inlined_call_operand.vmem [shape: bf16[2,42,8], index: 0, kind: input, shape index: {}]   ;;  %s1535_s1 = inlined_call_operand.vmem [shape: bf16[72,8], index: 1, kind: input, shape index: {}]   ;;  %s1536_s2 = inlined_call_operand.vmem [shape: f32[1,8], index: 2, kind: input, shape index: {}]   ;;  %s1537_s3 = inlined_call_operand.vmem [shape: bf16[2,24,8], index: 3, kind: output, shape index: {}]  }
   0x1   :  { %s1383_s14 = smov 0  }
   0x2 LB: > { %s22_s15 = sadd.s32 1, %s1353_s13  ;;  %p1153_p0 = scmp.ge.s32.totalorder %s1357_s14, 1  ;;  %s1357_s14 = sphi %s1383_s14, %s13_s14   ;;  %s1353_s13 = sphi %s1381_s13, %s1539_s13   ;;  %s1349_s12 = sphi %s1379_s12, %s1538_s12  }
   0x3   : > { %p23_p1 = scmp.ge.s32.totalorder %s22_s15, 2  ;;  %p168_p2 = scmp.lt.s32.totalorder %s1357_s14, 3 }
   0x5   : > { %s1541_s15 = smov (%p23_p1, %s22_s15), 0  ;;  %p169_p3 = pnand %p1153_p0, %p168_p2 }
   0x6   : > { %v226_v0 = vld [vmem:[%s1535_s1] sm:$0xf] (!%p169_p3)  ;;  %vm242_vm0 = vcmask (!%p169_p3), 1043456   ;;  %p202_p4 = scmp.lt.s32.totalorder (!%p169_p3), %s1349_s12, 1  ;;  %v301_v2 = vld [vmem:[%s1535_s1 + $0x4] sm:$0xf] (!%p169_p3) }
   0x7   : > { %172 = sbr.rel (%p169_p3) target bundleno = 330 (0x14a), region = 32  ;;  %1282 = vmatprep.subr.msk.bf16.mxu0 (!%p169_p3), %vm242_vm0, %v226_v0  ;;  %v244_v1 = vsel (!%p169_p3), %vm242_vm0, %v226_v0, 0  ;;  %1283 = vmatprep.subr.msk.bf16.mxu1 (!%p169_p3), %vm242_vm0, %v301_v2  ;;  %v335_v3 = vsel (!%p169_p3), %vm242_vm0, %v301_v2, 0  ;;  %v398_v4 = vld [vmem:[%s1535_s1 + $0x8] sm:$0xf] (!%p169_p3)  ;;  %vm235_vm1 = vcmask (!%p169_p3), 64512  }
   0x8   : > { %1229 = vmatpush3.bf16.msra.mxu0 (!%p169_p3), %v244_v1  ;;  %v483_v5 = vld [vmem:[%s1535_s1 + $0xc] sm:$0xf] (!%p169_p3)  ;;  %1235 = vmatpush3.bf16.msra.mxu1 (!%p169_p3), %v335_v3  ;;  %v420_v6 = vsel (!%p169_p3), %vm242_vm0, %v398_v4, 0  ;;  %vm409_vm2 = vcmask (!%p169_p3), 1046528   ;;  %v568_v7 = vld [vmem:[%s1535_s1 + $0x10] sm:$0xf] (!%p169_p3) }
   0x9   : > { %1284 = vmatprep.subr.msk.bf16.mxu0 (!%p169_p3), %vm242_vm0, %v398_v4  ;;  %1285 = vmatprep.subr.msk.bf16.mxu1 (!%p169_p3), %vm242_vm0, %v483_v5  ;;  %vm312_vm3 = vsmask.f32 (!%p169_p3), 7424  ;;  %v505_v9 = vsel (!%p169_p3), %vm242_vm0, %v483_v5, 0  ;;  %vm494_vm4 = vcmask (!%p169_p3), 1044480   ;;  %v604_v13 = vsel (!%p169_p3), %vm242_vm0, %v568_v7, 0 }
   0xa   : > { %v666_v14 = vld [vmem:[%s1535_s1 + $0x14] sm:$0xf] (!%p169_p3)  ;;  %v745_v25 = vld [vmem:[%s1535_s1 + $0x18] sm:$0xf] (!%p169_p3)  ;;  %vm579_vm5 = vsmask.f32 (!%p169_p3), 4352 }
   0xb   : > { %v682_v28 = vsel (!%p169_p3), %vm242_vm0, %v666_v14, 0  ;;  %v767_v40 = vsel (!%p169_p3), %vm242_vm0, %v745_v25, 0  ;;  %vm756_vm6 = vcmask (!%p169_p3), 1045504   ;;  %v830_v57 = vld [vmem:[%s1535_s1 + $0x1c] sm:$0xf] (!%p169_p3)  ;;  %vm1038_vm8 = vcmask (!%p169_p3), 60416  }
   0xc   : > { %v929_v58 = vld [vmem:[%s1535_s1 + $0x20] sm:$0xf] (!%p169_p3)  ;;  %vm841_vm7 = vsmask.f32 (!%p169_p3), 5376 }
   0xe   : > { %s1543_s12 = smov (!%p202_p4, %s1349_s12), 1 }
   0xf   : > { %s1291_s24 = smul.u32 24, %s1543_s12 }
  0x10   : > { %s1292_s17 = smul.u32 12, %s1543_s12 }
  0x11   : > { %s1421_s27 = scalar_lea.vmem %s1534_s0, %s1291_s24 }
  0x12   : > { %v1317_v8 = vld [vmem:[%s1421_s27] sm:$0xff]   ;;  %v1318_v10 = vld [vmem:[%s1421_s27 + $0x8] ss:$0 sps:$4 sm:$0xff]   ;;  %v1330_v49 = vld [vmem:[%s1421_s27 + $0xc] sm:$0x3f]   ;;  %s221_s20 = scalar_lea.vmem %s1537_s3, %s1292_s17 }
  0x13   : > { %1230 = vmatprep.mubr.msk.bf16.mxu0 %vm235_vm1, %v1317_v8  ;;  %v1319_v11 = vld [vmem:[%s1421_s27] sm:$0xff]   ;;  %v1320_v12 = vld [vmem:[%s1421_s27 + $0x8] sm:$0x1f]   ;;  %v758_v53 = vrot.slane %v1330_v49, 2 }
  0x14   : > { %1231 = vmatmul.mubr.msk.bf16.vlgmr.msra.gmra.mrb[0].mxu0 %vm235_vm1, %v1318_v10  ;;  %v314_v15 = vshrl.u32 %v1319_v11, 16  ;;  %v316_v16 = vshll.u32 %v1319_v11, 16  ;;  %v321_v17 = vshll.u32 %v1320_v12, 16  ;;  %v325_v18 = vshrl.u32 %v1320_v12, 16  ;;  %v1321_v19 = vld [vmem:[%s1421_s27] sm:$0xfe]  }
  0x15   : > { %1241 = vmatpush3.bf16.msra.mxu0 %v420_v6  ;;  %v1322_v20 = vld [vmem:[%s1421_s27 + $0x8] sm:$0x1f]   ;;  %v410_v23 = vrot.slane %v1321_v19, 1  ;;  %v1323_v27 = vld [vmem:[%s1421_s27] sm:$0xf8]   ;;  %v866_v11 = vsel %vm242_vm0, %v830_v57, 0 }
  0x16   : > { %1286 = vmatprep.subr.msk.bf16.mxu0 %vm242_vm0, %v568_v7  ;;  %v318_v21 = vrot.slane %v316_v16, 1  ;;  %v323_v22 = vrot.slane %v321_v17, 1  ;;  %v1326_v24 = vld [vmem:[%s1421_s27 + $0x8] sm:$0xff]   ;;  %v411_v26 = vrot.slane %v1322_v20, 1  ;;  %v495_v33 = vrot.slane %v1323_v27, 3 }
  0x17   : > { %v1324_v31 = vld [vmem:[%s1421_s27 + $0x8] sm:$0x7f]   ;;  %v589_v34 = vshrl.u32 %v1326_v24, 16  ;;  %v1325_v37 = vld [vmem:[%s1421_s27] sm:$0xf8]   ;;  %v592_v38 = vshll.u32 %v1326_v24, 16 }
  0x18   : > { %v319_v29 = vor.u32 %v318_v21, %v314_v15  ;;  %v327_v30 = vor.u32 %v325_v18, %v323_v22  ;;  %v412_v32 = vsel %vm409_vm2, %v410_v23, %v411_v26  ;;  %v496_v36 = vrot.slane %v1324_v31, 3  ;;  %v1329_v48 = vld [vmem:[%s1421_s27 + $0x4] sm:$0xfc]   ;;  %v1332_v55 = vld [vmem:[%s1421_s27 + $0xc] sm:$0x7f]  }
  0x19   : > { %1242 = vmatprep.mubr.msk.bf16.mxu0 %vm235_vm1, %v412_v32  ;;  %v591_v39 = vrot.slane %v589_v34, 3  ;;  %v581_v42 = vshrl.u32 %v1325_v37, 16  ;;  %v584_v43 = vshll.u32 %v1325_v37, 16  ;;  %v594_v44 = vrot.slane %v592_v38, 4  ;;  %v1327_v52 = vld [vmem:[%s1421_s27 + $0x4] sm:$0xff]  }
  0x1a   : > { %v324_v35 = vsel %vm312_vm3, %v319_v29, %v323_v22  ;;  %v497_v41 = vsel %vm494_vm4, %v495_v33, %v496_v36  ;;  %v757_v51 = vrot.slane %v1329_v48, 2  ;;  %v1331_v54 = vld [vmem:[%s1421_s27 + $0x4] sm:$0xfc]   ;;  %v851_v62 = vshrl.u32 %v1332_v55, 16  ;;  %v1334_v1 = vld [vmem:[%s1421_s27 + $0xc] sm:$0x7f]  }
  0x1b   : > { %1236 = vmatprep.mubr.msk.bf16.mxu1 %vm235_vm1, %v324_v35  ;;  %v583_v45 = vrot.slane %v581_v42, 3  ;;  %v586_v46 = vrot.slane %v584_v43, 4  ;;  %v595_v47 = vor.u32 %v594_v44, %v591_v39  ;;  %v843_v60 = vshrl.u32 %v1331_v54, 16  ;;  %v1333_v0 = vld [vmem:[%s1421_s27 + $0x4] sm:$0xf8]  }
  0x1c   : > { %1243 = vmatmul.mubr.msk.bf16.vlgmr.msra.gmra.mrb[4].mxu0 %vm235_vm1, %v411_v26  ;;  %1237 = vmatmul.mubr.msk.bf16.vlgmr.msra.gmra.mrb[0].mxu1 %vm235_vm1, %v327_v30  ;;  %v759_v59 = vsel %vm756_vm6, %v757_v51, %v758_v53  ;;  %v846_v61 = vshll.u32 %v1331_v54, 16  ;;  %v854_v63 = vshll.u32 %v1332_v55, 16  ;;  %v853_v4 = vrot.slane %v851_v62, 2 }
  0x1d   : > { %1253 = vmatpush3.bf16.msra.mxu0 %v604_v13  ;;  %1247 = vmatpush3.bf16.msra.mxu1 %v505_v9  ;;  %v587_v50 = vor.u32 %v586_v46, %v583_v45  ;;  %v845_v2 = vrot.slane %v843_v60, 2  ;;  %v940_v7 = vrot.slane %v1333_v0, 3  ;;  %v941_v8 = vrot.slane %v1334_v1, 3  ;;  %v1328_v9 = vld [vmem:[%s1421_s27 + $0xc] ss:$0 sps:$4 sm:$0xff]  }
  0x1e   : > { %1248 = vmatprep.mubr.msk.bf16.mxu1 %vm235_vm1, %v497_v41  ;;  %1287 = vmatprep.subr.msk.bf16.mxu1 %vm242_vm0, %v666_v14  ;;  %v848_v3 = vrot.slane %v846_v61, 3  ;;  %v856_v5 = vrot.slane %v854_v63, 3  ;;  %v950_v13 = vsel %vm242_vm0, %v929_v58, 0 }
  0x1f   : > { %1288 = vmatprep.subr.msk.bf16.mxu0 %vm242_vm0, %v745_v25  ;;  %v596_v56 = vsel %vm579_vm5, %v587_v50, %v595_v47  ;;  %v942_v14 = vsel %vm494_vm4, %v940_v7, %v941_v8 }
  0x20   : > { %1254 = vmatprep.mubr.msk.bf16.mxu0 %vm235_vm1, %v596_v56  ;;  %v849_v6 = vor.u32 %v848_v3, %v845_v2  ;;  %v857_v10 = vor.u32 %v856_v5, %v853_v4 }
  0x22   : > { %v858_v12 = vsel %vm841_vm7, %v849_v6, %v857_v10 }
  0x24   : > { %1249 = vmatmul.mubr.msk.bf16.vlgmr.msra.gmra.mrb[4].mxu1 %vm235_vm1, %v496_v36  ;;  %1255 = vmatmul.mubr.msk.bf16.vlgmr.msra.gmra.mrb[8].mxu0 %vm235_vm1, %v595_v47 }
  0x25   : > { %1259 = vmatpush3.bf16.msra.mxu1 %v682_v28  ;;  %1260 = vmatprep.mubr.msk.bf16.mxu1 %vm235_vm1, %v1327_v52 }
  0x26   : > { %1265 = vmatpush3.bf16.msra.mxu0 %v767_v40  ;;  %1266 = vmatprep.mubr.msk.bf16.mxu0 %vm235_vm1, %v759_v59 }
  0x27   : > { %1289 = vmatprep.subr.msk.bf16.mxu1 %vm242_vm0, %v830_v57  ;;  %1290 = vmatprep.subr.msk.bf16.mxu0 %vm242_vm0, %v929_v58 }
  0x2c   : > { %1261 = vmatmul.mubr.msk.bf16.vlgmr.msra.gmra.mrb[8].mxu1 %vm235_vm1, %v1328_v9  ;;  %1267 = vmatmul.mubr.msk.bf16.vlgmr.msra.gmra.mrb[12].mxu0 %vm235_vm1, %v758_v53 }
  0x2d   : > { %1271 = vmatpush3.bf16.msra.mxu1 %v866_v11  ;;  %1272 = vmatprep.mubr.msk.bf16.mxu1 %vm235_vm1, %v858_v12 }
  0x2e   : > { %1277 = vmatpush3.bf16.msra.mxu0 %v950_v13  ;;  %1278 = vmatprep.mubr.msk.bf16.mxu0 %vm235_vm1, %v942_v14 }
  0x34   : > { %1273 = vmatmul.mubr.msk.bf16.vlgmr.msra.gmra.mrb[12].mxu1 %vm235_vm1, %v857_v10  ;;  %1279 = vmatmul.mubr.msk.bf16.vlgmr.msra.gmra.mrb[16].mxu0 %vm235_vm1, %v941_v8 }
  0xe7   : > { %v1232_v15 = vpop.f32.mrb[0].mxu0 }
  0xe8   : > { %296 = vst.msk [vmem:[#allocation2 + $0x10] sm:$0xff] %vm235_vm1, %v1232_v15  ;;  %v280_v16 = vpop.f32.mrb[1].mxu0 }
  0xe9   : > { %294 = vst.msk [vmem:[#allocation2] sm:$0xff] %vm235_vm1, %v280_v16  ;;  %v1233_v17 = vpop.f32.mrb[2].mxu0 }
  0xea   : > { %v283_v18 = vpop.f32.mrb[3].mxu0 }
  0xeb   : > { %295 = vst.msk [vmem:[#allocation2 + $0x8] sm:$0xff] %vm235_vm1, %v283_v18 }
  0xef   : > { %v387_v19 = vld [vmem:[#allocation2 + $0x10] sm:$0xff]  ;;  %v1244_v21 = vpop.f32.mrb[4].mxu0  ;;  %v1238_v22 = vpop.f32.mrb[0].mxu1 }
  0xf0   : > { %v385_v20 = vld [vmem:[#allocation2] sm:$0xff]  ;;  %v456_v23 = vpop.f32.mrb[5].mxu0  ;;  %v390_v24 = vadd.f32 %v1238_v22, %v387_v19  ;;  %v371_v25 = vpop.f32.mrb[1].mxu1 }
  0xf1   : > { %v1245_v27 = vpop.f32.mrb[6].mxu0  ;;  %v388_v28 = vadd.f32 %v385_v20, %v371_v25  ;;  %v1239_v29 = vpop.f32.mrb[2].mxu1 }
  0xf2   : > { %v386_v26 = vld [vmem:[#allocation2 + $0x8] sm:$0xff]  ;;  %v459_v30 = vpop.f32.mrb[7].mxu0  ;;  %393 = vst.msk [vmem:[#allocation2 + $0x10] sm:$0xff] %vm235_vm1, %v390_v24  ;;  %v374_v31 = vpop.f32.mrb[3].mxu1 }
  0xf3   : > { %391 = vst.msk [vmem:[#allocation2] sm:$0xff] %vm235_vm1, %v388_v28  ;;  %v389_v32 = vadd.f32 %v386_v26, %v374_v31 }
  0xf5   : > { %392 = vst.msk [vmem:[#allocation2 + $0x8] sm:$0xff] %vm235_vm1, %v389_v32 }
  0xf7   : > { %v1250_v33 = vpop.f32.mrb[4].mxu1  ;;  %v1256_v34 = vpop.f32.mrb[8].mxu0 }
  0xf8   : > { %v541_v35 = vpop.f32.mrb[5].mxu1  ;;  %v640_v36 = vpop.f32.mrb[9].mxu0 }
  0xf9   : > { %v472_v37 = vld [vmem:[#allocation2 + $0x10] sm:$0xff]  ;;  %v1251_v38 = vpop.f32.mrb[6].mxu1  ;;  %v1257_v39 = vpop.f32.mrb[10].mxu0 }
  0xfa   : > { %v475_v40 = vadd.f32 %v1244_v21, %v472_v37  ;;  %v470_v41 = vld [vmem:[#allocation2] sm:$0xff]  ;;  %v544_v42 = vpop.f32.mrb[7].mxu1  ;;  %v643_v43 = vpop.f32.mrb[11].mxu0 }
  0xfb   : > { %v473_v44 = vadd.f32 %v470_v41, %v456_v23 }
  0xfc   : > { %478 = vst.msk [vmem:[#allocation2 + $0x10] sm:$0xff] %vm235_vm1, %v475_v40  ;;  %v471_v45 = vld [vmem:[#allocation2 + $0x8] sm:$0xff] }
  0xfd   : > { %476 = vst.msk [vmem:[#allocation2] sm:$0xff] %vm235_vm1, %v473_v44  ;;  %v474_v46 = vadd.f32 %v471_v45, %v459_v30 }
  0xff   : > { %477 = vst.msk [vmem:[#allocation2 + $0x8] sm:$0xff] %vm235_vm1, %v474_v46  ;;  %v1262_v47 = vpop.f32.mrb[8].mxu1  ;;  %v1268_v48 = vpop.f32.mrb[12].mxu0 }
 0x100   : > { %v718_v49 = vpop.f32.mrb[9].mxu1  ;;  %v803_v50 = vpop.f32.mrb[13].mxu0 }
 0x101   : > { %v1263_v51 = vpop.f32.mrb[10].mxu1  ;;  %v1269_v52 = vpop.f32.mrb[14].mxu0 }
 0x102   : > { %v721_v53 = vpop.f32.mrb[11].mxu1  ;;  %v806_v54 = vpop.f32.mrb[15].mxu0 }
 0x103   : > { %v557_v55 = vld [vmem:[#allocation2 + $0x10] sm:$0xff] }
 0x104   : > { %v560_v56 = vadd.f32 %v1250_v33, %v557_v55  ;;  %v555_v57 = vld [vmem:[#allocation2] sm:$0xff] }
 0x105   : > { %v558_v58 = vadd.f32 %v555_v57, %v541_v35  ;;  %v1192_v35 = vld [vmem:[%s1536_s2] ss:$0 sm:$0xff] }
 0x106   : > { %563 = vst.msk [vmem:[#allocation2 + $0x10] sm:$0xff] %vm235_vm1, %v560_v56  ;;  %v556_v59 = vld [vmem:[#allocation2 + $0x8] sm:$0xff] }
 0x107   : > { %561 = vst.msk [vmem:[#allocation2] sm:$0xff] %vm235_vm1, %v558_v58  ;;  %v559_v60 = vadd.f32 %v556_v59, %v544_v42  ;;  %v1274_v61 = vpop.f32.mrb[12].mxu1  ;;  %v1280_v62 = vpop.f32.mrb[16].mxu0 }
 0x108   : > { %v902_v63 = vpop.f32.mrb[13].mxu1  ;;  %v986_v0 = vpop.f32.mrb[17].mxu0 }
 0x109   : > { %562 = vst.msk [vmem:[#allocation2 + $0x8] sm:$0xff] %vm235_vm1, %v559_v60  ;;  %v1275_v1 = vpop.f32.mrb[14].mxu1  ;;  %v1281_v2 = vpop.f32.mrb[18].mxu0 }
 0x10a   : > { %v905_v3 = vpop.f32.mrb[15].mxu1  ;;  %v989_v4 = vpop.f32.mrb[19].mxu0 }
 0x10d   : > { %v656_v5 = vld [vmem:[#allocation2 + $0x10] sm:$0xff] }
 0x10e   : > { %v659_v6 = vadd.f32 %v1256_v34, %v656_v5  ;;  %v654_v7 = vld [vmem:[#allocation2] sm:$0xff] }
 0x10f   : > { %v657_v8 = vadd.f32 %v654_v7, %v640_v36 }
 0x110   : > { %662 = vst.msk [vmem:[#allocation2 + $0x10] sm:$0xff] %vm235_vm1, %v659_v6  ;;  %v655_v9 = vld [vmem:[#allocation2 + $0x8] sm:$0xff] }
 0x111   : > { %660 = vst.msk [vmem:[#allocation2] sm:$0xff] %vm235_vm1, %v657_v8  ;;  %v658_v10 = vadd.f32 %v655_v9, %v643_v43 }
 0x113   : > { %661 = vst.msk [vmem:[#allocation2 + $0x8] sm:$0xff] %vm235_vm1, %v658_v10 }
 0x117   : > { %v734_v11 = vld [vmem:[#allocation2 + $0x10] sm:$0xff] }
 0x118   : > { %v737_v12 = vadd.f32 %v1262_v47, %v734_v11  ;;  %v732_v13 = vld [vmem:[#allocation2] sm:$0xff] }
 0x119   : > { %v735_v14 = vadd.f32 %v732_v13, %v718_v49 }
 0x11a   : > { %740 = vst.msk [vmem:[#allocation2 + $0x10] sm:$0xff] %vm235_vm1, %v737_v12  ;;  %v733_v15 = vld [vmem:[#allocation2 + $0x8] sm:$0xff] }
 0x11b   : > { %738 = vst.msk [vmem:[#allocation2] sm:$0xff] %vm235_vm1, %v735_v14  ;;  %v736_v16 = vadd.f32 %v733_v15, %v721_v53 }
 0x11d   : > { %739 = vst.msk [vmem:[#allocation2 + $0x8] sm:$0xff] %vm235_vm1, %v736_v16 }
 0x121   : > { %v819_v17 = vld [vmem:[#allocation2 + $0x10] sm:$0xff] }
 0x122   : > { %v822_v18 = vadd.f32 %v1268_v48, %v819_v17  ;;  %v817_v19 = vld [vmem:[#allocation2] sm:$0xff] }
 0x123   : > { %v820_v20 = vadd.f32 %v817_v19, %v803_v50 }
 0x124   : > { %825 = vst.msk [vmem:[#allocation2 + $0x10] sm:$0xff] %vm235_vm1, %v822_v18  ;;  %v818_v21 = vld [vmem:[#allocation2 + $0x8] sm:$0xff] }
 0x125   : > { %823 = vst.msk [vmem:[#allocation2] sm:$0xff] %vm235_vm1, %v820_v20  ;;  %v821_v22 = vadd.f32 %v818_v21, %v806_v54 }
 0x127   : > { %824 = vst.msk [vmem:[#allocation2 + $0x8] sm:$0xff] %vm235_vm1, %v821_v22 }
 0x12b   : > { %v918_v23 = vld [vmem:[#allocation2 + $0x10] sm:$0xff] }
 0x12c   : > { %v921_v24 = vadd.f32 %v1274_v61, %v918_v23  ;;  %v916_v25 = vld [vmem:[#allocation2] sm:$0xff] }
 0x12d   : > { %v919_v26 = vadd.f32 %v916_v25, %v902_v63 }
 0x12e   : > { %924 = vst.msk [vmem:[#allocation2 + $0x10] sm:$0xff] %vm235_vm1, %v921_v24  ;;  %v917_v27 = vld [vmem:[#allocation2 + $0x8] sm:$0xff] }
 0x12f   : > { %922 = vst.msk [vmem:[#allocation2] sm:$0xff] %vm235_vm1, %v919_v26  ;;  %v920_v28 = vadd.f32 %v917_v27, %v905_v3 }
 0x131   : > { %923 = vst.msk [vmem:[#allocation2 + $0x8] sm:$0xff] %vm235_vm1, %v920_v28 }
 0x135   : > { %v1002_v29 = vld [vmem:[#allocation2 + $0x10] sm:$0xff] }
 0x136   : > { %v1005_v30 = vadd.f32 %v1280_v62, %v1002_v29  ;;  %v1000_v31 = vld [vmem:[#allocation2] sm:$0xff] }
 0x137   : > { %v1003_v32 = vadd.f32 %v1000_v31, %v986_v0 }
 0x138   : > { %1008 = vst.msk [vmem:[#allocation2 + $0x10] sm:$0xff] %vm235_vm1, %v1005_v30  ;;  %v1001_v33 = vld [vmem:[#allocation2 + $0x8] sm:$0xff] }
 0x139   : > { %1006 = vst.msk [vmem:[#allocation2] sm:$0xff] %vm235_vm1, %v1003_v32  ;;  %v1004_v34 = vadd.f32 %v1001_v33, %v989_v4 }
 0x13b   : > { %1007 = vst.msk [vmem:[#allocation2 + $0x8] sm:$0xff] %vm235_vm1, %v1004_v34 }
 0x13f   : > { %v1011_v36 = vld [vmem:[#allocation2 + $0x10] sm:$0xff] }
 0x140   : > { %v1021_v37 = vadd.f32 %v1192_v35, %v1011_v36  ;;  %v1009_v38 = vld [vmem:[#allocation2] sm:$0xff] }
 0x141   : > { %v1019_v39 = vadd.f32 %v1192_v35, %v1009_v38 }
 0x142   : > { %v1024_v40 = vmax.f32 %v1021_v37, 0.0  ;;  %v1010_v41 = vld [vmem:[#allocation2 + $0x8] sm:$0xff] }
 0x143   : > { %v1022_v42 = vmax.f32 %v1019_v39, 0.0  ;;  %v1020_v43 = vadd.f32 %v1192_v35, %v1010_v41 }
 0x144   : > { %v1200_v44 = vpack.c.bf16 %v1024_v40, %v1024_v40 }
 0x145   : > { %v1198_v45 = vpack.c.bf16 %v1022_v42, %v1022_v42  ;;  %v1023_v46 = vmax.f32 %v1020_v43, 0.0 }
 0x146   : > { %1041 = vst.msk [vmem:[%s221_s20 + $0x8] sm:$0xf] %vm1038_vm8, %v1200_v44 }
 0x147   : > { %1039 = vst.msk [vmem:[%s221_s20] sm:$0xf] %vm1038_vm8, %v1198_v45  ;;  %v1199_v47 = vpack.c.bf16 %v1023_v46, %v1023_v46 }
 0x149   : > { %1040 = vst.msk [vmem:[%s221_s20 + $0x4] sm:$0xf] %vm1038_vm8, %v1199_v47 }
 0x14a PF: > { %s13_s14 = sadd.s32 1, %s1357_s14   ;;  %s1538_s12 = smov %s1353_s13 }
 0x14b   : > { %p10_p5 = scmp.ge.s32.totalorder %s13_s14, 4   ;;  %s1539_s13 = smov %s1541_s15 }
 0x14d   :  { %12 = sbr.rel (!%p10_p5) target bundleno = 2 (0x2), region = 68 }

// kernel: _lambda_.32
= control target key start
LH: loop header
LB: loop body
LE: loop exit
PB: predicated region body
PF: predicated region fallthrough
CT: control target
= control target key end

     0   :  { %vm19_vm0 = vcmask 130048   ;;  %v202_v1 = vmov 0.0   ;;  %vm58_vm1 = vcmask 261120   ;;  %vm161_vm2 = vcmask 125952   ;;  %s258_s1 = inlined_call_operand.vmem [shape: bf16[32,16], index: 1, kind: input, shape index: {}]   ;;  %s259_s0 = inlined_call_operand.vmem [shape: bf16[32,32], index: 0, kind: input, shape index: {}]   ;;  %s260_s2 = inlined_call_operand.vmem [shape: f32[1,16], index: 2, kind: input, shape index: {}]   ;;  %s261_s3 = inlined_call_operand.vmem [shape: bf16[32,16], index: 3, kind: output, shape index: {}]  }
   0x1   :  { %v198_v0 = vld [vmem:[%s258_s1] sm:$0xff]   ;;  %22 = vst.msk [vmem:[#allocation2 + $0x10] sm:$0xff] %vm19_vm0, %v202_v1  ;;  %20 = vst.msk [vmem:[#allocation2] sm:$0xff] %vm19_vm0, %v202_v1  ;;  %v199_v2 = vld [vmem:[%s258_s1 + $0x8] sm:$0xff]  }
   0x2   :  { %21 = vst.msk [vmem:[#allocation2 + $0x8] sm:$0xff] %vm19_vm0, %v202_v1  ;;  %23 = vst.msk [vmem:[#allocation2 + $0x18] sm:$0xff] %vm19_vm0, %v202_v1  ;;  %189 = vmatprep.subr.bf16.mxu0 %v198_v0  ;;  %v200_v3 = vld [vmem:[%s259_s0] sm:$0xff]   ;;  %v201_v4 = vld [vmem:[%s259_s0 + $0x8] sm:$0xff]  }
   0x3   :  { %190 = vmatpush3.bf16.msra.mxu0 %v198_v0  ;;  %193 = vmatprep.mubr.msk.bf16.mxu0 %vm58_vm1, %v200_v3  ;;  %v176_v17 = vld [vmem:[%s260_s2] ss:$0 sm:$0xff] }
   0x4   :  { %191 = vmatprep.subr.bf16.mxu0 %v199_v2 }
   0x7   :  { %192 = vmatpush3.bf16.msra.mxu0 %v199_v2 }
   0x8   :  { %v26_v5 = vld [vmem:[#allocation2 + $0x10] sm:$0xff]  ;;  %v24_v6 = vld [vmem:[#allocation2] sm:$0xff] }
   0x9   :  { %v27_v8 = vld [vmem:[#allocation2 + $0x18] sm:$0xff]  ;;  %v25_v11 = vld [vmem:[#allocation2 + $0x8] sm:$0xff] }
   0xa   :  { %194 = vmatmul.mubr.msk.bf16.vlgmr.msra.gmra.mrb[0].mxu0 %vm58_vm1, %v201_v4 }
  0xdd   :  { %v195_v7 = vpop.f32.mrb[0].mxu0 }
  0xde   :  { %v116_v9 = vadd.f32 %v195_v7, %v26_v5  ;;  %v99_v10 = vpop.f32.mrb[1].mxu0 }
  0xdf   :  { %v114_v12 = vadd.f32 %v99_v10, %v24_v6  ;;  %v196_v13 = vpop.f32.mrb[2].mxu0 }
  0xe0   :  { %121 = vst.msk [vmem:[#allocation2 + $0x10] sm:$0xff] %vm19_vm0, %v116_v9  ;;  %v117_v14 = vadd.f32 %v196_v13, %v27_v8  ;;  %v102_v15 = vpop.f32.mrb[3].mxu0 }
  0xe1   :  { %119 = vst.msk [vmem:[#allocation2] sm:$0xff] %vm19_vm0, %v114_v12  ;;  %v115_v16 = vadd.f32 %v102_v15, %v25_v11 }
  0xe2   :  { %122 = vst.msk [vmem:[#allocation2 + $0x18] sm:$0xff] %vm19_vm0, %v117_v14 }
  0xe3   :  { %120 = vst.msk [vmem:[#allocation2 + $0x8] sm:$0xff] %vm19_vm0, %v115_v16 }
  0xe7   :  { %v128_v18 = vld [vmem:[#allocation2 + $0x10] sm:$0xff] }
  0xe8   :  { %v139_v19 = vadd.f32 %v176_v17, %v128_v18  ;;  %v126_v20 = vld [vmem:[#allocation2] sm:$0xff] }
  0xe9   :  { %v137_v21 = vadd.f32 %v176_v17, %v126_v20  ;;  %v129_v22 = vld [vmem:[#allocation2 + $0x18] sm:$0xff] }
  0xea   :  { %v143_v23 = vmax.f32 %v139_v19, 0.0  ;;  %v140_v24 = vadd.f32 %v176_v17, %v129_v22  ;;  %v127_v25 = vld [vmem:[#allocation2 + $0x8] sm:$0xff] }
  0xeb   :  { %v141_v26 = vmax.f32 %v137_v21, 0.0  ;;  %v138_v27 = vadd.f32 %v176_v17, %v127_v25 }
  0xec   :  { %v183_v28 = vpack.c.bf16 %v143_v23, %v143_v23  ;;  %v144_v29 = vmax.f32 %v140_v24, 0.0 }
  0xed   :  { %v181_v30 = vpack.c.bf16 %v141_v26, %v141_v26  ;;  %v142_v31 = vmax.f32 %v138_v27, 0.0 }
  0xee   :  { %164 = vst.msk [vmem:[%s261_s3 + $0x8] sm:$0xf] %vm161_vm2, %v183_v28  ;;  %v184_v32 = vpack.c.bf16 %v144_v29, %v144_v29 }
  0xef   :  { %162 = vst.msk [vmem:[%s261_s3] sm:$0xf] %vm161_vm2, %v181_v30  ;;  %v182_v33 = vpack.c.bf16 %v142_v31, %v142_v31 }
  0xf0   :  { %165 = vst.msk [vmem:[%s261_s3 + $0xc] sm:$0xf] %vm161_vm2, %v184_v32 }
  0xf1   :  { %163 = vst.msk [vmem:[%s261_s3 + $0x4] sm:$0xf] %vm161_vm2, %v182_v33 }

// kernel: _lambda_.33
= control target key start
LH: loop header
LB: loop body
LE: loop exit
PB: predicated region body
PF: predicated region fallthrough
CT: control target
= control target key end

     0   :  { %vm19_vm0 = vcmask 130048   ;;  %v193_v0 = vmov 0   ;;  %v194_v2 = vmov 0.0   ;;  %vm161_vm1 = vcmask 125952   ;;  %s254_s1 = inlined_call_operand.vmem [shape: bf16[144,16], index: 1, kind: input, shape index: {}]   ;;  %s255_s0 = inlined_call_operand.vmem [shape: bf16[8,144], index: 0, kind: input, shape index: {}]   ;;  %s256_s2 = inlined_call_operand.vmem [shape: f32[1,16], index: 2, kind: input, shape index: {}]   ;;  %s257_s3 = inlined_call_operand.vmem [shape: bf16[8,16], index: 3, kind: output, shape index: {}]  }
   0x1   :  { %105 = vmatprep.subr.bf16.mxu0 %v193_v0  ;;  %v182_v1 = vld [vmem:[%s254_s1] sm:$0xff]   ;;  %20 = vst.msk [vmem:[#allocation2] sm:$0xff] %vm19_vm0, %v194_v2  ;;  %v183_v3 = vld [vmem:[%s254_s1 + $0x8] sm:$0xff]   ;;  %v184_v4 = vld [vmem:[%s254_s1 + $0x10] sm:$0xff]  }
   0x2   :  { %106 = vmatpush1.bf16.msra.mxu0 %v182_v1  ;;  %v22_v5 = vld [vmem:[%s255_s0] sm:$0xff]  ;;  %v185_v6 = vld [vmem:[%s254_s1 + $0x18] sm:$0xff]   ;;  %v187_v9 = vld [vmem:[%s254_s1 + $0x28] sm:$0xff]  }
   0x3   :  { %107 = vmatprep.subr.bf16.mxu0 %v193_v0  ;;  %v168_v7 = vcombine.high %v22_v5, %v22_v5  ;;  %v186_v8 = vld [vmem:[%s254_s1 + $0x20] sm:$0xff]   ;;  %v188_v10 = vld [vmem:[%s254_s1 + $0x30] sm:$0xff]   ;;  %v189_v11 = vld [vmem:[%s254_s1 + $0x38] sm:$0xff]   ;;  %v167_v13 = vcombine.low %v22_v5, %v22_v5 }
   0x4   :  { %v190_v12 = vld [vmem:[%s254_s1 + $0x40] sm:$0xff]  }
   0x5   :  { %178 = vmatprep.mubr.msk.bf16.mxu0 %vm19_vm0, %v168_v7  ;;  %v179_v20 = vld [vmem:[%s256_s2] ss:$0 sm:$0xff] }
   0x6   :  { %108 = vmatpush1.bf16.msra.mxu0 %v183_v3 }
   0x7   :  { %109 = vmatprep.subr.bf16.mxu0 %v193_v0 }
   0x8   :  { %v21_v14 = vld [vmem:[#allocation2] sm:$0xff] }
   0xa   :  { %110 = vmatpush1.bf16.msra.mxu0 %v184_v4 }
   0xb   :  { %111 = vmatprep.subr.bf16.mxu0 %v193_v0 }
   0xe   :  { %112 = vmatpush1.bf16.msra.mxu0 %v185_v6 }
   0xf   :  { %113 = vmatprep.subr.bf16.mxu0 %v193_v0 }
  0x12   :  { %114 = vmatpush1.bf16.msra.mxu0 %v186_v8 }
  0x13   :  { %115 = vmatprep.subr.bf16.mxu0 %v193_v0 }
  0x16   :  { %116 = vmatpush1.bf16.msra.mxu0 %v187_v9 }
  0x17   :  { %117 = vmatprep.subr.bf16.mxu0 %v193_v0 }
  0x1a   :  { %118 = vmatpush1.bf16.msra.mxu0 %v188_v10 }
  0x1b   :  { %119 = vmatprep.subr.bf16.mxu0 %v193_v0 }
  0x1e   :  { %120 = vmatpush1.bf16.msra.mxu0 %v189_v11 }
  0x1f   :  { %121 = vmatprep.subr.bf16.mxu0 %v193_v0 }
  0x22   :  { %122 = vmatpush1.bf16.msra.mxu0 %v190_v12 }
  0x25   :  { %138 = vmatmul.mubr.bf16.vlgmr.msra.gmra.mrb[0].mxu0 %v167_v13 }
  0xf8   :  { %v139_v15 = vpop.f32.mrb[0].mxu0 }
  0xf9   :  { %v145_v16 = vadd.f32 %v139_v15, %v21_v14  ;;  %v141_v17 = vpop.f32.mrb[1].mxu0 }
  0xfa   :  { %v142_v18 = vpop.f32.mrb[2].mxu0 }
  0xfb   :  { %146 = vst.msk [vmem:[#allocation2] sm:$0xff] %vm19_vm0, %v145_v16  ;;  %v143_v19 = vpop.f32.mrb[3].mxu0 }
 0x102   :  { %v150_v21 = vld [vmem:[#allocation2] sm:$0xff] }
 0x103   :  { %v158_v22 = vadd.f32 %v179_v20, %v150_v21 }
 0x105   :  { %v159_v23 = vmax.f32 %v158_v22, 0.0 }
 0x107   :  { %v160_v24 = vpack.c.bf16 %v159_v23, %v159_v23 }
 0x109   :  { %162 = vst.msk [vmem:[%s257_s3] sm:$0xf] %vm161_vm1, %v160_v24 }

// kernel: _lambda_.31
= control target key start
LH: loop header
LB: loop body
LE: loop exit
PB: predicated region body
PF: predicated region fallthrough
CT: control target
= control target key end

     0   :  { %vm19_vm0 = vcmask 523264   ;;  %v124_v0 = vmov 0.0   ;;  %vm125_vm1 = vmmov 0   ;;  %vm39_vm2 = vcmask 261120   ;;  %s163_s1 = inlined_call_operand.vmem [shape: bf16[32,64], index: 1, kind: input, shape index: {}]   ;;  %s164_s0 = inlined_call_operand.vmem [shape: bf16[8,32], index: 0, kind: input, shape index: {}]   ;;  %s165_s2 = inlined_call_operand.vmem [shape: f32[1,64], index: 2, kind: input, shape index: {}]   ;;  %s166_s3 = inlined_call_operand.vmem [shape: bf16[8,64], index: 3, kind: output, shape index: {}]  }
   0x1   :  { %20 = vst.msk [vmem:[#allocation2] sm:$0xff] %vm19_vm0, %v124_v0  ;;  %112 = vmatprep.subr.bf16.mxu0 %v124_v0  ;;  %v122_v1 = vld [vmem:[%s163_s1] sm:$0xff]   ;;  %116 = vmatprep.mubr.msk.bf16.mxu0 %vm125_vm1, %v124_v0  ;;  %v123_v2 = vld [vmem:[%s163_s1 + $0x8] sm:$0xff]   ;;  %vm99_vm3 = vcmask 519168  }
   0x2   :  { %113 = vmatpush3.bf16.msra.mxu0 %v122_v1  ;;  %v22_v3 = vld [vmem:[%s164_s0] sm:$0xf] }
   0x3   :  { %114 = vmatprep.subr.bf16.mxu0 %v124_v0  ;;  %v108_v10 = vld [vmem:[%s165_s2] ss:$0 sm:$0xff] }
   0x6   :  { %115 = vmatpush3.bf16.msra.mxu0 %v123_v2 }
   0x8   :  { %v21_v4 = vld [vmem:[#allocation2] sm:$0xff] }
   0x9   :  { %117 = vmatmul.mubr.msk.bf16.vlgmr.msra.gmra.mrb[0].mxu0 %vm39_vm2, %v22_v3 }
  0xdc   :  { %v77_v5 = vpop.f32.mrb[0].mxu0 }
  0xdd   :  { %v83_v6 = vadd.f32 %v77_v5, %v21_v4  ;;  %v118_v7 = vpop.f32.mrb[1].mxu0 }
  0xde   :  { %v80_v8 = vpop.f32.mrb[2].mxu0 }
  0xdf   :  { %85 = vst.msk [vmem:[#allocation2] sm:$0xff] %vm19_vm0, %v83_v6  ;;  %v119_v9 = vpop.f32.mrb[3].mxu0 }
  0xe6   :  { %v89_v11 = vld [vmem:[#allocation2] sm:$0xff] }
  0xe7   :  { %v97_v12 = vadd.f32 %v108_v10, %v89_v11 }
  0xe9   :  { %v98_v13 = vpack.c.bf16 %v97_v12, %v97_v12 }
  0xeb   :  { %100 = vst.msk [vmem:[%s166_s3] sm:$0xf] %vm99_vm3, %v98_v13 }

// kernel: _lambda_.34
= control target key start
LH: loop header
LB: loop body
LE: loop exit
PB: predicated region body
PF: predicated region fallthrough
CT: control target
= control target key end

     0   :  { %vm22_vm0 = vcmask 523264   ;;  %v118_v0 = vmov 0.0   ;;  %vm119_vm1 = vmmov 0   ;;  %vm34_vm2 = vcmask 130048   ;;  %s162_s1 = inlined_call_operand.vmem [shape: bf16[16,64], index: 1, kind: input, shape index: {}]   ;;  %s163_s0 = inlined_call_operand.vmem [shape: bf16[8,16], index: 0, kind: input, shape index: {}]   ;;  %s164_s3 = inlined_call_operand.vmem [shape: bf16[8,64], index: 3, kind: input, shape index: {}]   ;;  %s165_s2 = inlined_call_operand.vmem [shape: f32[1,64], index: 2, kind: input, shape index: {}]   ;;  %s166_s4 = inlined_call_operand.vmem [shape: bf16[8,64], index: 4, kind: output, shape index: {}]  }
   0x1   :  { %23 = vst.msk [vmem:[#allocation2] sm:$0xff] %vm22_vm0, %v118_v0  ;;  %109 = vmatprep.subr.bf16.mxu0 %v118_v0  ;;  %v117_v1 = vld [vmem:[%s162_s1] sm:$0xff]   ;;  %111 = vmatprep.mubr.msk.bf16.mxu0 %vm119_vm1, %v118_v0  ;;  %vm98_vm3 = vcmask 519168  }
   0x2   :  { %110 = vmatpush3.bf16.msra.mxu0 %v117_v1  ;;  %v25_v2 = vld [vmem:[%s163_s0] sm:$0xf] }
   0x3   :  { %v93_v9 = vld [vmem:[%s164_s3] sm:$0xf] }
   0x4   :  { %v106_v10 = vld [vmem:[%s165_s2] ss:$0 sm:$0xff]  ;;  %v94_v11 = vunpack.c.l.bf16 %v93_v9 }
   0x5   :  { %112 = vmatmul.mubr.msk.bf16.vlgmr.msra.gmra.mrb[0].mxu0 %vm34_vm2, %v25_v2 }
   0x8   :  { %v24_v3 = vld [vmem:[#allocation2] sm:$0xff] }
  0xd8   :  { %v72_v4 = vpop.f32.mrb[0].mxu0 }
  0xd9   :  { %v78_v5 = vadd.f32 %v72_v4, %v24_v3  ;;  %v113_v6 = vpop.f32.mrb[1].mxu0 }
  0xda   :  { %v75_v7 = vpop.f32.mrb[2].mxu0 }
  0xdb   :  { %80 = vst.msk [vmem:[#allocation2] sm:$0xff] %vm22_vm0, %v78_v5  ;;  %v114_v8 = vpop.f32.mrb[3].mxu0 }
  0xe2   :  { %v84_v12 = vld [vmem:[#allocation2] sm:$0xff] }
  0xe3   :  { %v92_v13 = vadd.f32 %v106_v10, %v84_v12 }
  0xe5   :  { %v95_v14 = vadd.f32 %v94_v11, %v92_v13 }
  0xe7   :  { %v96_v15 = vmax.f32 %v95_v14, 0.0 }
  0xe9   :  { %v97_v16 = vpack.c.bf16 %v96_v15, %v96_v15 }
  0xeb   :  { %99 = vst.msk [vmem:[%s166_s4] sm:$0xf] %vm98_vm3, %v97_v16 }

// kernel: _lambda_.36
= control target key start
LH: loop header
LB: loop body
LE: loop exit
PB: predicated region body
PF: predicated region fallthrough
CT: control target
= control target key end

     0   :  { %vm19_vm0 = vcmask 261120   ;;  %v151_v0 = vmov 0.0   ;;  %vm152_vm1 = vmmov 0   ;;  %vm55_vm2 = vcmask 523264   ;;  %s196_s1 = inlined_call_operand.vmem [shape: bf16[64,32], index: 1, kind: input, shape index: {}]   ;;  %s197_s0 = inlined_call_operand.vmem [shape: bf16[8,64], index: 0, kind: input, shape index: {}]   ;;  %s198_s2 = inlined_call_operand.vmem [shape: f32[1,32], index: 2, kind: input, shape index: {}]   ;;  %s199_s3 = inlined_call_operand.vmem [shape: bf16[8,32], index: 3, kind: output, shape index: {}]  }
   0x1   :  { %133 = vmatprep.subr.bf16.mxu0 %v151_v0  ;;  %v147_v1 = vld [vmem:[%s196_s1] sm:$0xff]   ;;  %141 = vmatprep.mubr.msk.bf16.mxu0 %vm152_vm1, %v151_v0  ;;  %20 = vst.msk [vmem:[#allocation2] sm:$0xff] %vm19_vm0, %v151_v0  ;;  %v148_v2 = vld [vmem:[%s196_s1 + $0x8] sm:$0xff]   ;;  %v149_v3 = vld [vmem:[%s196_s1 + $0x10] sm:$0xff]   ;;  %vm116_vm3 = vcmask 257024  }
   0x2   :  { %134 = vmatpush3.bf16.msra.mxu0 %v147_v1  ;;  %v150_v4 = vld [vmem:[%s196_s1 + $0x18] sm:$0xff]   ;;  %v22_v5 = vld [vmem:[%s197_s0] sm:$0xf] }
   0x3   :  { %135 = vmatprep.subr.bf16.mxu0 %v151_v0  ;;  %v127_v12 = vld [vmem:[%s198_s2] ss:$0 sm:$0xff] }
   0x6   :  { %136 = vmatpush3.bf16.msra.mxu0 %v148_v2 }
   0x7   :  { %137 = vmatprep.subr.bf16.mxu0 %v151_v0 }
   0x8   :  { %v21_v6 = vld [vmem:[#allocation2] sm:$0xff] }
   0xa   :  { %138 = vmatpush3.bf16.msra.mxu0 %v149_v3 }
   0xb   :  { %139 = vmatprep.subr.bf16.mxu0 %v151_v0 }
   0xe   :  { %140 = vmatpush3.bf16.msra.mxu0 %v150_v4 }
  0x11   :  { %142 = vmatmul.mubr.msk.bf16.vlgmr.msra.gmra.mrb[0].mxu0 %vm55_vm2, %v22_v5 }
  0xe4   :  { %v93_v7 = vpop.f32.mrb[0].mxu0 }
  0xe5   :  { %v99_v8 = vadd.f32 %v93_v7, %v21_v6  ;;  %v143_v9 = vpop.f32.mrb[1].mxu0 }
  0xe6   :  { %v96_v10 = vpop.f32.mrb[2].mxu0 }
  0xe7   :  { %101 = vst.msk [vmem:[#allocation2] sm:$0xff] %vm19_vm0, %v99_v8  ;;  %v144_v11 = vpop.f32.mrb[3].mxu0 }
  0xee   :  { %v105_v13 = vld [vmem:[#allocation2] sm:$0xff] }
  0xef   :  { %v113_v14 = vadd.f32 %v127_v12, %v105_v13 }
  0xf1   :  { %v114_v15 = vmax.f32 %v113_v14, 0.0 }
  0xf3   :  { %v115_v16 = vpack.c.bf16 %v114_v15, %v114_v15 }
  0xf5   :  { %117 = vst.msk [vmem:[%s199_s3] sm:$0xf] %vm116_vm3, %v115_v16 }

// kernel: _lambda_.37
= control target key start
LH: loop header
LB: loop body
LE: loop exit
PB: predicated region body
PF: predicated region fallthrough
CT: control target
= control target key end

     0   :  { %vm19_vm0 = vcmask 254976   ;;  %v375_v1 = vmov 0.0   ;;  %vm376_vm1 = vmmov 0   ;;  %v377_v7 = vmov 1966171168   ;;  %s463_s1 = inlined_call_operand.vmem [shape: bf16[288,32], index: 1, kind: input, shape index: {}]   ;;  %s464_s0 = inlined_call_operand.vmem [shape: bf16[2,288], index: 0, kind: input, shape index: {}]   ;;  %s465_s2 = inlined_call_operand.vmem [shape: f32[1,32], index: 2, kind: input, shape index: {}]   ;;  %s466_s3 = inlined_call_operand.vmem [shape: bf16[2,32], index: 3, kind: output, shape index: {}]  }
   0x1   :  { %v357_v0 = vld [vmem:[%s463_s1 + $0x40] sm:$0xff]   ;;  %20 = vst.msk [vmem:[#allocation2] sm:$0x3] %vm19_vm0, %v375_v1  ;;  %346 = vmatprep.subr.bf16.mxu1 %v375_v1  ;;  %350 = vmatprep.mubr.msk.bf16.mxu1 %vm376_vm1, %v375_v1  ;;  %v359_v3 = vld [vmem:[%s463_s1 + $0x48] sm:$0xff]   ;;  %v361_v5 = vld [vmem:[%s463_s1 + $0x50] sm:$0xff]   ;;  %v69_v8 = vunpack.c.l.s4 %v377_v7  ;;  %v71_v9 = vlaneseq  ;;  %vm193_vm2 = vcmask 261120  }
   0x2   :  { %v358_v2 = vld [vmem:[%s463_s1] sm:$0xff]   ;;  %321 = vmatprep.subr.bf16.mxu0 %v357_v0  ;;  %v360_v4 = vld [vmem:[%s463_s1 + $0x8] sm:$0xff]   ;;  %v362_v6 = vld [vmem:[%s463_s1 + $0x10] sm:$0xff]   ;;  %vm294_vm3 = vcmask 253952  }
   0x3   :  { %322 = vmatpush3.bf16.msra.mxu0 %v358_v2  ;;  %v363_v10 = vld [vmem:[%s463_s1 + $0x58] sm:$0xff]   ;;  %v70_v12 = vunpack.c.0.s8 %v69_v8  ;;  %v72_v13 = vshrl.u32 %v71_v9, 7  ;;  %v365_v14 = vld [vmem:[%s463_s1 + $0x60] sm:$0xff]   ;;  %v367_v18 = vld [vmem:[%s463_s1 + $0x68] sm:$0xff]  }
   0x4   :  { %323 = vmatprep.subr.bf16.mxu0 %v359_v3  ;;  %v364_v11 = vld [vmem:[%s463_s1 + $0x18] sm:$0xff]   ;;  %v371_v15 = vld [vmem:[%s463_s1 + $0x80] sm:$0xff]   ;;  %v374_v19 = vld [vmem:[%s463_s1 + $0x88] sm:$0xff]  }
   0x5   :  { %v366_v16 = vld [vmem:[%s463_s1 + $0x20] sm:$0xff]   ;;  %v73_v17 = vsub.s32 %v70_v12, %v72_v13  ;;  %347 = vmatpush3.bf16.msra.mxu1 %v371_v15  ;;  %v368_v21 = vld [vmem:[%s463_s1 + $0x28] sm:$0xff]   ;;  %v369_v24 = vld [vmem:[%s463_s1 + $0x70] sm:$0xff]  }
   0x6   :  { %348 = vmatprep.subr.bf16.mxu1 %v375_v1  ;;  %v300_v20 = vld.sshfl [vmem:[%s464_s0] sm:$0x13 pattern:$0x75316420]  ;;  %v370_v27 = vld [vmem:[%s463_s1 + $0x30] sm:$0xff]   ;;  %v372_v28 = vld [vmem:[%s463_s1 + $0x78] sm:$0xff]  }
   0x7   :  { %324 = vmatpush3.bf16.msra.mxu0 %v360_v4  ;;  %v67_v22 = vcombine.high %v300_v20, %v300_v20  ;;  %v74_v23 = vrot.slane %v300_v20, %v73_v17  ;;  %v373_v29 = vld [vmem:[%s463_s1 + $0x38] sm:$0xff]   ;;  %v320_v42 = vld [vmem:[%s465_s2] ss:$0 sm:$0xff] }
   0x8   :  { %325 = vmatprep.subr.bf16.mxu0 %v361_v5  ;;  %v21_v38 = vld [vmem:[#allocation2] sm:$0x3] }
   0x9   :  { %349 = vmatpush3.bf16.msra.mxu1 %v374_v19  ;;  %v81_v25 = vrot.slane %v67_v22, %v73_v17  ;;  %v82_v26 = vcombine.high %v74_v23, %v74_v23 }
   0xb   :  { %326 = vmatpush3.bf16.msra.mxu0 %v362_v6  ;;  %229 = vmatprep.mubr.bf16.mxu0 %v81_v25 }
   0xc   :  { %327 = vmatprep.subr.bf16.mxu0 %v363_v10  ;;  %351 = vmatmul.mubr.msk.bf16.vlgmr.msra.gmra.mrb[0].mxu1 %vm193_vm2, %v82_v26 }
   0xf   :  { %328 = vmatpush3.bf16.msra.mxu0 %v364_v11 }
  0x10   :  { %329 = vmatprep.subr.bf16.mxu0 %v365_v14 }
  0x13   :  { %330 = vmatpush3.bf16.msra.mxu0 %v366_v16 }
  0x14   :  { %331 = vmatprep.subr.bf16.mxu0 %v367_v18 }
  0x17   :  { %332 = vmatpush3.bf16.msra.mxu0 %v368_v21 }
  0x18   :  { %333 = vmatprep.subr.bf16.mxu0 %v369_v24 }
  0x1b   :  { %334 = vmatpush3.bf16.msra.mxu0 %v370_v27 }
  0x1c   :  { %335 = vmatprep.subr.bf16.mxu0 %v372_v28 }
  0x1f   :  { %336 = vmatpush3.bf16.msra.mxu0 %v373_v29 }
  0x22   :  { %230 = vmatmul.mubr.bf16.vlgmr.msra.gmra.mrb[0].mxu0 %v74_v23 }
  0xdf   :  { %v271_v30 = vpop.f32.mrb[0].mxu1 }
  0xe0   :  { %v352_v31 = vpop.f32.mrb[1].mxu1 }
  0xe1   :  { %v274_v32 = vpop.f32.mrb[2].mxu1 }
  0xe2   :  { %v353_v33 = vpop.f32.mrb[3].mxu1 }
  0xf5   :  { %v337_v34 = vpop.f32.mrb[0].mxu0 }
  0xf6   :  { %v338_v35 = vpop.f32.mrb[1].mxu0 }
  0xf7   :  { %v339_v36 = vadd.f32 %v338_v35, %v337_v34  ;;  %v340_v37 = vpop.f32.mrb[2].mxu0 }
  0xf8   :  { %v341_v39 = vpop.f32.mrb[3].mxu0 }
  0xf9   :  { %v272_v40 = vadd.f32 %v339_v36, %v271_v30 }
  0xfb   :  { %v277_v41 = vadd.f32 %v272_v40, %v21_v38 }
  0xfd   :  { %279 = vst.msk [vmem:[#allocation2] sm:$0x3] %vm19_vm0, %v277_v41 }
 0x104   :  { %v283_v43 = vld [vmem:[#allocation2] sm:$0x3] }
 0x105   :  { %v291_v44 = vadd.f32 %v320_v42, %v283_v43 }
 0x107   :  { %v292_v45 = vmax.f32 %v291_v44, 0.0 }
 0x109   :  { %v293_v46 = vpack.c.bf16 %v292_v45, %v292_v45 }
 0x10b   :  { %295 = vst.msk [vmem:[%s466_s3] sm:$0x1] %vm294_vm3, %v293_v46 }

// kernel: _lambda_.35
= control target key start
LH: loop header
LB: loop body
LE: loop exit
PB: predicated region body
PF: predicated region fallthrough
CT: control target
= control target key end

     0   :  { %v147_v0 = vmov 0.0   ;;  %vm148_vm0 = vmmov 0   ;;  %vm54_vm1 = vcmask 523264   ;;  %s190_s1 = inlined_call_operand.vmem [shape: bf16[64,128], index: 1, kind: input, shape index: {}]   ;;  %s191_s0 = inlined_call_operand.vmem [shape: bf16[2,64], index: 0, kind: input, shape index: {}]   ;;  %s192_s2 = inlined_call_operand.vmem [shape: f32[1,128], index: 2, kind: input, shape index: {}]   ;;  %s193_s3 = inlined_call_operand.vmem [shape: bf16[2,128], index: 3, kind: output, shape index: {}]  }
   0x1   :  { %129 = vmatprep.subr.bf16.mxu0 %v147_v0  ;;  %19 = vst [vmem:[#allocation2] sm:$0x3] %v147_v0  ;;  %v143_v1 = vld [vmem:[%s190_s1] sm:$0xff]   ;;  %137 = vmatprep.mubr.msk.bf16.mxu0 %vm148_vm0, %v147_v0  ;;  %v144_v2 = vld [vmem:[%s190_s1 + $0x8] sm:$0xff]   ;;  %v145_v3 = vld [vmem:[%s190_s1 + $0x10] sm:$0xff]  }
   0x2   :  { %130 = vmatpush3.bf16.msra.mxu0 %v143_v1  ;;  %v146_v4 = vld [vmem:[%s190_s1 + $0x18] sm:$0xff]   ;;  %v21_v5 = vld [vmem:[%s191_s0] sm:$0x1] }
   0x3   :  { %131 = vmatprep.subr.bf16.mxu0 %v147_v0  ;;  %v123_v12 = vld [vmem:[%s192_s2] ss:$0 sm:$0xff] }
   0x6   :  { %132 = vmatpush3.bf16.msra.mxu0 %v144_v2 }
   0x7   :  { %133 = vmatprep.subr.bf16.mxu0 %v147_v0 }
   0x8   :  { %v20_v6 = vld [vmem:[#allocation2] sm:$0x3] }
   0xa   :  { %134 = vmatpush3.bf16.msra.mxu0 %v145_v3 }
   0xb   :  { %135 = vmatprep.subr.bf16.mxu0 %v147_v0 }
   0xe   :  { %136 = vmatpush3.bf16.msra.mxu0 %v146_v4 }
  0x11   :  { %138 = vmatmul.mubr.msk.bf16.vlgmr.msra.gmra.mrb[0].mxu0 %vm54_vm1, %v21_v5 }
  0xe4   :  { %v92_v7 = vpop.f32.mrb[0].mxu0 }
  0xe5   :  { %v98_v8 = vadd.f32 %v92_v7, %v20_v6  ;;  %v139_v9 = vpop.f32.mrb[1].mxu0 }
  0xe6   :  { %v95_v10 = vpop.f32.mrb[2].mxu0 }
  0xe7   :  { %99 = vst [vmem:[#allocation2] sm:$0x3] %v98_v8  ;;  %v140_v11 = vpop.f32.mrb[3].mxu0 }
  0xee   :  { %v103_v13 = vld [vmem:[#allocation2] sm:$0x3] }
  0xef   :  { %v111_v14 = vadd.f32 %v123_v12, %v103_v13 }
  0xf1   :  { %v112_v15 = vpack.c.bf16 %v111_v14, %v111_v14 }
  0xf3   :  { %113 = vst [vmem:[%s193_s3] sm:$0x1] %v112_v15 }

// kernel: _lambda_.38
= control target key start
LH: loop header
LB: loop body
LE: loop exit
PB: predicated region body
PF: predicated region fallthrough
CT: control target
= control target key end

     0   :  { %v128_v0 = vmov 0.0   ;;  %vm129_vm0 = vmmov 0   ;;  %vm41_vm1 = vcmask 261120   ;;  %s173_s1 = inlined_call_operand.vmem [shape: bf16[32,128], index: 1, kind: input, shape index: {}]   ;;  %s174_s0 = inlined_call_operand.vmem [shape: bf16[2,32], index: 0, kind: input, shape index: {}]   ;;  %s175_s3 = inlined_call_operand.vmem [shape: bf16[2,128], index: 3, kind: input, shape index: {}]   ;;  %s176_s2 = inlined_call_operand.vmem [shape: f32[1,128], index: 2, kind: input, shape index: {}]   ;;  %s177_s4 = inlined_call_operand.vmem [shape: bf16[2,128], index: 4, kind: output, shape index: {}]  }
   0x1   :  { %116 = vmatprep.subr.bf16.mxu0 %v128_v0  ;;  %22 = vst [vmem:[#allocation2] sm:$0x3] %v128_v0  ;;  %v126_v1 = vld [vmem:[%s173_s1] sm:$0xff]   ;;  %120 = vmatprep.mubr.msk.bf16.mxu0 %vm129_vm0, %v128_v0  ;;  %v127_v2 = vld [vmem:[%s173_s1 + $0x8] sm:$0xff]  }
   0x2   :  { %117 = vmatpush3.bf16.msra.mxu0 %v126_v1  ;;  %v24_v3 = vld [vmem:[%s174_s0] sm:$0x1] }
   0x3   :  { %118 = vmatprep.subr.bf16.mxu0 %v128_v0  ;;  %v99_v10 = vld [vmem:[%s175_s3] sm:$0x1] }
   0x4   :  { %v112_v11 = vld [vmem:[%s176_s2] ss:$0 sm:$0xff]  ;;  %v100_v12 = vunpack.c.l.bf16 %v99_v10 }
   0x6   :  { %119 = vmatpush3.bf16.msra.mxu0 %v127_v2 }
   0x8   :  { %v23_v4 = vld [vmem:[#allocation2] sm:$0x3] }
   0x9   :  { %121 = vmatmul.mubr.msk.bf16.vlgmr.msra.gmra.mrb[0].mxu0 %vm41_vm1, %v24_v3 }
  0xdc   :  { %v79_v5 = vpop.f32.mrb[0].mxu0 }
  0xdd   :  { %v85_v6 = vadd.f32 %v79_v5, %v23_v4  ;;  %v122_v7 = vpop.f32.mrb[1].mxu0 }
  0xde   :  { %v82_v8 = vpop.f32.mrb[2].mxu0 }
  0xdf   :  { %86 = vst [vmem:[#allocation2] sm:$0x3] %v85_v6  ;;  %v123_v9 = vpop.f32.mrb[3].mxu0 }
  0xe6   :  { %v90_v13 = vld [vmem:[#allocation2] sm:$0x3] }
  0xe7   :  { %v98_v14 = vadd.f32 %v112_v11, %v90_v13 }
  0xe9   :  { %v101_v15 = vadd.f32 %v100_v12, %v98_v14 }
  0xeb   :  { %v102_v16 = vmax.f32 %v101_v15, 0.0 }
  0xed   :  { %v103_v17 = vpack.c.bf16 %v102_v16, %v102_v16 }
  0xef   :  { %104 = vst [vmem:[%s177_s4] sm:$0x1] %v103_v17 }

// kernel: _lambda_.48
= control target key start
LH: loop header
LB: loop body
LE: loop exit
PB: predicated region body
PF: predicated region fallthrough
CT: control target
= control target key end

     0   :  { %vm21_vm0 = vcmask 517120   ;;  %v164_v1 = vmov 0.0   ;;  %vm165_vm1 = vmmov 0   ;;  %vm90_vm2 = vcmask 516096   ;;  %s226_s0 = inlined_call_operand.vmem [shape: bf16[2,1,1,9,64], index: 0, kind: input, shape index: {}, may-alias: {0,4}]   ;;  %s227_s1 = inlined_call_operand.vmem [shape: bf16[2,128], index: 1, kind: input, shape index: {}]   ;;  %s228_s2 = inlined_call_operand.vmem [shape: bf16[128,64], index: 2, kind: input, shape index: {}]   ;;  %s229_s3 = inlined_call_operand.vmem [shape: f32[1,64], index: 3, kind: input, shape index: {}]   ;;  %s230_s4 = inlined_call_operand.vmem [shape: bf16[2,1,1,9,64], index: 4, kind: output, shape index: {}, may-alias: {0,4}]  }
   0x1   :  { %v25_v0 = vld [vmem:[%s228_s2] sm:$0xff]  ;;  %142 = vmatprep.subr.bf16.mxu0 %v164_v1  ;;  %158 = vmatprep.mubr.msk.bf16.mxu0 %vm165_vm1, %v164_v1  ;;  %22 = vst.msk [vmem:[#allocation2] sm:$0x3] %vm21_vm0, %v164_v1  ;;  %v26_v2 = vld [vmem:[%s228_s2 + $0x8] sm:$0xff]  ;;  %v27_v3 = vld [vmem:[%s228_s2 + $0x10] sm:$0xff] }
   0x2   :  { %143 = vmatpush3.bf16.msra.mxu0 %v25_v0  ;;  %v28_v4 = vld [vmem:[%s228_s2 + $0x18] sm:$0xff]  ;;  %v29_v5 = vld [vmem:[%s228_s2 + $0x20] sm:$0xff]  ;;  %v30_v6 = vld [vmem:[%s228_s2 + $0x28] sm:$0xff] }
   0x3   :  { %144 = vmatprep.subr.bf16.mxu0 %v164_v1  ;;  %v31_v7 = vld [vmem:[%s228_s2 + $0x30] sm:$0xff]  ;;  %v32_v8 = vld [vmem:[%s228_s2 + $0x38] sm:$0xff]  ;;  %v24_v9 = vld [vmem:[%s227_s1] sm:$0x1] }
   0x4   :  { %v131_v16 = vld [vmem:[%s229_s3] ss:$0 sm:$0xff] }
   0x6   :  { %145 = vmatpush3.bf16.msra.mxu0 %v26_v2 }
   0x7   :  { %146 = vmatprep.subr.bf16.mxu0 %v164_v1 }
   0x8   :  { %v23_v10 = vld [vmem:[#allocation2] sm:$0x3] }
   0xa   :  { %147 = vmatpush3.bf16.msra.mxu0 %v27_v3 }
   0xb   :  { %148 = vmatprep.subr.bf16.mxu0 %v164_v1 }
   0xe   :  { %149 = vmatpush3.bf16.msra.mxu0 %v28_v4 }
   0xf   :  { %150 = vmatprep.subr.bf16.mxu0 %v164_v1 }
  0x12   :  { %151 = vmatpush3.bf16.msra.mxu0 %v29_v5 }
  0x13   :  { %152 = vmatprep.subr.bf16.mxu0 %v164_v1 }
  0x16   :  { %153 = vmatpush3.bf16.msra.mxu0 %v30_v6 }
  0x17   :  { %154 = vmatprep.subr.bf16.mxu0 %v164_v1 }
  0x1a   :  { %155 = vmatpush3.bf16.msra.mxu0 %v31_v7 }
  0x1b   :  { %156 = vmatprep.subr.bf16.mxu0 %v164_v1 }
  0x1e   :  { %157 = vmatpush3.bf16.msra.mxu0 %v32_v8 }
  0x21   :  { %159 = vmatmul.mubr.bf16.vlgmr.msra.gmra.mrb[0].mxu0 %v24_v9 }
  0xf4   :  { %v67_v11 = vpop.f32.mrb[0].mxu0 }
  0xf5   :  { %v73_v12 = vadd.f32 %v67_v11, %v23_v10  ;;  %v160_v13 = vpop.f32.mrb[1].mxu0 }
  0xf6   :  { %v70_v14 = vpop.f32.mrb[2].mxu0 }
  0xf7   :  { %75 = vst.msk [vmem:[#allocation2] sm:$0x3] %vm21_vm0, %v73_v12  ;;  %v161_v15 = vpop.f32.mrb[3].mxu0 }
  0xfe   :  { %v79_v17 = vld [vmem:[#allocation2] sm:$0x3] }
  0xff   :  { %v87_v18 = vadd.f32 %v131_v16, %v79_v17 }
 0x101   :  { %v88_v19 = vmax.f32 %v87_v18, 0.0 }
 0x103   :  { %v89_v20 = vpack.c.bf16 %v88_v19, %v88_v19 }
 0x105   :  { %91 = vst.msk [vmem:[#allocation3] sm:$0x1] %vm90_vm2, %v89_v20 }
 0x10c   :  { %v109_v21 = vld [vmem:[#allocation3] sm:$0x1] }
 0x10d   :  { %132 = vst [vmem:[%s230_s4 + $0x4] sm:$0x1] %v109_v21 }

// kernel: _lambda_.39
= control target key start
LH: loop header
LB: loop body
LE: loop exit
PB: predicated region body
PF: predicated region fallthrough
CT: control target
= control target key end

     0   :  { %v278_v1 = vmov 0   ;;  %v279_v18 = vmov 0.0   ;;  %v280_v19 = vmov 1983009808   ;;  %v165_v21 = vlaneseq  ;;  %s359_s1 = inlined_call_operand.vmem [shape: bf16[128,256], index: 1, kind: input, shape index: {}]   ;;  %s360_s0 = inlined_call_operand.vmem [shape: bf16[2,128], index: 0, kind: input, shape index: {}]   ;;  %s361_s2 = inlined_call_operand.vmem [shape: f32[1,256], index: 2, kind: input, shape index: {}]   ;;  %s362_s3 = inlined_call_operand.vmem [shape: bf16[2,256], index: 3, kind: output, shape index: {}]  }
   0x1   :  { %v254_v0 = vld [vmem:[%s359_s1 + $0x4] ss:$8 sps:$4 sm:$0xff]   ;;  %150 = vmatprep.mubr.bf16.mxu0 %v278_v1  ;;  %v256_v2 = vld [vmem:[%s359_s1] ss:$8 sps:$4 sm:$0xff]   ;;  %v257_v3 = vld [vmem:[%s359_s1 + $0x14] ss:$8 sps:$4 sm:$0xff]   ;;  %v163_v20 = vunpack.c.l.s4 %v280_v19 }
   0x2   :  { %118 = vmatprep.subr.bf16.mxu0 %v254_v0  ;;  %v259_v4 = vld [vmem:[%s359_s1 + $0x10] ss:$8 sps:$4 sm:$0xff]   ;;  %v260_v5 = vld [vmem:[%s359_s1 + $0x24] ss:$8 sps:$4 sm:$0xff]   ;;  %v262_v6 = vld [vmem:[%s359_s1 + $0x20] ss:$8 sps:$4 sm:$0xff]  }
   0x3   :  { %119 = vmatpush1.bf16.msra.mxu0 %v256_v2  ;;  %v263_v7 = vld [vmem:[%s359_s1 + $0x34] ss:$8 sps:$4 sm:$0xff]   ;;  %v265_v8 = vld [vmem:[%s359_s1 + $0x30] ss:$8 sps:$4 sm:$0xff]   ;;  %v266_v9 = vld [vmem:[%s359_s1 + $0x44] ss:$8 sps:$4 sm:$0xff]   ;;  %v164_v22 = vunpack.c.0.s8 %v163_v20 }
   0x4   :  { %120 = vmatprep.subr.bf16.mxu0 %v257_v3  ;;  %v268_v10 = vld [vmem:[%s359_s1 + $0x40] ss:$8 sps:$4 sm:$0xff]   ;;  %v269_v11 = vld [vmem:[%s359_s1 + $0x54] ss:$8 sps:$4 sm:$0xff]   ;;  %v271_v12 = vld [vmem:[%s359_s1 + $0x50] ss:$8 sps:$4 sm:$0xff]  }
   0x5   :  { %v272_v13 = vld [vmem:[%s359_s1 + $0x64] ss:$8 sps:$4 sm:$0xff]   ;;  %v274_v14 = vld [vmem:[%s359_s1 + $0x60] ss:$8 sps:$4 sm:$0xff]   ;;  %v275_v15 = vld [vmem:[%s359_s1 + $0x74] ss:$8 sps:$4 sm:$0xff]  }
   0x6   :  { %v277_v16 = vld [vmem:[%s359_s1 + $0x70] ss:$8 sps:$4 sm:$0xff]   ;;  %v21_v17 = vld [vmem:[%s360_s0] sm:$0x1]  ;;  %19 = vst [vmem:[#allocation2] sm:$0xf] %v279_v18 }
   0x7   :  { %121 = vmatpush1.bf16.msra.mxu0 %v259_v4  ;;  %v166_v23 = vshrl.u32 %v165_v21, 7  ;;  %v176_v29 = vld [vmem:[%s361_s2] sm:$0x3]  ;;  %v281_v40 = vmov 1966171168  }
   0x8   :  { %122 = vmatprep.subr.bf16.mxu0 %v260_v5  ;;  %v213_v41 = vunpack.c.l.s4 %v281_v40 }
   0x9   :  { %v167_v25 = vsub.s32 %v164_v22, %v166_v23  ;;  %v180_v26 = vsub.s32 0, %v166_v23  ;;  %v184_v27 = vsub.s32 1, %v166_v23 }
   0xa   :  { %v214_v44 = vunpack.c.0.s8 %v213_v41 }
   0xb   :  { %123 = vmatpush1.bf16.msra.mxu0 %v262_v6  ;;  %v181_v35 = vrot.slane %v176_v29, %v180_v26  ;;  %v185_v36 = vrot.slane %v176_v29, %v184_v27 }
   0xc   :  { %124 = vmatprep.subr.bf16.mxu0 %v263_v7  ;;  %v217_v47 = vsub.s32 %v214_v44, %v166_v23 }
   0xd   :  { %v20_v32 = vld [vmem:[#allocation2] sm:$0xf]  ;;  %v186_v38 = vcombine.low %v181_v35, %v185_v36 }
   0xf   :  { %125 = vmatpush1.bf16.msra.mxu0 %v265_v8  ;;  %v193_v39 = vrot.slane %v186_v38, %v167_v25 }
  0x10   :  { %126 = vmatprep.subr.bf16.mxu0 %v266_v9 }
  0x13   :  { %127 = vmatpush1.bf16.msra.mxu0 %v268_v10 }
  0x14   :  { %128 = vmatprep.subr.bf16.mxu0 %v269_v11 }
  0x17   :  { %129 = vmatpush1.bf16.msra.mxu0 %v271_v12 }
  0x18   :  { %130 = vmatprep.subr.bf16.mxu0 %v272_v13 }
  0x1b   :  { %131 = vmatpush1.bf16.msra.mxu0 %v274_v14 }
  0x1c   :  { %132 = vmatprep.subr.bf16.mxu0 %v275_v15 }
  0x1f   :  { %133 = vmatpush1.bf16.msra.mxu0 %v277_v16 }
  0x22   :  { %151 = vmatmul.mubr.bf16.vlgmr.msra.gmra.mrb[0].mxu0 %v21_v17 }
  0xf5   :  { %v152_v24 = vpop.f32.mrb[0].mxu0 }
  0xf6   :  { %v154_v28 = vpop.f32.mrb[1].mxu0 }
  0xf7   :  { %v161_v30 = vcombine.low %v152_v24, %v154_v28  ;;  %v156_v31 = vpop.f32.mrb[2].mxu0 }
  0xf8   :  { %v157_v33 = vpop.f32.mrb[3].mxu0 }
  0xf9   :  { %v168_v34 = vrot.slane %v161_v30, %v167_v25 }
  0xfb   :  { %v170_v37 = vadd.f32 %v168_v34, %v20_v32 }
  0xfd   :  { %171 = vst [vmem:[#allocation2] sm:$0xf] %v170_v37 }
 0x104   :  { %v175_v42 = vld [vmem:[#allocation2] sm:$0xf] }
 0x105   :  { %v195_v43 = vadd.f32 %v193_v39, %v175_v42 }
 0x107   :  { %v203_v45 = vrot.slane %v195_v43, %v167_v25 }
 0x109   :  { %v204_v46 = vcombine.high %v203_v45, %v203_v45 }
 0x10b   :  { %v248_v48 = vpack.c.bf16 %v204_v46, %v203_v45 }
 0x10d   :  { %v218_v49 = vrot.slane %v248_v48, %v217_v47 }
 0x10f   :  { %249 = vst.sshfl [vmem:[%s362_s3] sm:$0x5 pattern:$0x73625140] %v218_v49 }

// kernel: _lambda_.42
= control target key start
LH: loop header
LB: loop body
LE: loop exit
PB: predicated region body
PF: predicated region fallthrough
CT: control target
= control target key end

     0   :  { %s204_s6 = smov 0   ;;  %s225_s0 = inlined_call_operand.vmem [shape: bf16[2,1,256], index: 0, kind: input, shape index: {}]   ;;  %s226_s1 = inlined_call_operand.vmem [shape: f32[2,1,256], index: 1, kind: output, shape index: {}]  }
   0x1 LB: > { %s182_s7 = sadd.s32 4294967295, %s206_s6   ;;  %p186_p0 = scmp.ge.s32.totalorder %s206_s6, 1  ;;  %s206_s6 = sphi %s204_s6, %s11_s6  }
   0x2   : > { %p86_p1 = scmp.lt.s32.totalorder %s206_s6, 3 }
   0x4   : > { %p87_p2 = pnand %p186_p0, %p86_p1 }
   0x5   : > { %p104_p3 = scmp.lt.s32.totalorder (!%p87_p2), %s182_s7, 1  ;;  %v119_v0 = vlaneseq (!%p87_p2)  ;;  %v208_v1 = vmov (!%p87_p2), 1966171168  }
   0x6   : > { %90 = sbr.rel (%p87_p2) target bundleno = 22 (0x16), region = 24  ;;  %v117_v2 = vunpack.c.l.s4 (!%p87_p2), %v208_v1 }
   0x7   : > { %v120_v3 = vshrl.u32 (!%p87_p2), %v119_v0, 7  ;;  %vm126_vm0 = vcmp.lt.s32.totalorder (!%p87_p2), %v119_v0, 256 }
   0x8   : > { %v118_v4 = vunpack.c.0.s8 (!%p87_p2), %v117_v2 }
   0xa   : > { %v121_v5 = vsub.s32 (!%p87_p2), %v118_v4, %v120_v3 }
   0xd   : > { %s228_s7 = smov (!%p104_p3, %s182_s7), 1 }
   0xe   : > { %s187_s8 = sshll.u32 %s228_s7, 1 }
   0xf   : > { %s107_s11 = scalar_lea.vmem %s225_s0, %s187_s8  ;;  %s111_s14 = scalar_lea.vmem %s226_s1, %s187_s8 }
  0x10   : > { %v112_v6 = vld [vmem:[%s107_s11] sm:$0x3] }
  0x11   : > { %v113_v7 = vunpack.c.l.bf16 %v112_v6 }
  0x13   : > { %v122_v8 = vrot.slane %v113_v7, %v121_v5 }
  0x15   : > { %128 = vst.msk [vmem:[%s111_s14] sm:$0x3] %vm126_vm0, %v122_v8 }
  0x16 PF: > { %s11_s6 = sadd.s32 1, %s206_s6  }
  0x17   : > { %p8_p4 = scmp.ge.s32.totalorder %s11_s6, 4  }
  0x19   :  { %10 = sbr.rel (!%p8_p4) target bundleno = 1 (0x1), region = 54 }

// kernel: _lambda_.41
= control target key start
LH: loop header
LB: loop body
LE: loop exit
PB: predicated region body
PF: predicated region fallthrough
CT: control target
= control target key end

     0   :  { %v222_v1 = vmov 0   ;;  %vm73_vm0 = vcmask 523264   ;;  %v223_v10 = vmov 0.0   ;;  %v224_v11 = vmov 1983009808   ;;  %s287_s1 = inlined_call_operand.vmem [shape: bf16[64,256], index: 1, kind: input, shape index: {}]   ;;  %s288_s0 = inlined_call_operand.vmem [shape: bf16[2,64], index: 0, kind: input, shape index: {}]   ;;  %s289_s2 = inlined_call_operand.vmem [shape: f32[1,256], index: 2, kind: input, shape index: {}]   ;;  %s290_s3 = inlined_call_operand.vmem [shape: bf16[2,256], index: 3, kind: input, shape index: {}]   ;;  %s291_s4 = inlined_call_operand.vmem [shape: bf16[2,256], index: 4, kind: output, shape index: {}]  }
   0x1   :  { %v210_v0 = vld [vmem:[%s287_s1 + $0x4] ss:$8 sps:$4 sm:$0xff]   ;;  %109 = vmatprep.mubr.bf16.mxu0 %v222_v1  ;;  %v212_v2 = vld [vmem:[%s287_s1] ss:$8 sps:$4 sm:$0xff]   ;;  %v213_v3 = vld [vmem:[%s287_s1 + $0x14] ss:$8 sps:$4 sm:$0xff]   ;;  %v122_v12 = vunpack.c.l.s4 %v224_v11  ;;  %v124_v13 = vlaneseq }
   0x2   :  { %77 = vmatprep.subr.bf16.mxu0 %v210_v0  ;;  %v215_v4 = vld [vmem:[%s287_s1 + $0x10] ss:$8 sps:$4 sm:$0xff]   ;;  %v216_v5 = vld [vmem:[%s287_s1 + $0x24] ss:$8 sps:$4 sm:$0xff]   ;;  %v218_v6 = vld [vmem:[%s287_s1 + $0x20] ss:$8 sps:$4 sm:$0xff]  }
   0x3   :  { %78 = vmatpush1.bf16.msra.mxu0 %v212_v2  ;;  %v219_v7 = vld [vmem:[%s287_s1 + $0x34] ss:$8 sps:$4 sm:$0xff]   ;;  %v221_v8 = vld [vmem:[%s287_s1 + $0x30] ss:$8 sps:$4 sm:$0xff]   ;;  %v24_v9 = vld [vmem:[%s288_s0] sm:$0x1]  ;;  %v123_v14 = vunpack.c.0.s8 %v122_v12 }
   0x4   :  { %79 = vmatprep.subr.bf16.mxu0 %v213_v3  ;;  %22 = vst [vmem:[#allocation2] sm:$0xf] %v223_v10  ;;  %v125_v15 = vshrl.u32 %v124_v13, 7  ;;  %v135_v21 = vld [vmem:[%s289_s2] sm:$0x3] }
   0x5   :  { %v155_v31 = vld [vmem:[%s290_s3] sm:$0x3]  ;;  %v225_v36 = vmov 1966171168  }
   0x6   :  { %v126_v17 = vsub.s32 %v123_v14, %v125_v15  ;;  %v139_v18 = vsub.s32 0, %v125_v15  ;;  %v143_v19 = vsub.s32 1, %v125_v15  ;;  %v156_v33 = vunpack.c.l.bf16 %v155_v31 }
   0x7   :  { %80 = vmatpush1.bf16.msra.mxu0 %v215_v4  ;;  %v176_v37 = vunpack.c.l.s4 %v225_v36 }
   0x8   :  { %81 = vmatprep.subr.bf16.mxu0 %v216_v5  ;;  %v140_v27 = vrot.slane %v135_v21, %v139_v18  ;;  %v144_v28 = vrot.slane %v135_v21, %v143_v19 }
   0x9   :  { %v177_v40 = vunpack.c.0.s8 %v176_v37 }
   0xa   :  { %v145_v30 = vcombine.low %v140_v27, %v144_v28 }
   0xb   :  { %82 = vmatpush1.bf16.msra.mxu0 %v218_v6  ;;  %v23_v24 = vld [vmem:[#allocation2] sm:$0xf]  ;;  %v180_v43 = vsub.s32 %v177_v40, %v125_v15 }
   0xc   :  { %83 = vmatprep.subr.bf16.mxu0 %v219_v7  ;;  %v152_v32 = vrot.slane %v145_v30, %v126_v17 }
   0xf   :  { %84 = vmatpush1.bf16.msra.mxu0 %v221_v8 }
  0x12   :  { %203 = vmatmul.mubr.msk.bf16.vlgmr.msra.gmra.mrb[0].mxu0 %vm73_vm0, %v24_v9 }
  0xe5   :  { %v111_v16 = vpop.f32.mrb[0].mxu0 }
  0xe6   :  { %v113_v20 = vpop.f32.mrb[1].mxu0 }
  0xe7   :  { %v120_v22 = vcombine.low %v111_v16, %v113_v20  ;;  %v115_v23 = vpop.f32.mrb[2].mxu0 }
  0xe8   :  { %v116_v25 = vpop.f32.mrb[3].mxu0 }
  0xe9   :  { %v127_v26 = vrot.slane %v120_v22, %v126_v17 }
  0xeb   :  { %v129_v29 = vadd.f32 %v127_v26, %v23_v24 }
  0xed   :  { %130 = vst [vmem:[#allocation2] sm:$0xf] %v129_v29 }
  0xf4   :  { %v134_v34 = vld [vmem:[#allocation2] sm:$0xf] }
  0xf5   :  { %v154_v35 = vadd.f32 %v152_v32, %v134_v34 }
  0xf7   :  { %v157_v38 = vadd.f32 %v156_v33, %v154_v35 }
  0xf9   :  { %v158_v39 = vmax.f32 %v157_v38, 0.0 }
  0xfb   :  { %v166_v41 = vrot.slane %v158_v39, %v126_v17 }
  0xfd   :  { %v167_v42 = vcombine.high %v166_v41, %v166_v41 }
  0xff   :  { %v204_v44 = vpack.c.bf16 %v167_v42, %v166_v41 }
 0x101   :  { %v181_v45 = vrot.slane %v204_v44, %v180_v43 }
 0x103   :  { %205 = vst.sshfl [vmem:[%s291_s4] sm:$0x5 pattern:$0x73625140] %v181_v45 }

// kernel: _lambda_.40
= control target key start
LH: loop header
LB: loop body
LE: loop exit
PB: predicated region body
PF: predicated region fallthrough
CT: control target
= control target key end

     0   :  { %v641_v22 = vmov 1966171168   ;;  %v100_v24 = vlaneseq  ;;  %v642_v40 = vmov 0.0   ;;  %vm643_vm0 = vmmov 0   ;;  %s783_s1 = inlined_call_operand.vmem [shape: bf16[576,64], index: 1, kind: input, shape index: {}]   ;;  %s784_s0 = inlined_call_operand.vmem [shape: bf16[2,576], index: 0, kind: input, shape index: {}]   ;;  %s785_s2 = inlined_call_operand.vmem [shape: f32[1,64], index: 2, kind: input, shape index: {}]   ;;  %s786_s3 = inlined_call_operand.vmem [shape: bf16[2,64], index: 3, kind: output, shape index: {}]  }
   0x1   :  { %v604_v0 = vld [vmem:[%s783_s1 + $0x40] sm:$0xff]   ;;  %v608_v4 = vld [vmem:[%s783_s1 + $0x48] sm:$0xff]   ;;  %v612_v8 = vld [vmem:[%s783_s1 + $0x50] sm:$0xff]   ;;  %v98_v23 = vunpack.c.l.s4 %v641_v22  ;;  %vm355_vm1 = vcmask 523264   ;;  %vm19_vm2 = vcmask 517120   ;;  %vm496_vm3 = vcmask 516096  }
   0x2   :  { %v605_v1 = vld [vmem:[%s783_s1 + $0xc0] sm:$0xff]   ;;  %540 = vmatprep.subr.bf16.mxu0 %v604_v0  ;;  %v609_v5 = vld [vmem:[%s783_s1 + $0xc8] sm:$0xff]   ;;  %v613_v9 = vld [vmem:[%s783_s1 + $0xd0] sm:$0xff]   ;;  %v101_v30 = vshrl.u32 %v100_v24, 7  ;;  %20 = vst.msk [vmem:[#allocation2] sm:$0x3] %vm19_vm2, %v642_v40 }
   0x3   :  { %v606_v2 = vld [vmem:[%s783_s1] sm:$0xff]   ;;  %562 = vmatprep.subr.bf16.mxu1 %v605_v1  ;;  %v610_v6 = vld [vmem:[%s783_s1 + $0x8] sm:$0xff]   ;;  %v614_v10 = vld [vmem:[%s783_s1 + $0x10] sm:$0xff]   ;;  %v99_v29 = vunpack.c.0.s8 %v98_v23 }
   0x4   :  { %v607_v3 = vld [vmem:[%s783_s1 + $0x80] sm:$0xff]   ;;  %541 = vmatpush3.bf16.msra.mxu0 %v606_v2  ;;  %v611_v7 = vld [vmem:[%s783_s1 + $0x88] sm:$0xff]   ;;  %v615_v11 = vld [vmem:[%s783_s1 + $0x90] sm:$0xff]  }
   0x5   :  { %563 = vmatpush3.bf16.msra.mxu1 %v607_v3  ;;  %542 = vmatprep.subr.bf16.mxu0 %v608_v4  ;;  %v616_v12 = vld [vmem:[%s783_s1 + $0x58] sm:$0xff]   ;;  %v620_v16 = vld [vmem:[%s783_s1 + $0x60] sm:$0xff]   ;;  %v624_v20 = vld [vmem:[%s783_s1 + $0x68] sm:$0xff]   ;;  %v102_v35 = vsub.s32 %v99_v29, %v101_v30 }
   0x6   :  { %564 = vmatprep.subr.bf16.mxu1 %v609_v5  ;;  %v617_v13 = vld [vmem:[%s783_s1 + $0xd8] sm:$0xff]   ;;  %v621_v17 = vld [vmem:[%s783_s1 + $0xe0] sm:$0xff]   ;;  %v625_v21 = vld [vmem:[%s783_s1 + $0xe8] sm:$0xff]  }
   0x7   :  { %v618_v14 = vld [vmem:[%s783_s1 + $0x18] sm:$0xff]   ;;  %v622_v18 = vld [vmem:[%s783_s1 + $0x20] sm:$0xff]   ;;  %v626_v25 = vld [vmem:[%s783_s1 + $0x28] sm:$0xff]  }
   0x8   :  { %543 = vmatpush3.bf16.msra.mxu0 %v610_v6  ;;  %v619_v15 = vld [vmem:[%s783_s1 + $0x98] sm:$0xff]   ;;  %v623_v19 = vld [vmem:[%s783_s1 + $0xa0] sm:$0xff]   ;;  %v627_v26 = vld [vmem:[%s783_s1 + $0xa8] sm:$0xff]  }
   0x9   :  { %565 = vmatpush3.bf16.msra.mxu1 %v611_v7  ;;  %544 = vmatprep.subr.bf16.mxu0 %v612_v8  ;;  %v628_v27 = vld [vmem:[%s783_s1 + $0x70] sm:$0xff]   ;;  %v632_v33 = vld [vmem:[%s783_s1 + $0x78] sm:$0xff]   ;;  %v22_v38 = vld [vmem:[%s784_s0] sm:$0x1f] }
   0xa   :  { %566 = vmatprep.subr.bf16.mxu1 %v613_v9  ;;  %v629_v28 = vld [vmem:[%s783_s1 + $0xf0] sm:$0xff]   ;;  %v633_v34 = vld [vmem:[%s783_s1 + $0xf8] sm:$0xff]   ;;  %v103_v39 = vrot.slane %v22_v38, %v102_v35  ;;  %v637_v44 = vld [vmem:[%s783_s1 + $0x100] sm:$0xff]   ;;  %v96_v48 = vcombine.high %v22_v38, %v22_v38 }
   0xb   :  { %v630_v31 = vld [vmem:[%s783_s1 + $0x30] sm:$0xff]   ;;  %v634_v36 = vld [vmem:[%s783_s1 + $0x38] sm:$0xff]   ;;  %v638_v47 = vld [vmem:[%s783_s1 + $0x108] sm:$0xff]  }
   0xc   :  { %545 = vmatpush3.bf16.msra.mxu0 %v614_v10  ;;  %v631_v32 = vld [vmem:[%s783_s1 + $0xb0] sm:$0xff]   ;;  %v635_v37 = vld [vmem:[%s783_s1 + $0xb8] sm:$0xff]   ;;  %v111_v41 = vcombine.high %v103_v39, %v103_v39  ;;  %v118_v42 = vrot.slane %v103_v39, %v102_v35  ;;  %v110_v50 = vrot.slane %v96_v48, %v102_v35  ;;  %v21_v0 = vld [vmem:[#allocation2] sm:$0x3] }
   0xd   :  { %567 = vmatpush3.bf16.msra.mxu1 %v615_v11  ;;  %546 = vmatprep.subr.bf16.mxu0 %v616_v12  ;;  %v639_v49 = vld [vmem:[%s783_s1 + $0x110] sm:$0xff]   ;;  %v640_v51 = vld [vmem:[%s783_s1 + $0x118] sm:$0xff]   ;;  %v539_v7 = vld [vmem:[%s785_s2] ss:$0 sm:$0xff] }
   0xe   :  { %568 = vmatprep.subr.bf16.mxu1 %v617_v13  ;;  %v132_v43 = vrot.slane %v111_v41, %v102_v35  ;;  %v133_v45 = vcombine.high %v118_v42, %v118_v42  ;;  %v125_v52 = vrot.slane %v110_v50, %v102_v35 }
  0x10   :  { %547 = vmatpush3.bf16.msra.mxu0 %v618_v14  ;;  %391 = vmatprep.mubr.bf16.mxu0 %v132_v43  ;;  %v134_v46 = vcombine.high %v132_v43, %v132_v43 }
  0x11   :  { %569 = vmatpush3.bf16.msra.mxu1 %v619_v15  ;;  %548 = vmatprep.subr.bf16.mxu0 %v620_v16 }
  0x12   :  { %570 = vmatprep.subr.bf16.mxu1 %v621_v17  ;;  %431 = vmatprep.mubr.bf16.mxu1 %v134_v46 }
  0x14   :  { %549 = vmatpush3.bf16.msra.mxu0 %v622_v18 }
  0x15   :  { %571 = vmatpush3.bf16.msra.mxu1 %v623_v19  ;;  %550 = vmatprep.subr.bf16.mxu0 %v624_v20 }
  0x16   :  { %572 = vmatprep.subr.bf16.mxu1 %v625_v21 }
  0x18   :  { %551 = vmatpush3.bf16.msra.mxu0 %v626_v25 }
  0x19   :  { %573 = vmatpush3.bf16.msra.mxu1 %v627_v26  ;;  %552 = vmatprep.subr.bf16.mxu0 %v628_v27 }
  0x1a   :  { %574 = vmatprep.subr.bf16.mxu1 %v629_v28 }
  0x1c   :  { %553 = vmatpush3.bf16.msra.mxu0 %v630_v31 }
  0x1d   :  { %575 = vmatpush3.bf16.msra.mxu1 %v631_v32  ;;  %554 = vmatprep.subr.bf16.mxu0 %v632_v33 }
  0x1e   :  { %576 = vmatprep.subr.bf16.mxu1 %v633_v34 }
  0x20   :  { %555 = vmatpush3.bf16.msra.mxu0 %v634_v36 }
  0x21   :  { %577 = vmatpush3.bf16.msra.mxu1 %v635_v37  ;;  %589 = vmatprep.subr.bf16.mxu0 %v642_v40 }
  0x23   :  { %392 = vmatmul.mubr.bf16.vlgmr.msra.gmra.mrb[0].mxu0 %v118_v42 }
  0x24   :  { %590 = vmatpush3.bf16.msra.mxu0 %v637_v44  ;;  %432 = vmatmul.mubr.bf16.vlgmr.msra.gmra.mrb[0].mxu1 %v133_v45 }
  0x25   :  { %591 = vmatprep.subr.bf16.mxu0 %v642_v40  ;;  %597 = vmatprep.mubr.msk.bf16.mxu0 %vm643_vm0, %v642_v40 }
  0x28   :  { %592 = vmatpush3.bf16.msra.mxu0 %v638_v47 }
  0x29   :  { %593 = vmatprep.subr.bf16.mxu0 %v642_v40 }
  0x2c   :  { %594 = vmatpush3.bf16.msra.mxu0 %v639_v49 }
  0x2d   :  { %595 = vmatprep.subr.bf16.mxu0 %v642_v40 }
  0x30   :  { %596 = vmatpush3.bf16.msra.mxu0 %v640_v51 }
  0x33   :  { %598 = vmatmul.mubr.msk.bf16.vlgmr.msra.gmra.mrb[4].mxu0 %vm355_vm1, %v125_v52 }
  0xf6   :  { %v556_v53 = vpop.f32.mrb[0].mxu0 }
  0xf7   :  { %v557_v54 = vpop.f32.mrb[1].mxu0  ;;  %v578_v55 = vpop.f32.mrb[0].mxu1 }
  0xf8   :  { %v558_v56 = vadd.f32 %v557_v54, %v556_v53  ;;  %v559_v57 = vpop.f32.mrb[2].mxu0  ;;  %v579_v58 = vpop.f32.mrb[1].mxu1 }
  0xf9   :  { %v560_v59 = vpop.f32.mrb[3].mxu0  ;;  %v580_v60 = vadd.f32 %v579_v58, %v578_v55  ;;  %v581_v61 = vpop.f32.mrb[2].mxu1 }
  0xfa   :  { %v582_v62 = vpop.f32.mrb[3].mxu1 }
  0xfb   :  { %v434_v63 = vadd.f32 %v580_v60, %v558_v56 }
 0x106   :  { %v473_v1 = vpop.f32.mrb[4].mxu0 }
 0x107   :  { %v474_v2 = vadd.f32 %v473_v1, %v434_v63  ;;  %v599_v3 = vpop.f32.mrb[5].mxu0 }
 0x108   :  { %v476_v4 = vpop.f32.mrb[6].mxu0 }
 0x109   :  { %v479_v5 = vadd.f32 %v474_v2, %v21_v0  ;;  %v600_v6 = vpop.f32.mrb[7].mxu0 }
 0x10b   :  { %481 = vst.msk [vmem:[#allocation2] sm:$0x3] %vm19_vm2, %v479_v5 }
 0x112   :  { %v485_v8 = vld [vmem:[#allocation2] sm:$0x3] }
 0x113   :  { %v493_v9 = vadd.f32 %v539_v7, %v485_v8 }
 0x115   :  { %v494_v10 = vmax.f32 %v493_v9, 0.0 }
 0x117   :  { %v495_v11 = vpack.c.bf16 %v494_v10, %v494_v10 }
 0x119   :  { %497 = vst.msk [vmem:[%s786_s3] sm:$0x1] %vm496_vm3, %v495_v11 }

// kernel: _lambda_.44
= control target key start
LH: loop header
LB: loop body
LE: loop exit
PB: predicated region body
PF: predicated region fallthrough
CT: control target
= control target key end

     0   :  { %v17_v0 = vlaneseq  ;;  %v203_v1 = vmov 1966171168   ;;  %vm64_vm0 = vcmask 1041408   ;;  %vm125_vm1 = vcmask 1041409   ;;  %s262_s1 = inlined_call_operand.vmem [shape: f32[2,2], index: 1, kind: input, shape index: {}]   ;;  %s263_s2 = inlined_call_operand.vmem [shape: f32[2,2], index: 2, kind: input, shape index: {}]   ;;  %s264_s0 = inlined_call_operand.vmem [shape: f32[2,256], index: 0, kind: input, shape index: {}]   ;;  %s265_s3 = inlined_call_operand.vmem [shape: f32[2,256], index: 3, kind: output, shape index: {}]  }
   0x1   :  { %v33_v2 = vunpack.c.l.s4 %v203_v1  ;;  %v15_v4 = vld [vmem:[%s262_s1] sm:$0x3]  ;;  %vm188_vm2 = vcmask 1043459   ;;  %vm190_vm3 = vcmask 1045509   ;;  %vm192_vm4 = vcmask 1047559  }
   0x2   :  { %v225_v3 = vshrl.u32 %v17_v0, 7  ;;  %v16_v5 = vld [vmem:[%s263_s2] sm:$0x3] }
   0x3   :  { %v34_v6 = vunpack.c.0.s8 %v33_v2  ;;  %v238_v9 = vld [vmem:[%s264_s0] sm:$0xf] }
   0x4   :  { %v19_v7 = vsub.s32 0, %v225_v3  ;;  %v26_v8 = vsub.s32 1, %v225_v3 }
   0x5   :  { %v37_v10 = vsub.s32 %v34_v6, %v225_v3 }
   0x6   :  { %v20_v11 = vrot.slane %v15_v4, %v19_v7  ;;  %v74_v12 = vrot.slane %v16_v5, %v19_v7  ;;  %v27_v14 = vrot.slane %v15_v4, %v26_v8  ;;  %v81_v15 = vrot.slane %v16_v5, %v26_v8 }
   0x7   :  { %v38_v13 = vrot.slane %v238_v9, %v37_v10 }
   0x8   :  { %22 = vbcast.lane.b32.xlu0 %v20_v11, 256  ;;  %76 = vbcast.lane.b32.xlu1 %v74_v12, 256 }
   0x9   :  { %v43_v16 = vrot.slane %v38_v13, %v19_v7  ;;  %v47_v17 = vrot.slane %v38_v13, %v26_v8  ;;  %v39_v18 = vcombine.high %v38_v13, %v38_v13 }
   0xb   :  { %v51_v19 = vrot.slane %v39_v18, %v19_v7  ;;  %v55_v20 = vrot.slane %v39_v18, %v26_v8 }
   0xc   :  { %29 = vbcast.lane.b32.xlu0 %v27_v14, 256  ;;  %83 = vbcast.lane.b32.xlu1 %v81_v15, 256 }
  0x7a   :  { %v23_v21 = vpop.permute.xlu0 %22  ;;  %v77_v22 = vpop.permute.xlu1 %76 }
  0x7b   :  { %v60_v23 = vmul.f32 %v43_v16, %v23_v21  ;;  %v61_v24 = vmul.f32 %v47_v17, %v23_v21 }
  0x7d   :  { %v65_v28 = vsel %vm64_vm0, %v60_v23, 0.0  ;;  %v68_v30 = vsel %vm64_vm0, %v61_v24, 0.0  ;;  %v204_v24 = vmov 1983009808  }
  0x7e   :  { %v30_v25 = vpop.permute.xlu0 %29  ;;  %v84_v32 = vpop.permute.xlu1 %83 }
  0x7f   :  { %v62_v26 = vmul.f32 %v51_v19, %v30_v25  ;;  %v63_v27 = vmul.f32 %v55_v20, %v30_v25 }
  0x81   :  { %v66_v29 = vsel %vm64_vm0, %v62_v26, 0.0  ;;  %v69_v31 = vsel %vm64_vm0, %v63_v27, 0.0  ;;  %v168_v26 = vunpack.c.l.s4 %v204_v24 }
  0x82   :  { %v67_v33 = vadd.f32 %v66_v29, %v65_v28  ;;  %v70_v34 = vadd.f32 %v69_v31, %v68_v30 }
  0x84   :  { %v85_v35 = vmul.f32 %v77_v22, %v67_v33  ;;  %v86_v36 = vmul.f32 %v77_v22, %v70_v34  ;;  %v87_v37 = vmul.f32 %v84_v32, %v67_v33  ;;  %v88_v38 = vmul.f32 %v84_v32, %v70_v34 }
  0x85   :  { %v169_v33 = vunpack.c.0.s8 %v168_v26 }
  0x86   :  { %v89_v39 = vsel %vm64_vm0, %v85_v35, 0.0  ;;  %v96_v40 = vsel %vm64_vm0, %v86_v36, 0.0  ;;  %v103_v41 = vsel %vm64_vm0, %v87_v37, 0.0  ;;  %v110_v42 = vsel %vm64_vm0, %v88_v38, 0.0 }
  0x87   :  { %v90_v43 = vrot.slane %v89_v39, 4  ;;  %v97_v44 = vrot.slane %v96_v40, 4  ;;  %v104_v45 = vrot.slane %v103_v41, 4  ;;  %v111_v46 = vrot.slane %v110_v42, 4 }
  0x89   :  { %v91_v47 = vadd.f32 %v90_v43, %v89_v39  ;;  %v98_v48 = vadd.f32 %v97_v44, %v96_v40  ;;  %v105_v49 = vadd.f32 %v104_v45, %v103_v41  ;;  %v112_v50 = vadd.f32 %v111_v46, %v110_v42 }
  0x8a   :  { %v172_v42 = vsub.s32 %v169_v33, %v225_v3 }
  0x8b   :  { %v92_v51 = vrot.slane %v91_v47, 2  ;;  %v99_v52 = vrot.slane %v98_v48, 2  ;;  %v106_v53 = vrot.slane %v105_v49, 2  ;;  %v113_v54 = vrot.slane %v112_v50, 2 }
  0x8d   :  { %v93_v55 = vadd.f32 %v92_v51, %v91_v47  ;;  %v100_v56 = vadd.f32 %v99_v52, %v98_v48  ;;  %v107_v57 = vadd.f32 %v106_v53, %v105_v49  ;;  %v114_v58 = vadd.f32 %v113_v54, %v112_v50 }
  0x8f   :  { %v94_v59 = vrot.slane %v93_v55, 1  ;;  %v101_v60 = vrot.slane %v100_v56, 1  ;;  %v108_v61 = vrot.slane %v107_v57, 1  ;;  %v115_v62 = vrot.slane %v114_v58, 1 }
  0x91   :  { %v95_v63 = vadd.f32 %v94_v59, %v93_v55  ;;  %v102_v0 = vadd.f32 %v101_v60, %v100_v56  ;;  %v109_v1 = vadd.f32 %v108_v61, %v107_v57  ;;  %v116_v2 = vadd.f32 %v115_v62, %v114_v58 }
  0x93   :  { %v117_v4 = vmul.f32 32.0, %v95_v63  ;;  %v118_v5 = vmul.f32 32.0, %v102_v0  ;;  %v119_v6 = vmul.f32 32.0, %v109_v1  ;;  %v120_v7 = vmul.f32 32.0, %v116_v2 }
  0x95   :  { %v126_v8 = vsel %vm125_vm1, %v119_v6, %v117_v4  ;;  %v127_v10 = vsel %vm125_vm1, %v120_v7, %v118_v5 }
  0x96   :  { %v130_v11 = vmul.f32 %v126_v8, %v23_v21  ;;  %v131_v12 = vmul.f32 %v127_v10, %v23_v21  ;;  %v132_v13 = vmul.f32 %v126_v8, %v30_v25  ;;  %v133_v14 = vmul.f32 %v127_v10, %v30_v25 }
  0x98   :  { %v134_v15 = vsel %vm64_vm0, %v130_v11, 0.0  ;;  %v141_v16 = vsel %vm64_vm0, %v131_v12, 0.0  ;;  %v148_v17 = vsel %vm64_vm0, %v132_v13, 0.0  ;;  %v155_v18 = vsel %vm64_vm0, %v133_v14, 0.0 }
  0x99   :  { %v135_v19 = vrot.slane %v134_v15, 4  ;;  %v142_v20 = vrot.slane %v141_v16, 4  ;;  %v149_v22 = vrot.slane %v148_v17, 4  ;;  %v156_v23 = vrot.slane %v155_v18, 4 }
  0x9b   :  { %v136_v27 = vadd.f32 %v135_v19, %v134_v15  ;;  %v143_v28 = vadd.f32 %v142_v20, %v141_v16  ;;  %v150_v29 = vadd.f32 %v149_v22, %v148_v17  ;;  %v157_v21 = vadd.f32 %v156_v23, %v155_v18 }
  0x9d   :  { %v137_v30 = vrot.slane %v136_v27, 2  ;;  %v144_v25 = vrot.slane %v143_v28, 2  ;;  %v151_v31 = vrot.slane %v150_v29, 2  ;;  %v158_v32 = vrot.slane %v157_v21, 2 }
  0x9f   :  { %v138_v34 = vadd.f32 %v137_v30, %v136_v27  ;;  %v145_v35 = vadd.f32 %v144_v25, %v143_v28  ;;  %v152_v36 = vadd.f32 %v151_v31, %v150_v29  ;;  %v159_v37 = vadd.f32 %v158_v32, %v157_v21 }
  0xa1   :  { %v139_v38 = vrot.slane %v138_v34, 1  ;;  %v146_v39 = vrot.slane %v145_v35, 1  ;;  %v153_v40 = vrot.slane %v152_v36, 1  ;;  %v160_v41 = vrot.slane %v159_v37, 1 }
  0xa3   :  { %v140_v43 = vadd.f32 %v139_v38, %v138_v34  ;;  %v147_v44 = vadd.f32 %v146_v39, %v145_v35  ;;  %v154_v45 = vadd.f32 %v153_v40, %v152_v36  ;;  %v161_v46 = vadd.f32 %v160_v41, %v159_v37 }
  0xa5   :  { %v166_v47 = vcombine.low %v140_v43, %v147_v44  ;;  %v174_v48 = vcombine.low %v154_v45, %v161_v46 }
  0xa7   :  { %v173_v49 = vrot.slane %v166_v47, %v172_v42  ;;  %v181_v50 = vrot.slane %v174_v48, %v172_v42 }
  0xa9   :  { %v186_v51 = vrot.slane %v181_v50, 7 }
  0xab   :  { %v187_v52 = vsel %vm125_vm1, %v186_v51, %v173_v49 }
  0xac   :  { %v189_v53 = vsel %vm188_vm2, %v186_v51, %v187_v52 }
  0xad   :  { %v191_v54 = vsel %vm190_vm3, %v186_v51, %v189_v53 }
  0xae   :  { %v193_v55 = vsel %vm192_vm4, %v186_v51, %v191_v54 }
  0xaf   :  { %v195_v56 = vsub.f32 %v238_v9, %v193_v55 }
  0xb1   :  { %196 = vst [vmem:[%s265_s3] sm:$0xf] %v195_v56 }

// kernel: _lambda_.43
= control target key start
LH: loop header
LB: loop body
LE: loop exit
PB: predicated region body
PF: predicated region fallthrough
CT: control target
= control target key end

     0   :  { %v406_v9 = vmov 1966171168   ;;  %v65_v11 = vlaneseq  ;;  %v407_v42 = vmov 0.0   ;;  %v408_v43 = vmov 1983009808   ;;  %s540_s1 = inlined_call_operand.vmem [shape: bf16[256,256], index: 1, kind: input, shape index: {}]   ;;  %s541_s0 = inlined_call_operand.vmem [shape: bf16[2,256], index: 0, kind: input, shape index: {}]   ;;  %s542_s2 = inlined_call_operand.vmem [shape: f32[1,256], index: 2, kind: input, shape index: {}]   ;;  %s543_s3 = inlined_call_operand.vmem [shape: f32[2,256], index: 3, kind: output, shape index: {}]  }
   0x1   :  { %v358_v0 = vld [vmem:[%s540_s1 + $0x4] ss:$8 sps:$4 sm:$0xff]   ;;  %v360_v1 = vld [vmem:[%s540_s1] ss:$8 sps:$4 sm:$0xff]   ;;  %v361_v2 = vld [vmem:[%s540_s1 + $0x14] ss:$8 sps:$4 sm:$0xff]   ;;  %v63_v10 = vunpack.c.l.s4 %v406_v9  ;;  %v283_v44 = vunpack.c.l.s4 %v408_v43 }
   0x2   :  { %238 = vmatprep.subr.bf16.mxu0 %v358_v0  ;;  %v363_v3 = vld [vmem:[%s540_s1 + $0x10] ss:$8 sps:$4 sm:$0xff]   ;;  %v364_v4 = vld [vmem:[%s540_s1 + $0x24] ss:$8 sps:$4 sm:$0xff]   ;;  %v366_v5 = vld [vmem:[%s540_s1 + $0x20] ss:$8 sps:$4 sm:$0xff]  }
   0x3   :  { %239 = vmatpush1.bf16.msra.mxu0 %v360_v1  ;;  %v367_v6 = vld [vmem:[%s540_s1 + $0x34] ss:$8 sps:$4 sm:$0xff]   ;;  %v369_v7 = vld [vmem:[%s540_s1 + $0x30] ss:$8 sps:$4 sm:$0xff]   ;;  %v370_v8 = vld [vmem:[%s540_s1 + $0x44] ss:$8 sps:$4 sm:$0xff]   ;;  %v64_v14 = vunpack.c.0.s8 %v63_v10  ;;  %v284_v45 = vunpack.c.0.s8 %v283_v44 }
   0x4   :  { %240 = vmatprep.subr.bf16.mxu0 %v361_v2  ;;  %v372_v12 = vld [vmem:[%s540_s1 + $0x40] ss:$8 sps:$4 sm:$0xff]   ;;  %v373_v13 = vld [vmem:[%s540_s1 + $0x54] ss:$8 sps:$4 sm:$0xff]   ;;  %v462_v15 = vshrl.u32 %v65_v11, 7 }
   0x5   :  { %v375_v16 = vld [vmem:[%s540_s1 + $0x50] ss:$8 sps:$4 sm:$0xff]   ;;  %v376_v17 = vld [vmem:[%s540_s1 + $0x64] ss:$8 sps:$4 sm:$0xff]   ;;  %v378_v21 = vld [vmem:[%s540_s1 + $0x60] ss:$8 sps:$4 sm:$0xff]  }
   0x6   :  { %v67_v18 = vsub.s32 %v64_v14, %v462_v15  ;;  %v322_v19 = vld.sshfl [vmem:[%s541_s0] sm:$0x11 pattern:$0x75316420]  ;;  %v379_v22 = vld [vmem:[%s540_s1 + $0x74] ss:$8 sps:$4 sm:$0xff]   ;;  %v287_v47 = vsub.s32 %v284_v45, %v462_v15 }
   0x7   :  { %241 = vmatpush1.bf16.msra.mxu0 %v363_v3  ;;  %v61_v20 = vcombine.high %v322_v19, %v322_v19  ;;  %v381_v24 = vld [vmem:[%s540_s1 + $0x70] ss:$8 sps:$4 sm:$0xff]   ;;  %v382_v25 = vld [vmem:[%s540_s1 + $0x84] ss:$8 sps:$4 sm:$0xff]   ;;  %v384_v26 = vld [vmem:[%s540_s1 + $0x80] ss:$8 sps:$4 sm:$0xff]  }
   0x8   :  { %242 = vmatprep.subr.bf16.mxu0 %v364_v4  ;;  %v385_v27 = vld [vmem:[%s540_s1 + $0x94] ss:$8 sps:$4 sm:$0xff]   ;;  %v387_v28 = vld [vmem:[%s540_s1 + $0x90] ss:$8 sps:$4 sm:$0xff]   ;;  %v388_v29 = vld [vmem:[%s540_s1 + $0xa4] ss:$8 sps:$4 sm:$0xff]   ;;  %v68_v41 = vrot.slane %v322_v19, %v67_v18 }
   0x9   :  { %v75_v23 = vrot.slane %v61_v20, %v67_v18  ;;  %v390_v30 = vld [vmem:[%s540_s1 + $0xa0] ss:$8 sps:$4 sm:$0xff]   ;;  %v391_v31 = vld [vmem:[%s540_s1 + $0xb4] ss:$8 sps:$4 sm:$0xff]   ;;  %v393_v32 = vld [vmem:[%s540_s1 + $0xb0] ss:$8 sps:$4 sm:$0xff]  }
   0xa   :  { %v394_v33 = vld [vmem:[%s540_s1 + $0xc4] ss:$8 sps:$4 sm:$0xff]   ;;  %v396_v34 = vld [vmem:[%s540_s1 + $0xc0] ss:$8 sps:$4 sm:$0xff]   ;;  %v397_v35 = vld [vmem:[%s540_s1 + $0xd4] ss:$8 sps:$4 sm:$0xff]  }
   0xb   :  { %243 = vmatpush1.bf16.msra.mxu0 %v366_v5  ;;  %270 = vmatprep.mubr.bf16.mxu0 %v75_v23  ;;  %v399_v36 = vld [vmem:[%s540_s1 + $0xd0] ss:$8 sps:$4 sm:$0xff]   ;;  %v400_v37 = vld [vmem:[%s540_s1 + $0xe4] ss:$8 sps:$4 sm:$0xff]   ;;  %v402_v38 = vld [vmem:[%s540_s1 + $0xe0] ss:$8 sps:$4 sm:$0xff]  }
   0xc   :  { %244 = vmatprep.subr.bf16.mxu0 %v367_v6  ;;  %v403_v39 = vld [vmem:[%s540_s1 + $0xf4] ss:$8 sps:$4 sm:$0xff]   ;;  %v405_v40 = vld [vmem:[%s540_s1 + $0xf0] ss:$8 sps:$4 sm:$0xff]   ;;  %18 = vst [vmem:[#allocation2] sm:$0xf] %v407_v42 }
   0xd   :  { %v300_v48 = vsub.s32 0, %v462_v15  ;;  %v304_v49 = vsub.s32 1, %v462_v15  ;;  %v296_v51 = vld [vmem:[%s542_s2] sm:$0x3] }
   0xf   :  { %245 = vmatpush1.bf16.msra.mxu0 %v369_v7  ;;  %v301_v57 = vrot.slane %v296_v51, %v300_v48  ;;  %v305_v58 = vrot.slane %v296_v51, %v304_v49 }
  0x10   :  { %246 = vmatprep.subr.bf16.mxu0 %v370_v8 }
  0x11   :  { %v306_v60 = vcombine.low %v301_v57, %v305_v58 }
  0x13   :  { %247 = vmatpush1.bf16.msra.mxu0 %v372_v12  ;;  %v19_v54 = vld [vmem:[#allocation2] sm:$0xf]  ;;  %v313_v61 = vrot.slane %v306_v60, %v287_v47 }
  0x14   :  { %248 = vmatprep.subr.bf16.mxu0 %v373_v13 }
  0x17   :  { %249 = vmatpush1.bf16.msra.mxu0 %v375_v16 }
  0x18   :  { %250 = vmatprep.subr.bf16.mxu0 %v376_v17 }
  0x1b   :  { %251 = vmatpush1.bf16.msra.mxu0 %v378_v21 }
  0x1c   :  { %252 = vmatprep.subr.bf16.mxu0 %v379_v22 }
  0x1f   :  { %253 = vmatpush1.bf16.msra.mxu0 %v381_v24 }
  0x20   :  { %254 = vmatprep.subr.bf16.mxu0 %v382_v25 }
  0x23   :  { %255 = vmatpush1.bf16.msra.mxu0 %v384_v26 }
  0x24   :  { %256 = vmatprep.subr.bf16.mxu0 %v385_v27 }
  0x27   :  { %257 = vmatpush1.bf16.msra.mxu0 %v387_v28 }
  0x28   :  { %258 = vmatprep.subr.bf16.mxu0 %v388_v29 }
  0x2b   :  { %259 = vmatpush1.bf16.msra.mxu0 %v390_v30 }
  0x2c   :  { %260 = vmatprep.subr.bf16.mxu0 %v391_v31 }
  0x2f   :  { %261 = vmatpush1.bf16.msra.mxu0 %v393_v32 }
  0x30   :  { %262 = vmatprep.subr.bf16.mxu0 %v394_v33 }
  0x33   :  { %263 = vmatpush1.bf16.msra.mxu0 %v396_v34 }
  0x34   :  { %264 = vmatprep.subr.bf16.mxu0 %v397_v35 }
  0x37   :  { %265 = vmatpush1.bf16.msra.mxu0 %v399_v36 }
  0x38   :  { %266 = vmatprep.subr.bf16.mxu0 %v400_v37 }
  0x3b   :  { %267 = vmatpush1.bf16.msra.mxu0 %v402_v38 }
  0x3c   :  { %268 = vmatprep.subr.bf16.mxu0 %v403_v39 }
  0x3f   :  { %269 = vmatpush1.bf16.msra.mxu0 %v405_v40 }
  0x42   :  { %271 = vmatmul.mubr.bf16.vlgmr.msra.gmra.mrb[0].mxu0 %v68_v41 }
 0x115   :  { %v272_v46 = vpop.f32.mrb[0].mxu0 }
 0x116   :  { %v274_v50 = vpop.f32.mrb[1].mxu0 }
 0x117   :  { %v281_v52 = vcombine.low %v272_v46, %v274_v50  ;;  %v276_v53 = vpop.f32.mrb[2].mxu0 }
 0x118   :  { %v277_v55 = vpop.f32.mrb[3].mxu0 }
 0x119   :  { %v288_v56 = vrot.slane %v281_v52, %v287_v47 }
 0x11b   :  { %v290_v59 = vadd.f32 %v288_v56, %v19_v54 }
 0x11d   :  { %291 = vst [vmem:[#allocation2] sm:$0xf] %v290_v59 }
 0x124   :  { %v295_v62 = vld [vmem:[#allocation2] sm:$0xf] }
 0x125   :  { %v315_v63 = vadd.f32 %v313_v61, %v295_v62 }
 0x127   :  { %v316_v0 = vmax.f32 %v315_v63, 0.0 }
 0x129   :  { %317 = vst [vmem:[%s543_s3] sm:$0xf] %v316_v0 }

// kernel: _lambda_.47
= control target key start
LH: loop header
LB: loop body
LE: loop exit
PB: predicated region body
PF: predicated region fallthrough
CT: control target
= control target key end

     0   :  { %v68_v9 = vlaneseq  ;;  %v330_v13 = vmov 1966171168   ;;  %s422_s0 = inlined_call_operand.vmem [shape: bf16[2,256], index: 0, kind: input, shape index: {}]   ;;  %s423_s1 = inlined_call_operand.vmem [shape: bf16[256,2], index: 1, kind: input, shape index: {}]   ;;  %s424_s2 = inlined_call_operand.vmem [shape: f32[1,2], index: 2, kind: input, shape index: {}]   ;;  %s425_s3 = inlined_call_operand.hbm [shape: f32[2,2], index: 3, kind: output, shape index: {}]  }
   0x1   :  { %v290_v0 = vld [vmem:[%s423_s1 + $0x40] sm:$0xff]   ;;  %v292_v2 = vld [vmem:[%s423_s1 + $0x48] sm:$0xff]   ;;  %v294_v4 = vld [vmem:[%s423_s1 + $0x50] sm:$0xff]   ;;  %v66_v14 = vunpack.c.l.s4 %v330_v13 }
   0x2   :  { %v291_v1 = vld [vmem:[%s423_s1] sm:$0xff]   ;;  %265 = vmatprep.subr.bf16.mxu0 %v290_v0  ;;  %v293_v3 = vld [vmem:[%s423_s1 + $0x8] sm:$0xff]   ;;  %v295_v5 = vld [vmem:[%s423_s1 + $0x10] sm:$0xff]   ;;  %v69_v15 = vshrl.u32 %v68_v9, 7 }
   0x3   :  { %266 = vmatpush3.bf16.msra.mxu0 %v291_v1  ;;  %v296_v6 = vld [vmem:[%s423_s1 + $0x58] sm:$0xff]   ;;  %v298_v8 = vld [vmem:[%s423_s1 + $0x60] sm:$0xff]   ;;  %v300_v11 = vld [vmem:[%s423_s1 + $0x68] sm:$0xff]  }
   0x4   :  { %267 = vmatprep.subr.bf16.mxu0 %v292_v2  ;;  %v297_v7 = vld [vmem:[%s423_s1 + $0x18] sm:$0xff]   ;;  %v299_v10 = vld [vmem:[%s423_s1 + $0x20] sm:$0xff]  }
   0x5   :  { %v247_v12 = vld.sshfl [vmem:[%s422_s0] sm:$0x11 pattern:$0x75316420] }
   0x7   :  { %268 = vmatpush3.bf16.msra.mxu0 %v293_v3 }
   0x8   :  { %269 = vmatprep.subr.bf16.mxu0 %v294_v4 }
   0xb   :  { %270 = vmatpush3.bf16.msra.mxu0 %v295_v5 }
   0xc   :  { %271 = vmatprep.subr.bf16.mxu0 %v296_v6 }
   0xf   :  { %272 = vmatpush3.bf16.msra.mxu0 %v297_v7 }
  0x10   :  { %273 = vmatprep.subr.bf16.mxu0 %v298_v8 }
  0x11   :  { %8 = vsyncpa [#allocation4], 0  ;;  %v301_v16 = vld [vmem:[%s423_s1 + $0x28] sm:$0xff]   ;;  %v64_v17 = vcombine.high %v247_v12, %v247_v12  ;;  %v67_v18 = vunpack.c.0.s8 %v66_v14  ;;  %v302_v19 = vld [vmem:[%s423_s1 + $0x70] sm:$0xff]   ;;  %vm20_vm0 = vcmask 9216   ;;  %v331_v26 = vmov 0.0  }
  0x12   :  { %v303_v21 = vld [vmem:[%s423_s1 + $0x30] sm:$0xff]   ;;  %v304_v23 = vld [vmem:[%s423_s1 + $0x78] sm:$0xff]   ;;  %21 = vst.msk [vmem:[#allocation2] sm:$0x3] %vm20_vm0, %v331_v26  ;;  %v264_v34 = vld [vmem:[%s424_s2] ss:$0 sm:$0xff] }
  0x13   :  { %274 = vmatpush3.bf16.msra.mxu0 %v299_v10  ;;  %v70_v20 = vsub.s32 %v67_v18, %v69_v15  ;;  %v305_v24 = vld [vmem:[%s423_s1 + $0x38] sm:$0xff]   ;;  %s332_s1 = smov [#allocation3]  }
  0x14   :  { %275 = vmatprep.subr.bf16.mxu0 %v300_v11  ;;  %s239_s20 = sshll.u32 %s332_s1, 4  ;;  %s240_s20 = int_to_ptr.vmem [resolvable:$true] %s239_s20 }
  0x15   :  { %v78_v22 = vrot.slane %v64_v17, %v70_v20  ;;  %v71_v25 = vrot.slane %v247_v12, %v70_v20  ;;  %s306_s21 = scalar_lea.vmem %s240_s20, 32  ;;  %p311_p1 = scmp.lt.s32.totalorder %s240_s20, %s240_s20 }
  0x16   :  { %p307_p0 = scmp.ne.s32.totalorder %s240_s20, %s306_s21  ;;  %p312_p2 = scmp.lt.s32.totalorder %s306_s21, %s306_s21 }
  0x17   :  { %276 = vmatpush3.bf16.msra.mxu0 %v301_v16  ;;  %209 = vmatprep.mubr.bf16.mxu0 %v78_v22 }
  0x18   :  { %277 = vmatprep.subr.bf16.mxu0 %v302_v19  ;;  %p313_p3 = por %p312_p2, %p311_p1 }
  0x19   :  { %v22_v28 = vld [vmem:[#allocation2] sm:$0x3] }
  0x1a   :  { %p314_p4 = pnand %p313_p3, %p307_p0 }
  0x1b   :  { %278 = vmatpush3.bf16.msra.mxu0 %v303_v21 }
  0x1c   :  { %279 = vmatprep.subr.bf16.mxu0 %v304_v23 }
  0x1f   :  { %280 = vmatpush3.bf16.msra.mxu0 %v305_v24 }
  0x22   :  { %210 = vmatmul.mubr.bf16.vlgmr.msra.gmra.mrb[0].mxu0 %v71_v25 }
  0xf5   :  { %v281_v27 = vpop.f32.mrb[0].mxu0 }
  0xf6   :  { %v282_v29 = vpop.f32.mrb[1].mxu0 }
  0xf7   :  { %v283_v30 = vadd.f32 %v282_v29, %v281_v27  ;;  %v284_v31 = vpop.f32.mrb[2].mxu0 }
  0xf8   :  { %v285_v32 = vpop.f32.mrb[3].mxu0 }
  0xf9   :  { %v217_v33 = vadd.f32 %v283_v30, %v22_v28 }
  0xfb   :  { %219 = vst.msk [vmem:[#allocation2] sm:$0x3] %vm20_vm0, %v217_v33 }
 0x102   :  { %v223_v35 = vld [vmem:[#allocation2] sm:$0x3] }
 0x103   :  { %v231_v36 = vadd.f32 %v264_v34, %v223_v35 }
 0x105   :  { %232 = vst.msk [vmem:[#allocation3] sm:$0x3] %vm20_vm0, %v231_v36 }
 0x106   :  { %317 = shalt.err (!%p314_p4)
}
 0x107   :  { %s318_s24 = scalar_lea.hbm %s425_s3, 32 }
 0x108   :  { %p319_p5 = scmp.ne.s32.totalorder %s425_s3, %s318_s24  ;;  %p322_p6 = scmp.lt.u32.totalorder %s318_s24, %s425_s3 }
 0x10a   :  { %p324_p7 = pnand %p322_p6, %p319_p5 }
 0x10c   :  { %327 = shalt.err (!%p324_p7)
}
 0x10d   :  { %242 = dma.vmem_to_hbm [thread:$0]  %s240_s20, 32, %s425_s3, [#allocation4]  }
 0x10e   :  { %328 = dma.done.wait [#allocation4], 32  }
 0x10f   :  { %329 = vsyncadd [#allocation4], 4294967264 }
 0x110   :  { %246 = vsyncpa [#allocation4], 1 }

</bundles_post_ra>
